<compile_context>
chip_gen: v7x
topology: tpu7x:2x2x1
jax: 0.10.0
libtpu: 0.0.40
codegen_flags: <defaults>
</compile_context>

<pallas_src>
import numpy as np
import jax
import jax.numpy as jnp
from jax.experimental import pallas as pl
from jax.scipy.linalg import block_diag

DIM = 32          # model dim
HEADS = 8
HEAD_DIM = DIM // HEADS
MLP_DIM = 64
SEQ = 5           # sequence length MUST be 5 (skipcat Conv2d has in_channels=5)
DEPTH = 4         # forward indexes outputs[0..3]
LN_EPS = 1e-5
NEG_INF = -1e30
BF16 = jnp.bfloat16

_HI = jax.lax.Precision.HIGHEST   # wrapper-side folds / pure-JAX reference only


# --------------------------------------------------------------------------- #
# in-kernel helpers (pure jnp, traced inside the Pallas kernel)
# --------------------------------------------------------------------------- #
def _normalize(v):
    """LayerNorm without the affine part (affine is folded into the next matmul)."""
    mu = jnp.mean(v, axis=-1, keepdims=True)
    var = jnp.mean(jnp.square(v - mu), axis=-1, keepdims=True)
    return (v - mu) * jax.lax.rsqrt(var + LN_EPS)


def _gelu(v):
    return 0.5 * v * (1.0 + jax.lax.erf(v * (2.0 ** -0.5)))          # exact GELU


def _softmax_last(s):
    s = s - jnp.max(s, axis=-1, keepdims=True)
    p = jnp.exp(s)
    denom = jnp.sum(p, axis=-1, keepdims=True)
    if hasattr(pl, "reciprocal"):           # EUP reciprocal (exact), off the VALU
        return p * pl.reciprocal(denom, approx=False)
    return p / denom


def _mm(a, w_bf16):
    """bf16-operand MXU matmul with f32 accumulation (single-pass on all gens)."""
    return jnp.dot(a.astype(BF16), w_bf16, preferred_element_type=jnp.float32)


def _mh_attention(q, k, v, expand, head_mask, batch_bias, collapse):
    """Block-diagonal multi-head attention over all (batch, group) pairs at once.

    q, k, v:     (B*N, G*hd) f32   per-token projections, groups side by side
                 (the attention scale is already folded into the Q weights).
    expand:      (B*G*N, B*N) bf16 copies each token row once per group.
    head_mask:   (B*G*N, G*hd) bf16 keeps only the group's own hd columns.
    batch_bias:  (B*G*N, B*N) f32  0 for same-batch keys, -1e30 otherwise.
    collapse:    (B*N, B*G*N) bf16 sums the per-group rows back to one row/token.
    """
    q_bf, k_bf, v_bf = (t.astype(BF16) for t in (q, k, v))
    q_bd = (jnp.dot(expand, q_bf, preferred_element_type=jnp.float32)
            .astype(BF16) * head_mask)
    scores = jax.lax.dot_general(q_bd, k_bf, (((1,), (1,)), ((), ())),
                                 preferred_element_type=jnp.float32)
    # TODO(synk): the (rows, B*N) score layout wastes lanes (review item,
    # mainly v5e); a lane-dense (B*N, G*B*N) layout with segmented softmax
    # would cut exp/max/sum vreg count ~5x but needs a segment reduce.
    attn = _softmax_last(scores + batch_bias)                         # exact f32 softmax
    out_bd = (jnp.dot(attn.astype(BF16), v_bf, preferred_element_type=jnp.float32)
              .astype(BF16) * head_mask)
    return jnp.dot(collapse, out_bd, preferred_element_type=jnp.float32)


# --------------------------------------------------------------------------- #
# the single fused kernel
# --------------------------------------------------------------------------- #
def _transformer_kernel(
    x_ref,
    wqkv_ref, bqkv_ref, wo_ref, bo_ref, lnavg_ref,
    w1_ref, b1_ref, w2_ref, b2_ref,
    wskip_ref, bskip_ref,
    exp4_ref, msk4_ref, bias4_ref, col4_ref,
    wqkv1_ref, bqkv1_ref, wo1_ref, bo1_ref, w11_ref, b11_ref, w21_ref, b21_ref,
    exp1_ref, msk1_ref, bias1_ref, col1_ref,
    o_ref,
):
    xf = x_ref[...]                                                   # (B*N, 32) f32

    # ---- 4 independent blocks, attention sublayer (all read the ORIGINAL x) --
    xhat = _normalize(xf)                                             # LN affine folded into wqkv
    qkv = _mm(xhat, wqkv_ref[...]) + bqkv_ref[...]                    # (B*N, 384) f32
    q_all = qkv[:, 0 * DEPTH * DIM:1 * DEPTH * DIM]                   # [Q0..Q3] (scale pre-folded)
    k_all = qkv[:, 1 * DEPTH * DIM:2 * DEPTH * DIM]
    v_all = qkv[:, 2 * DEPTH * DIM:3 * DEPTH * DIM]
    att = _mh_attention(q_all, k_all, v_all, exp4_ref[...], msk4_ref[...],
                        bias4_ref[...], col4_ref[...])                # (B*N, 128) f32
    att = _mm(att, wo_ref[...]) + bo_ref[...]
    # residual: x lane-replicated into each layer's 32-column block (no matmul)
    x1_all = jnp.concatenate([xf] * DEPTH, axis=1) + att              # (B*N, 128)

    # ---- 4 independent blocks, MLP sublayer --------------------------------
    # grouped LN stats via two INDEPENDENT group-averaging matmuls that can
    # pipeline in the MXU; var = E[x^2] - mu^2 guarded against cancellation.
    x1_bf = x1_all.astype(BF16)
    sq_bf = (x1_all * x1_all).astype(BF16)                            # square in f32, cast once
    mu = jnp.dot(x1_bf, lnavg_ref[...], preferred_element_type=jnp.float32)
    m2 = jnp.dot(sq_bf, lnavg_ref[...], preferred_element_type=jnp.float32)
    var = jnp.maximum(m2 - mu * mu, 0.0)
    xhat2 = (x1_all - mu) * jax.lax.rsqrt(var + LN_EPS)
    h1 = _gelu(_mm(xhat2, w1_ref[...]) + b1_ref[...])                 # (B*N, 256)
    out_all = x1_all + _mm(h1, w2_ref[...]) + b2_ref[...]             # (B*N, 128): 4 layer outputs

    # ---- skipcat Conv2d(5,5,[1,5]): 5 independent seq-mixing matmuls, tree sum
    xf_bf = xf.astype(BF16)
    out_bf = out_all.astype(BF16)
    s0 = jnp.dot(wskip_ref[0], xf_bf, preferred_element_type=jnp.float32)
    s1 = jnp.dot(wskip_ref[1], out_bf[:, 0 * DIM:1 * DIM], preferred_element_type=jnp.float32)
    s2 = jnp.dot(wskip_ref[2], out_bf[:, 1 * DIM:2 * DIM], preferred_element_type=jnp.float32)
    s3 = jnp.dot(wskip_ref[3], out_bf[:, 2 * DIM:3 * DIM], preferred_element_type=jnp.float32)
    s4 = jnp.dot(wskip_ref[4], out_bf[:, 3 * DIM:4 * DIM], preferred_element_type=jnp.float32)
    xs = ((s0 + s1) + (s2 + s3)) + (s4 + bskip_ref[...])              # (B*N, 32)

    # ---- final block (reuses layers[1] weights) ------------------------------
    qkv_s = _mm(_normalize(xs), wqkv1_ref[...]) + bqkv1_ref[...]
    att_s = _mh_attention(qkv_s[:, 0:DIM], qkv_s[:, DIM:2 * DIM], qkv_s[:, 2 * DIM:3 * DIM],
                          exp1_ref[...], msk1_ref[...], bias1_ref[...], col1_ref[...])
    x1s = xs + _mm(att_s, wo1_ref[...]) + bo1_ref[...]
    h1s = _gelu(_mm(_normalize(x1s), w11_ref[...]) + b11_ref[...])
    o_ref[...] = (x1s + _mm(h1s, w21_ref[...]) + b21_ref[...]).astype(o_ref.dtype)


# --------------------------------------------------------------------------- #
# wrapper-side (params-only) preprocessing
# --------------------------------------------------------------------------- #
def _attention_constants(batch, groups, n, head_dim):
    """Expand / head-mask / batch-bias / collapse matrices for block-diag MHA."""
    width = groups * head_dim
    rows = batch * groups * n
    r = np.arange(rows)
    rb = r // (groups * n)            # batch index of the row
    rg = (r // n) % groups            # (layer, head) group of the row
    ri = r % n                        # query position of the row
    expand = np.zeros((rows, batch * n), np.float32)
    expand[r, rb * n + ri] = 1.0
    collapse = np.ascontiguousarray(expand.T)
    cols = np.arange(width)
    head_mask = (rg[:, None] == cols[None, :] // head_dim).astype(np.float32)
    key_b = np.arange(batch * n) // n
    batch_bias = np.where(rb[:, None] == key_b[None, :], 0.0, NEG_INF).astype(np.float32)
    return expand, head_mask, batch_bias, collapse


def transformer_forward(x, params):
    """Forward matching the torch `Transformer` (eval / inference semantics)."""
    b, n, d = x.shape
    assert n == SEQ and d == DIM and len(params['layers']) == DEPTH
    layers = params['layers']
    # scale columns: fold the attention scale (dim**-0.5) into the Q projection
    qscale = jnp.concatenate([jnp.full((1, d), DIM ** -0.5, jnp.float32),
                              jnp.ones((1, 2 * d), jnp.float32)], axis=1)

    def fold_qkv(p):     # LN1 affine + attention scale folded into to_qkv
        w = p['ln1_g'].reshape(d, 1) * p['wqkv']
        bb = jnp.dot(p['ln1_b'], p['wqkv'], precision=_HI) + p['bqkv']
        return w * qscale, bb * qscale

    def fold_mlp(p):     # LN2 affine folded into the first MLP linear
        return (p['ln2_g'].reshape(d, 1) * p['w1'],
                jnp.dot(p['ln2_b'], p['w1'], precision=_HI) + p['b1'])

    qkv_f = [fold_qkv(p) for p in layers]
    # group q / k / v of all 4 layers side by side: [Q0..Q3 | K0..K3 | V0..V3]
    wqkv_all = jnp.concatenate(
        [jnp.concatenate([qkv_f[l][0][:, j * d:(j + 1) * d] for l in range(DEPTH)], axis=1)
         for j in range(3)], axis=1)                                       # (32, 384)
    bqkv_all = jnp.concatenate(
        [jnp.concatenate([qkv_f[l][1][:, j * d:(j + 1) * d] for l in range(DEPTH)], axis=1)
         for j in range(3)], axis=1)                                       # (1, 384)

    wo_bd = block_diag(*[p['wo'] for p in layers])                         # (128, 128)
    bo_all = jnp.concatenate([p['bo'] for p in layers], axis=1)            # (1, 128)

    mlp_f = [fold_mlp(p) for p in layers]
    w1_bd = block_diag(*[w for w, _ in mlp_f])                             # (128, 256)
    b1_all = jnp.concatenate([bb for _, bb in mlp_f], axis=1)              # (1, 256)
    w2_bd = block_diag(*[p['w2'] for p in layers])                         # (256, 128)
    b2_all = jnp.concatenate([p['b2'] for p in layers], axis=1)            # (1, 128)

    lnavg = np.kron(np.eye(DEPTH, dtype=np.float32),
                    np.full((d, d), 1.0 / d, np.float32))                  # (128, 128) group means

    # skipcat Conv2d(5,5,[1,5]): one (B*5, B*5) seq-mixing matrix per skip source
    wskip = jnp.stack(
        [block_diag(*([params['conv_w'][:, :, 0, s]] * b)) for s in range(SEQ)],
        axis=0)                                                            # (5, B*5, B*5)
    bskip = jnp.broadcast_to(jnp.tile(params['conv_b'], (b,))[:, None], (b * n, d))

    exp4, msk4, bias4, col4 = _attention_constants(b, DEPTH * HEADS, n, HEAD_DIM)
    exp1, msk1, bias1, col1 = _attention_constants(b, HEADS, n, HEAD_DIM)

    p1 = layers[1]                       # the final block reuses layers[1]
    wqkv1, bqkv1 = fold_qkv(p1)
    w11, b11 = fold_mlp(p1)

    bf = lambda a: jnp.asarray(a, BF16)          # bf16 MXU operands / structural constants
    f32 = lambda a: jnp.asarray(a, jnp.float32)  # biases stay f32 (added post-accumulation)

    out = pl.pallas_call(
        _transformer_kernel,
        out_shape=jax.ShapeDtypeStruct((b * n, d), jnp.float32),
    )(x.reshape(b * n, d).astype(jnp.float32),
      bf(wqkv_all), f32(bqkv_all), bf(wo_bd), f32(bo_all), bf(lnavg),
      bf(w1_bd), f32(b1_all), bf(w2_bd), f32(b2_all),
      bf(wskip), f32(bskip),
      bf(exp4), bf(msk4), f32(bias4), bf(col4),
      bf(wqkv1), f32(bqkv1), bf(p1['wo']), f32(p1['bo']),
      bf(w11), f32(b11), bf(p1['w2']), f32(p1['b2']),
      bf(exp1), bf(msk1), f32(bias1), bf(col1))
    return out.reshape(b, n, d)


# --------------------------------------------------------------------------- #
# pure-JAX reference (mirrors the torch module literally) for a sanity check
# --------------------------------------------------------------------------- #
def _layer_norm_ref(v, g, bb):
    mu = jnp.mean(v, axis=-1, keepdims=True)
    var = jnp.mean(jnp.square(v - mu), axis=-1, keepdims=True)
    return (v - mu) / jnp.sqrt(var + LN_EPS) * g + bb


def _softmax_ref(s):
    s = s - jnp.max(s, axis=-1, keepdims=True)
    e = jnp.exp(s)
    return e / jnp.sum(e, axis=-1, keepdims=True)


def _attention_ref(v, p):
    bsz, n, _ = v.shape
    xn = _layer_norm_ref(v, p['ln1_g'], p['ln1_b'])
    qkv = jnp.dot(xn, p['wqkv'], precision=_HI) + p['bqkv']
    q, k, vv = jnp.split(qkv, 3, axis=-1)

    def to_heads(t):
        return t.reshape(bsz, n, HEADS, HEAD_DIM).transpose(0, 2, 1, 3)

    q, k, vv = to_heads(q), to_heads(k), to_heads(vv)
    dots = jnp.einsum('bhid,bhjd->bhij', q, k, precision=_HI) * (DIM ** -0.5)
    attn = _softmax_ref(dots)
    out = jnp.einsum('bhij,bhjd->bhid', attn, vv, precision=_HI)
    out = out.transpose(0, 2, 1, 3).reshape(bsz, n, DIM)
    return v + (jnp.dot(out, p['wo'], precision=_HI) + p['bo'])


def _mlp_ref(v, p):
    xn = _layer_norm_ref(v, p['ln2_g'], p['ln2_b'])
    h = jnp.dot(xn, p['w1'], precision=_HI) + p['b1']
    h = 0.5 * h * (1.0 + jax.lax.erf(h * (2.0 ** -0.5)))
    return v + (jnp.dot(h, p['w2'], precision=_HI) + p['b2'])


def reference_forward(x, params):
    outs = []
    for lp in params['layers']:
        x1 = _attention_ref(x, lp)
        x1 = _mlp_ref(x1, lp)
        outs.append(x1)
    stacked = jnp.stack([x] + outs, axis=-1)                               # (B, N, D, 5)
    xs = jnp.einsum('ois,bids->bod', params['conv_w'][:, :, 0, :], stacked, precision=_HI)
    xs = xs + params['conv_b'][None, :, None]
    p1 = params['layers'][1]
    return _mlp_ref(_attention_ref(xs, p1), p1)


# --------------------------------------------------------------------------- #
# params / main
# --------------------------------------------------------------------------- #
def init_layer_params(key):
    ks = jax.random.split(key, 8)

    def w(k, shape, scale):
        return jax.random.normal(k, shape, jnp.float32) * scale

    return dict(
        ln1_g=jnp.ones((1, DIM), jnp.float32),
        ln1_b=jnp.zeros((1, DIM), jnp.float32),
        wqkv=w(ks[0], (DIM, 3 * DIM), DIM ** -0.5),   # (in, out) layout
        bqkv=w(ks[1], (1, 3 * DIM), 0.02),
        wo=w(ks[2], (DIM, DIM), DIM ** -0.5),
        bo=w(ks[3], (1, DIM), 0.02),
        ln2_g=jnp.ones((1, DIM), jnp.float32),
        ln2_b=jnp.zeros((1, DIM), jnp.float32),
        w1=w(ks[4], (DIM, MLP_DIM), DIM ** -0.5),
        b1=w(ks[5], (1, MLP_DIM), 0.02),
        w2=w(ks[6], (MLP_DIM, DIM), MLP_DIM ** -0.5),
        b2=w(ks[7], (1, DIM), 0.02),
    )


if __name__ == "__main__":
    key = jax.random.PRNGKey(0)
    kx, kp = jax.random.split(key)
    layer_keys = jax.random.split(kp, DEPTH + 2)

    # TODO(synk): dropout is stochastic in torch training mode; implemented as identity (eval).
    params = dict(
        layers=[init_layer_params(layer_keys[i]) for i in range(DEPTH)],
        conv_w=jax.random.normal(layer_keys[DEPTH], (SEQ, SEQ, 1, SEQ), jnp.float32) * 0.2,
        conv_b=jax.random.normal(layer_keys[DEPTH + 1], (SEQ,), jnp.float32) * 0.02,
    )

    x = jax.random.normal(kx, (2, SEQ, DIM), jnp.float32)   # (B, N, D)

    out = jax.block_until_ready(jax.jit(transformer_forward)(x, params))
    assert out.shape == (2, SEQ, DIM) and out.dtype == jnp.float32
    assert bool(jnp.all(jnp.isfinite(out)))

    ref = jax.block_until_ready(jax.jit(reference_forward)(x, params))
    abs_err = float(jnp.max(jnp.abs(out - ref)))
    rel_rms = float(jnp.sqrt(jnp.mean(jnp.square(out - ref)) / jnp.mean(jnp.square(ref))))
    # bf16 MXU operands (per the perf review) relax the previous f32 bit-level
    # parity; structural bugs would show up as O(1) relative error, far above
    # these thresholds.
    assert rel_rms < 5e-2, f"kernel/reference rel-RMS mismatch: {rel_rms}"
    assert abs_err < 2.5e-1, f"kernel/reference max-abs mismatch: {abs_err}"

    print("KERNEL_OK")
</pallas_src>

<mosaic_0001>
module attributes {stable_mosaic.version = 11 : i64} {
  func.func @_transformer_kernel(%arg0: memref<10x32xf32, #tpu.memory_space<vmem>>, %arg1: memref<32x384xbf16, #tpu.memory_space<vmem>>, %arg2: memref<1x384xf32, #tpu.memory_space<vmem>>, %arg3: memref<128x128xbf16, #tpu.memory_space<vmem>>, %arg4: memref<1x128xf32, #tpu.memory_space<vmem>>, %arg5: memref<128x128xbf16, #tpu.memory_space<vmem>>, %arg6: memref<128x256xbf16, #tpu.memory_space<vmem>>, %arg7: memref<1x256xf32, #tpu.memory_space<vmem>>, %arg8: memref<256x128xbf16, #tpu.memory_space<vmem>>, %arg9: memref<1x128xf32, #tpu.memory_space<vmem>>, %arg10: memref<5x10x10xbf16, #tpu.memory_space<vmem>>, %arg11: memref<10x32xf32, #tpu.memory_space<vmem>>, %arg12: memref<320x10xbf16, #tpu.memory_space<vmem>>, %arg13: memref<320x128xbf16, #tpu.memory_space<vmem>>, %arg14: memref<320x10xf32, #tpu.memory_space<vmem>>, %arg15: memref<10x320xbf16, #tpu.memory_space<vmem>>, %arg16: memref<32x96xbf16, #tpu.memory_space<vmem>>, %arg17: memref<1x96xf32, #tpu.memory_space<vmem>>, %arg18: memref<32x32xbf16, #tpu.memory_space<vmem>>, %arg19: memref<1x32xf32, #tpu.memory_space<vmem>>, %arg20: memref<32x64xbf16, #tpu.memory_space<vmem>>, %arg21: memref<1x64xf32, #tpu.memory_space<vmem>>, %arg22: memref<64x32xbf16, #tpu.memory_space<vmem>>, %arg23: memref<1x32xf32, #tpu.memory_space<vmem>>, %arg24: memref<80x10xbf16, #tpu.memory_space<vmem>>, %arg25: memref<80x32xbf16, #tpu.memory_space<vmem>>, %arg26: memref<80x10xf32, #tpu.memory_space<vmem>>, %arg27: memref<10x80xbf16, #tpu.memory_space<vmem>>, %arg28: memref<10x32xf32, #tpu.memory_space<vmem>>) attributes {dimension_semantics = [], scalar_prefetch = 0 : i64, scratch_operands = 0 : i64, tpu.core_type = #tpu.core_type<tc>} {
    %c0 = arith.constant 0 : index
    %c0_0 = arith.constant 0 : index
    %0 = vector.load %arg0[%c0, %c0_0] : memref<10x32xf32, #tpu.memory_space<vmem>>, vector<10x32xf32>
    %cst = arith.constant dense<0.000000e+00> : vector<10xf32>
    %1 = vector.multi_reduction <add>, %0, %cst [1] : vector<10x32xf32> to vector<10xf32>
    %2 = vector.shape_cast %1 : vector<10xf32> to vector<10x1xf32>
    %cst_1 = arith.constant 3.200000e+01 : f32
    %3 = vector.broadcast %cst_1 : f32 to vector<10x1xf32>
    %4 = arith.divf %2, %3 : vector<10x1xf32>
    %5 = vector.broadcast %4 : vector<10x1xf32> to vector<10x32xf32>
    %6 = arith.subf %0, %5 : vector<10x32xf32>
    %7 = arith.mulf %6, %6 : vector<10x32xf32>
    %cst_2 = arith.constant dense<0.000000e+00> : vector<10xf32>
    %8 = vector.multi_reduction <add>, %7, %cst_2 [1] : vector<10x32xf32> to vector<10xf32>
    %9 = vector.shape_cast %8 : vector<10xf32> to vector<10x1xf32>
    %cst_3 = arith.constant 3.200000e+01 : f32
    %10 = vector.broadcast %cst_3 : f32 to vector<10x1xf32>
    %11 = arith.divf %9, %10 : vector<10x1xf32>
    %12 = vector.broadcast %4 : vector<10x1xf32> to vector<10x32xf32>
    %13 = arith.subf %0, %12 : vector<10x32xf32>
    %cst_4 = arith.constant 9.99999974E-6 : f32
    %14 = vector.broadcast %cst_4 : f32 to vector<10x1xf32>
    %15 = arith.addf %11, %14 : vector<10x1xf32>
    %16 = math.rsqrt %15 : vector<10x1xf32>
    %17 = vector.broadcast %16 : vector<10x1xf32> to vector<10x32xf32>
    %18 = arith.mulf %13, %17 : vector<10x32xf32>
    %c0_5 = arith.constant 0 : index
    %c0_6 = arith.constant 0 : index
    %19 = vector.load %arg1[%c0_5, %c0_6] : memref<32x384xbf16, #tpu.memory_space<vmem>>, vector<32x384xbf16>
    %20 = arith.truncf %18 : vector<10x32xf32> to vector<10x32xbf16>
    %cst_7 = arith.constant dense<0.000000e+00> : vector<10x384xf32>
    %21 = tpu.matmul %20, %19, %cst_7 {dimension_numbers = #tpu.dot_dimension_numbers<[1], [0], [0], [1], [0, 0, 1, 1], [], []>} : vector<10x32xbf16>, vector<32x384xbf16>, vector<10x384xf32> -> vector<10x384xf32>
    %c0_8 = arith.constant 0 : index
    %c0_9 = arith.constant 0 : index
    %22 = vector.load %arg2[%c0_8, %c0_9] : memref<1x384xf32, #tpu.memory_space<vmem>>, vector<1x384xf32>
    %23 = vector.broadcast %22 : vector<1x384xf32> to vector<10x384xf32>
    %24 = arith.addf %21, %23 : vector<10x384xf32>
    %25 = vector.extract_strided_slice %24 {offsets = [0, 0], sizes = [10, 128], strides = [1, 1]} : vector<10x384xf32> to vector<10x128xf32>
    %26 = vector.extract_strided_slice %24 {offsets = [0, 128], sizes = [10, 128], strides = [1, 1]} : vector<10x384xf32> to vector<10x128xf32>
    %27 = vector.extract_strided_slice %24 {offsets = [0, 256], sizes = [10, 128], strides = [1, 1]} : vector<10x384xf32> to vector<10x128xf32>
    %c0_10 = arith.constant 0 : index
    %c0_11 = arith.constant 0 : index
    %28 = vector.load %arg12[%c0_10, %c0_11] : memref<320x10xbf16, #tpu.memory_space<vmem>>, vector<320x10xbf16>
    %c0_12 = arith.constant 0 : index
    %c0_13 = arith.constant 0 : index
    %29 = vector.load %arg13[%c0_12, %c0_13] : memref<320x128xbf16, #tpu.memory_space<vmem>>, vector<320x128xbf16>
    %c0_14 = arith.constant 0 : index
    %c0_15 = arith.constant 0 : index
    %30 = vector.load %arg14[%c0_14, %c0_15] : memref<320x10xf32, #tpu.memory_space<vmem>>, vector<320x10xf32>
    %c0_16 = arith.constant 0 : index
    %c0_17 = arith.constant 0 : index
    %31 = vector.load %arg15[%c0_16, %c0_17] : memref<10x320xbf16, #tpu.memory_space<vmem>>, vector<10x320xbf16>
    %32 = arith.truncf %25 : vector<10x128xf32> to vector<10x128xbf16>
    %33 = arith.truncf %26 : vector<10x128xf32> to vector<10x128xbf16>
    %34 = arith.truncf %27 : vector<10x128xf32> to vector<10x128xbf16>
    %cst_18 = arith.constant dense<0.000000e+00> : vector<320x128xf32>
    %35 = tpu.matmul %28, %32, %cst_18 {dimension_numbers = #tpu.dot_dimension_numbers<[1], [0], [0], [1], [0, 0, 1, 1], [], []>} : vector<320x10xbf16>, vector<10x128xbf16>, vector<320x128xf32> -> vector<320x128xf32>
    %36 = arith.truncf %35 : vector<320x128xf32> to vector<320x128xbf16>
    %37 = arith.mulf %36, %29 : vector<320x128xbf16>
    %cst_19 = arith.constant dense<0.000000e+00> : vector<320x10xf32>
    %38 = tpu.matmul %37, %33, %cst_19 {dimension_numbers = #tpu.dot_dimension_numbers<[1], [1], [0], [0], [0, 0, 1, 0], [], []>} : vector<320x128xbf16>, vector<10x128xbf16>, vector<320x10xf32> -> vector<320x10xf32>
    %39 = arith.addf %38, %30 : vector<320x10xf32>
    %cst_20 = arith.constant dense<0xFF800000> : vector<320xf32>
    %40 = vector.multi_reduction <maximumf>, %39, %cst_20 [1] : vector<320x10xf32> to vector<320xf32>
    %41 = vector.shape_cast %40 : vector<320xf32> to vector<320x1xf32>
    %42 = vector.broadcast %41 : vector<320x1xf32> to vector<320x10xf32>
    %43 = arith.subf %39, %42 : vector<320x10xf32>
    %44 = math.exp %43 : vector<320x10xf32>
    %cst_21 = arith.constant dense<0.000000e+00> : vector<320xf32>
    %45 = vector.multi_reduction <add>, %44, %cst_21 [1] : vector<320x10xf32> to vector<320xf32>
    %46 = vector.shape_cast %45 : vector<320xf32> to vector<320x1xf32>
    %47 = tpu.reciprocal %46 : vector<320x1xf32> -> vector<320x1xf32>
    %48 = vector.broadcast %47 : vector<320x1xf32> to vector<320x10xf32>
    %49 = arith.mulf %44, %48 : vector<320x10xf32>
    %50 = arith.truncf %49 : vector<320x10xf32> to vector<320x10xbf16>
    %cst_22 = arith.constant dense<0.000000e+00> : vector<320x128xf32>
    %51 = tpu.matmul %50, %34, %cst_22 {dimension_numbers = #tpu.dot_dimension_numbers<[1], [0], [0], [1], [0, 0, 1, 1], [], []>} : vector<320x10xbf16>, vector<10x128xbf16>, vector<320x128xf32> -> vector<320x128xf32>
    %52 = arith.truncf %51 : vector<320x128xf32> to vector<320x128xbf16>
    %53 = arith.mulf %52, %29 : vector<320x128xbf16>
    %cst_23 = arith.constant dense<0.000000e+00> : vector<10x128xf32>
    %54 = tpu.matmul %31, %53, %cst_23 {dimension_numbers = #tpu.dot_dimension_numbers<[1], [0], [0], [1], [0, 0, 1, 1], [], []>} : vector<10x320xbf16>, vector<320x128xbf16>, vector<10x128xf32> -> vector<10x128xf32>
    %c0_24 = arith.constant 0 : index
    %c0_25 = arith.constant 0 : index
    %55 = vector.load %arg3[%c0_24, %c0_25] : memref<128x128xbf16, #tpu.memory_space<vmem>>, vector<128x128xbf16>
    %56 = arith.truncf %54 : vector<10x128xf32> to vector<10x128xbf16>
    %cst_26 = arith.constant dense<0.000000e+00> : vector<10x128xf32>
    %57 = tpu.matmul %56, %55, %cst_26 {dimension_numbers = #tpu.dot_dimension_numbers<[1], [0], [0], [1], [0, 0, 1, 1], [], []>} : vector<10x128xbf16>, vector<128x128xbf16>, vector<10x128xf32> -> vector<10x128xf32>
    %c0_27 = arith.constant 0 : index
    %c0_28 = arith.constant 0 : index
    %58 = vector.load %arg4[%c0_27, %c0_28] : memref<1x128xf32, #tpu.memory_space<vmem>>, vector<1x128xf32>
    %59 = vector.broadcast %58 : vector<1x128xf32> to vector<10x128xf32>
    %60 = arith.addf %57, %59 : vector<10x128xf32>
    %61 = tpu.concatenate %0, %0, %0, %0 in 1 : vector<10x32xf32>, vector<10x32xf32>, vector<10x32xf32>, vector<10x32xf32> -> vector<10x128xf32>
    %62 = arith.addf %61, %60 : vector<10x128xf32>
    %63 = arith.truncf %62 : vector<10x128xf32> to vector<10x128xbf16>
    %64 = arith.mulf %62, %62 : vector<10x128xf32>
    %65 = arith.truncf %64 : vector<10x128xf32> to vector<10x128xbf16>
    %c0_29 = arith.constant 0 : index
    %c0_30 = arith.constant 0 : index
    %66 = vector.load %arg5[%c0_29, %c0_30] : memref<128x128xbf16, #tpu.memory_space<vmem>>, vector<128x128xbf16>
    %cst_31 = arith.constant dense<0.000000e+00> : vector<10x128xf32>
    %67 = tpu.matmul %63, %66, %cst_31 {dimension_numbers = #tpu.dot_dimension_numbers<[1], [0], [0], [1], [0, 0, 1, 1], [], []>} : vector<10x128xbf16>, vector<128x128xbf16>, vector<10x128xf32> -> vector<10x128xf32>
    %c0_32 = arith.constant 0 : index
    %c0_33 = arith.constant 0 : index
    %68 = vector.load %arg5[%c0_32, %c0_33] : memref<128x128xbf16, #tpu.memory_space<vmem>>, vector<128x128xbf16>
    %cst_34 = arith.constant dense<0.000000e+00> : vector<10x128xf32>
    %69 = tpu.matmul %65, %68, %cst_34 {dimension_numbers = #tpu.dot_dimension_numbers<[1], [0], [0], [1], [0, 0, 1, 1], [], []>} : vector<10x128xbf16>, vector<128x128xbf16>, vector<10x128xf32> -> vector<10x128xf32>
    %70 = arith.mulf %67, %67 : vector<10x128xf32>
    %71 = arith.subf %69, %70 : vector<10x128xf32>
    %cst_35 = arith.constant 0.000000e+00 : f32
    %72 = vector.broadcast %cst_35 : f32 to vector<10x128xf32>
    %73 = arith.maximumf %71, %72 : vector<10x128xf32>
    %74 = arith.subf %62, %67 : vector<10x128xf32>
    %cst_36 = arith.constant 9.99999974E-6 : f32
    %75 = vector.broadcast %cst_36 : f32 to vector<10x128xf32>
    %76 = arith.addf %73, %75 : vector<10x128xf32>
    %77 = math.rsqrt %76 : vector<10x128xf32>
    %78 = arith.mulf %74, %77 : vector<10x128xf32>
    %c0_37 = arith.constant 0 : index
    %c0_38 = arith.constant 0 : index
    %79 = vector.load %arg6[%c0_37, %c0_38] : memref<128x256xbf16, #tpu.memory_space<vmem>>, vector<128x256xbf16>
    %80 = arith.truncf %78 : vector<10x128xf32> to vector<10x128xbf16>
    %cst_39 = arith.constant dense<0.000000e+00> : vector<10x256xf32>
    %81 = tpu.matmul %80, %79, %cst_39 {dimension_numbers = #tpu.dot_dimension_numbers<[1], [0], [0], [1], [0, 0, 1, 1], [], []>} : vector<10x128xbf16>, vector<128x256xbf16>, vector<10x256xf32> -> vector<10x256xf32>
    %c0_40 = arith.constant 0 : index
    %c0_41 = arith.constant 0 : index
    %82 = vector.load %arg7[%c0_40, %c0_41] : memref<1x256xf32, #tpu.memory_space<vmem>>, vector<1x256xf32>
    %83 = vector.broadcast %82 : vector<1x256xf32> to vector<10x256xf32>
    %84 = arith.addf %81, %83 : vector<10x256xf32>
    %cst_42 = arith.constant 5.000000e-01 : f32
    %85 = vector.broadcast %cst_42 : f32 to vector<10x256xf32>
    %86 = arith.mulf %85, %84 : vector<10x256xf32>
    %cst_43 = arith.constant 0.707106769 : f32
    %87 = vector.broadcast %cst_43 : f32 to vector<10x256xf32>
    %88 = arith.mulf %84, %87 : vector<10x256xf32>
    %89 = math.erf %88 : vector<10x256xf32>
    %cst_44 = arith.constant 1.000000e+00 : f32
    %90 = vector.broadcast %cst_44 : f32 to vector<10x256xf32>
    %91 = arith.addf %90, %89 : vector<10x256xf32>
    %92 = arith.mulf %86, %91 : vector<10x256xf32>
    %c0_45 = arith.constant 0 : index
    %c0_46 = arith.constant 0 : index
    %93 = vector.load %arg8[%c0_45, %c0_46] : memref<256x128xbf16, #tpu.memory_space<vmem>>, vector<256x128xbf16>
    %94 = arith.truncf %92 : vector<10x256xf32> to vector<10x256xbf16>
    %cst_47 = arith.constant dense<0.000000e+00> : vector<10x128xf32>
    %95 = tpu.matmul %94, %93, %cst_47 {dimension_numbers = #tpu.dot_dimension_numbers<[1], [0], [0], [1], [0, 0, 1, 1], [], []>} : vector<10x256xbf16>, vector<256x128xbf16>, vector<10x128xf32> -> vector<10x128xf32>
    %96 = arith.addf %62, %95 : vector<10x128xf32>
    %c0_48 = arith.constant 0 : index
    %c0_49 = arith.constant 0 : index
    %97 = vector.load %arg9[%c0_48, %c0_49] : memref<1x128xf32, #tpu.memory_space<vmem>>, vector<1x128xf32>
    %98 = vector.broadcast %97 : vector<1x128xf32> to vector<10x128xf32>
    %99 = arith.addf %96, %98 : vector<10x128xf32>
    %100 = arith.truncf %0 : vector<10x32xf32> to vector<10x32xbf16>
    %101 = arith.truncf %99 : vector<10x128xf32> to vector<10x128xbf16>
    %c0_50 = arith.constant 0 : index
    %c0_51 = arith.constant 0 : index
    %c0_52 = arith.constant 0 : index
    %102 = vector.load %arg10[%c0_50, %c0_51, %c0_52] : memref<5x10x10xbf16, #tpu.memory_space<vmem>>, vector<1x10x10xbf16>
    %103 = vector.shape_cast %102 : vector<1x10x10xbf16> to vector<10x10xbf16>
    %cst_53 = arith.constant dense<0.000000e+00> : vector<10x32xf32>
    %104 = tpu.matmul %103, %100, %cst_53 {dimension_numbers = #tpu.dot_dimension_numbers<[1], [0], [0], [1], [0, 0, 1, 1], [], []>} : vector<10x10xbf16>, vector<10x32xbf16>, vector<10x32xf32> -> vector<10x32xf32>
    %c1 = arith.constant 1 : index
    %c0_54 = arith.constant 0 : index
    %c0_55 = arith.constant 0 : index
    %105 = vector.load %arg10[%c1, %c0_54, %c0_55] : memref<5x10x10xbf16, #tpu.memory_space<vmem>>, vector<1x10x10xbf16>
    %106 = vector.shape_cast %105 : vector<1x10x10xbf16> to vector<10x10xbf16>
    %107 = vector.extract_strided_slice %101 {offsets = [0, 0], sizes = [10, 32], strides = [1, 1]} : vector<10x128xbf16> to vector<10x32xbf16>
    %cst_56 = arith.constant dense<0.000000e+00> : vector<10x32xf32>
    %108 = tpu.matmul %106, %107, %cst_56 {dimension_numbers = #tpu.dot_dimension_numbers<[1], [0], [0], [1], [0, 0, 1, 1], [], []>} : vector<10x10xbf16>, vector<10x32xbf16>, vector<10x32xf32> -> vector<10x32xf32>
    %c2 = arith.constant 2 : index
    %c0_57 = arith.constant 0 : index
    %c0_58 = arith.constant 0 : index
    %109 = vector.load %arg10[%c2, %c0_57, %c0_58] : memref<5x10x10xbf16, #tpu.memory_space<vmem>>, vector<1x10x10xbf16>
    %110 = vector.shape_cast %109 : vector<1x10x10xbf16> to vector<10x10xbf16>
    %111 = vector.extract_strided_slice %101 {offsets = [0, 32], sizes = [10, 32], strides = [1, 1]} : vector<10x128xbf16> to vector<10x32xbf16>
    %cst_59 = arith.constant dense<0.000000e+00> : vector<10x32xf32>
    %112 = tpu.matmul %110, %111, %cst_59 {dimension_numbers = #tpu.dot_dimension_numbers<[1], [0], [0], [1], [0, 0, 1, 1], [], []>} : vector<10x10xbf16>, vector<10x32xbf16>, vector<10x32xf32> -> vector<10x32xf32>
    %c3 = arith.constant 3 : index
    %c0_60 = arith.constant 0 : index
    %c0_61 = arith.constant 0 : index
    %113 = vector.load %arg10[%c3, %c0_60, %c0_61] : memref<5x10x10xbf16, #tpu.memory_space<vmem>>, vector<1x10x10xbf16>
    %114 = vector.shape_cast %113 : vector<1x10x10xbf16> to vector<10x10xbf16>
    %115 = vector.extract_strided_slice %101 {offsets = [0, 64], sizes = [10, 32], strides = [1, 1]} : vector<10x128xbf16> to vector<10x32xbf16>
    %cst_62 = arith.constant dense<0.000000e+00> : vector<10x32xf32>
    %116 = tpu.matmul %114, %115, %cst_62 {dimension_numbers = #tpu.dot_dimension_numbers<[1], [0], [0], [1], [0, 0, 1, 1], [], []>} : vector<10x10xbf16>, vector<10x32xbf16>, vector<10x32xf32> -> vector<10x32xf32>
    %c4 = arith.constant 4 : index
    %c0_63 = arith.constant 0 : index
    %c0_64 = arith.constant 0 : index
    %117 = vector.load %arg10[%c4, %c0_63, %c0_64] : memref<5x10x10xbf16, #tpu.memory_space<vmem>>, vector<1x10x10xbf16>
    %118 = vector.shape_cast %117 : vector<1x10x10xbf16> to vector<10x10xbf16>
    %119 = vector.extract_strided_slice %101 {offsets = [0, 96], sizes = [10, 32], strides = [1, 1]} : vector<10x128xbf16> to vector<10x32xbf16>
    %cst_65 = arith.constant dense<0.000000e+00> : vector<10x32xf32>
    %120 = tpu.matmul %118, %119, %cst_65 {dimension_numbers = #tpu.dot_dimension_numbers<[1], [0], [0], [1], [0, 0, 1, 1], [], []>} : vector<10x10xbf16>, vector<10x32xbf16>, vector<10x32xf32> -> vector<10x32xf32>
    %121 = arith.addf %104, %108 : vector<10x32xf32>
    %122 = arith.addf %112, %116 : vector<10x32xf32>
    %123 = arith.addf %121, %122 : vector<10x32xf32>
    %c0_66 = arith.constant 0 : index
    %c0_67 = arith.constant 0 : index
    %124 = vector.load %arg11[%c0_66, %c0_67] : memref<10x32xf32, #tpu.memory_space<vmem>>, vector<10x32xf32>
    %125 = arith.addf %120, %124 : vector<10x32xf32>
    %126 = arith.addf %123, %125 : vector<10x32xf32>
    %cst_68 = arith.constant dense<0.000000e+00> : vector<10xf32>
    %127 = vector.multi_reduction <add>, %126, %cst_68 [1] : vector<10x32xf32> to vector<10xf32>
    %128 = vector.shape_cast %127 : vector<10xf32> to vector<10x1xf32>
    %cst_69 = arith.constant 3.200000e+01 : f32
    %129 = vector.broadcast %cst_69 : f32 to vector<10x1xf32>
    %130 = arith.divf %128, %129 : vector<10x1xf32>
    %131 = vector.broadcast %130 : vector<10x1xf32> to vector<10x32xf32>
    %132 = arith.subf %126, %131 : vector<10x32xf32>
    %133 = arith.mulf %132, %132 : vector<10x32xf32>
    %cst_70 = arith.constant dense<0.000000e+00> : vector<10xf32>
    %134 = vector.multi_reduction <add>, %133, %cst_70 [1] : vector<10x32xf32> to vector<10xf32>
    %135 = vector.shape_cast %134 : vector<10xf32> to vector<10x1xf32>
    %cst_71 = arith.constant 3.200000e+01 : f32
    %136 = vector.broadcast %cst_71 : f32 to vector<10x1xf32>
    %137 = arith.divf %135, %136 : vector<10x1xf32>
    %138 = vector.broadcast %130 : vector<10x1xf32> to vector<10x32xf32>
    %139 = arith.subf %126, %138 : vector<10x32xf32>
    %cst_72 = arith.constant 9.99999974E-6 : f32
    %140 = vector.broadcast %cst_72 : f32 to vector<10x1xf32>
    %141 = arith.addf %137, %140 : vector<10x1xf32>
    %142 = math.rsqrt %141 : vector<10x1xf32>
    %143 = vector.broadcast %142 : vector<10x1xf32> to vector<10x32xf32>
    %144 = arith.mulf %139, %143 : vector<10x32xf32>
    %c0_73 = arith.constant 0 : index
    %c0_74 = arith.constant 0 : index
    %145 = vector.load %arg16[%c0_73, %c0_74] : memref<32x96xbf16, #tpu.memory_space<vmem>>, vector<32x96xbf16>
    %146 = arith.truncf %144 : vector<10x32xf32> to vector<10x32xbf16>
    %cst_75 = arith.constant dense<0.000000e+00> : vector<10x96xf32>
    %147 = tpu.matmul %146, %145, %cst_75 {dimension_numbers = #tpu.dot_dimension_numbers<[1], [0], [0], [1], [0, 0, 1, 1], [], []>} : vector<10x32xbf16>, vector<32x96xbf16>, vector<10x96xf32> -> vector<10x96xf32>
    %c0_76 = arith.constant 0 : index
    %c0_77 = arith.constant 0 : index
    %148 = vector.load %arg17[%c0_76, %c0_77] : memref<1x96xf32, #tpu.memory_space<vmem>>, vector<1x96xf32>
    %149 = vector.broadcast %148 : vector<1x96xf32> to vector<10x96xf32>
    %150 = arith.addf %147, %149 : vector<10x96xf32>
    %151 = vector.extract_strided_slice %150 {offsets = [0, 0], sizes = [10, 32], strides = [1, 1]} : vector<10x96xf32> to vector<10x32xf32>
    %152 = vector.extract_strided_slice %150 {offsets = [0, 32], sizes = [10, 32], strides = [1, 1]} : vector<10x96xf32> to vector<10x32xf32>
    %153 = vector.extract_strided_slice %150 {offsets = [0, 64], sizes = [10, 32], strides = [1, 1]} : vector<10x96xf32> to vector<10x32xf32>
    %c0_78 = arith.constant 0 : index
    %c0_79 = arith.constant 0 : index
    %154 = vector.load %arg24[%c0_78, %c0_79] : memref<80x10xbf16, #tpu.memory_space<vmem>>, vector<80x10xbf16>
    %c0_80 = arith.constant 0 : index
    %c0_81 = arith.constant 0 : index
    %155 = vector.load %arg25[%c0_80, %c0_81] : memref<80x32xbf16, #tpu.memory_space<vmem>>, vector<80x32xbf16>
    %c0_82 = arith.constant 0 : index
    %c0_83 = arith.constant 0 : index
    %156 = vector.load %arg26[%c0_82, %c0_83] : memref<80x10xf32, #tpu.memory_space<vmem>>, vector<80x10xf32>
    %c0_84 = arith.constant 0 : index
    %c0_85 = arith.constant 0 : index
    %157 = vector.load %arg27[%c0_84, %c0_85] : memref<10x80xbf16, #tpu.memory_space<vmem>>, vector<10x80xbf16>
    %158 = arith.truncf %151 : vector<10x32xf32> to vector<10x32xbf16>
    %159 = arith.truncf %152 : vector<10x32xf32> to vector<10x32xbf16>
    %160 = arith.truncf %153 : vector<10x32xf32> to vector<10x32xbf16>
    %cst_86 = arith.constant dense<0.000000e+00> : vector<80x32xf32>
    %161 = tpu.matmul %154, %158, %cst_86 {dimension_numbers = #tpu.dot_dimension_numbers<[1], [0], [0], [1], [0, 0, 1, 1], [], []>} : vector<80x10xbf16>, vector<10x32xbf16>, vector<80x32xf32> -> vector<80x32xf32>
    %162 = arith.truncf %161 : vector<80x32xf32> to vector<80x32xbf16>
    %163 = arith.mulf %162, %155 : vector<80x32xbf16>
    %cst_87 = arith.constant dense<0.000000e+00> : vector<80x10xf32>
    %164 = tpu.matmul %163, %159, %cst_87 {dimension_numbers = #tpu.dot_dimension_numbers<[1], [1], [0], [0], [0, 0, 1, 0], [], []>} : vector<80x32xbf16>, vector<10x32xbf16>, vector<80x10xf32> -> vector<80x10xf32>
    %165 = arith.addf %164, %156 : vector<80x10xf32>
    %cst_88 = arith.constant dense<0xFF800000> : vector<80xf32>
    %166 = vector.multi_reduction <maximumf>, %165, %cst_88 [1] : vector<80x10xf32> to vector<80xf32>
    %167 = vector.shape_cast %166 : vector<80xf32> to vector<80x1xf32>
    %168 = vector.broadcast %167 : vector<80x1xf32> to vector<80x10xf32>
    %169 = arith.subf %165, %168 : vector<80x10xf32>
    %170 = math.exp %169 : vector<80x10xf32>
    %cst_89 = arith.constant dense<0.000000e+00> : vector<80xf32>
    %171 = vector.multi_reduction <add>, %170, %cst_89 [1] : vector<80x10xf32> to vector<80xf32>
    %172 = vector.shape_cast %171 : vector<80xf32> to vector<80x1xf32>
    %173 = tpu.reciprocal %172 : vector<80x1xf32> -> vector<80x1xf32>
    %174 = vector.broadcast %173 : vector<80x1xf32> to vector<80x10xf32>
    %175 = arith.mulf %170, %174 : vector<80x10xf32>
    %176 = arith.truncf %175 : vector<80x10xf32> to vector<80x10xbf16>
    %cst_90 = arith.constant dense<0.000000e+00> : vector<80x32xf32>
    %177 = tpu.matmul %176, %160, %cst_90 {dimension_numbers = #tpu.dot_dimension_numbers<[1], [0], [0], [1], [0, 0, 1, 1], [], []>} : vector<80x10xbf16>, vector<10x32xbf16>, vector<80x32xf32> -> vector<80x32xf32>
    %178 = arith.truncf %177 : vector<80x32xf32> to vector<80x32xbf16>
    %179 = arith.mulf %178, %155 : vector<80x32xbf16>
    %cst_91 = arith.constant dense<0.000000e+00> : vector<10x32xf32>
    %180 = tpu.matmul %157, %179, %cst_91 {dimension_numbers = #tpu.dot_dimension_numbers<[1], [0], [0], [1], [0, 0, 1, 1], [], []>} : vector<10x80xbf16>, vector<80x32xbf16>, vector<10x32xf32> -> vector<10x32xf32>
    %c0_92 = arith.constant 0 : index
    %c0_93 = arith.constant 0 : index
    %181 = vector.load %arg18[%c0_92, %c0_93] : memref<32x32xbf16, #tpu.memory_space<vmem>>, vector<32x32xbf16>
    %182 = arith.truncf %180 : vector<10x32xf32> to vector<10x32xbf16>
    %cst_94 = arith.constant dense<0.000000e+00> : vector<10x32xf32>
    %183 = tpu.matmul %182, %181, %cst_94 {dimension_numbers = #tpu.dot_dimension_numbers<[1], [0], [0], [1], [0, 0, 1, 1], [], []>} : vector<10x32xbf16>, vector<32x32xbf16>, vector<10x32xf32> -> vector<10x32xf32>
    %184 = arith.addf %126, %183 : vector<10x32xf32>
    %c0_95 = arith.constant 0 : index
    %c0_96 = arith.constant 0 : index
    %185 = vector.load %arg19[%c0_95, %c0_96] : memref<1x32xf32, #tpu.memory_space<vmem>>, vector<1x32xf32>
    %186 = vector.broadcast %185 : vector<1x32xf32> to vector<10x32xf32>
    %187 = arith.addf %184, %186 : vector<10x32xf32>
    %cst_97 = arith.constant dense<0.000000e+00> : vector<10xf32>
    %188 = vector.multi_reduction <add>, %187, %cst_97 [1] : vector<10x32xf32> to vector<10xf32>
    %189 = vector.shape_cast %188 : vector<10xf32> to vector<10x1xf32>
    %cst_98 = arith.constant 3.200000e+01 : f32
    %190 = vector.broadcast %cst_98 : f32 to vector<10x1xf32>
    %191 = arith.divf %189, %190 : vector<10x1xf32>
    %192 = vector.broadcast %191 : vector<10x1xf32> to vector<10x32xf32>
    %193 = arith.subf %187, %192 : vector<10x32xf32>
    %194 = arith.mulf %193, %193 : vector<10x32xf32>
    %cst_99 = arith.constant dense<0.000000e+00> : vector<10xf32>
    %195 = vector.multi_reduction <add>, %194, %cst_99 [1] : vector<10x32xf32> to vector<10xf32>
    %196 = vector.shape_cast %195 : vector<10xf32> to vector<10x1xf32>
    %cst_100 = arith.constant 3.200000e+01 : f32
    %197 = vector.broadcast %cst_100 : f32 to vector<10x1xf32>
    %198 = arith.divf %196, %197 : vector<10x1xf32>
    %199 = vector.broadcast %191 : vector<10x1xf32> to vector<10x32xf32>
    %200 = arith.subf %187, %199 : vector<10x32xf32>
    %cst_101 = arith.constant 9.99999974E-6 : f32
    %201 = vector.broadcast %cst_101 : f32 to vector<10x1xf32>
    %202 = arith.addf %198, %201 : vector<10x1xf32>
    %203 = math.rsqrt %202 : vector<10x1xf32>
    %204 = vector.broadcast %203 : vector<10x1xf32> to vector<10x32xf32>
    %205 = arith.mulf %200, %204 : vector<10x32xf32>
    %c0_102 = arith.constant 0 : index
    %c0_103 = arith.constant 0 : index
    %206 = vector.load %arg20[%c0_102, %c0_103] : memref<32x64xbf16, #tpu.memory_space<vmem>>, vector<32x64xbf16>
    %207 = arith.truncf %205 : vector<10x32xf32> to vector<10x32xbf16>
    %cst_104 = arith.constant dense<0.000000e+00> : vector<10x64xf32>
    %208 = tpu.matmul %207, %206, %cst_104 {dimension_numbers = #tpu.dot_dimension_numbers<[1], [0], [0], [1], [0, 0, 1, 1], [], []>} : vector<10x32xbf16>, vector<32x64xbf16>, vector<10x64xf32> -> vector<10x64xf32>
    %c0_105 = arith.constant 0 : index
    %c0_106 = arith.constant 0 : index
    %209 = vector.load %arg21[%c0_105, %c0_106] : memref<1x64xf32, #tpu.memory_space<vmem>>, vector<1x64xf32>
    %210 = vector.broadcast %209 : vector<1x64xf32> to vector<10x64xf32>
    %211 = arith.addf %208, %210 : vector<10x64xf32>
    %cst_107 = arith.constant 5.000000e-01 : f32
    %212 = vector.broadcast %cst_107 : f32 to vector<10x64xf32>
    %213 = arith.mulf %212, %211 : vector<10x64xf32>
    %cst_108 = arith.constant 0.707106769 : f32
    %214 = vector.broadcast %cst_108 : f32 to vector<10x64xf32>
    %215 = arith.mulf %211, %214 : vector<10x64xf32>
    %216 = math.erf %215 : vector<10x64xf32>
    %cst_109 = arith.constant 1.000000e+00 : f32
    %217 = vector.broadcast %cst_109 : f32 to vector<10x64xf32>
    %218 = arith.addf %217, %216 : vector<10x64xf32>
    %219 = arith.mulf %213, %218 : vector<10x64xf32>
    %c0_110 = arith.constant 0 : index
    %c0_111 = arith.constant 0 : index
    %220 = vector.load %arg22[%c0_110, %c0_111] : memref<64x32xbf16, #tpu.memory_space<vmem>>, vector<64x32xbf16>
    %221 = arith.truncf %219 : vector<10x64xf32> to vector<10x64xbf16>
    %cst_112 = arith.constant dense<0.000000e+00> : vector<10x32xf32>
    %222 = tpu.matmul %221, %220, %cst_112 {dimension_numbers = #tpu.dot_dimension_numbers<[1], [0], [0], [1], [0, 0, 1, 1], [], []>} : vector<10x64xbf16>, vector<64x32xbf16>, vector<10x32xf32> -> vector<10x32xf32>
    %223 = arith.addf %187, %222 : vector<10x32xf32>
    %c0_113 = arith.constant 0 : index
    %c0_114 = arith.constant 0 : index
    %224 = vector.load %arg23[%c0_113, %c0_114] : memref<1x32xf32, #tpu.memory_space<vmem>>, vector<1x32xf32>
    %225 = vector.broadcast %224 : vector<1x32xf32> to vector<10x32xf32>
    %226 = arith.addf %223, %225 : vector<10x32xf32>
    %c0_115 = arith.constant 0 : index
    %c0_116 = arith.constant 0 : index
    %227 = vector.load %arg28[%c0_115, %c0_116] : memref<10x32xf32, #tpu.memory_space<vmem>>, vector<10x32xf32>
    tpu.vector_store %arg28[%c0_115, %c0_116], %226 {strides = array<i32>} : memref<10x32xf32, #tpu.memory_space<vmem>>, vector<10x32xf32>,
    return
  }
}

</mosaic_0001>

<bundles_post_ra>
// kernel: tile.8
= control target key start
LH: loop header
LB: loop body
LE: loop exit
PB: predicated region body
PF: predicated region fallthrough
CT: control target
= control target key end

     0   :  { %s22_s0 = inlined_call_operand.vmem [shape: f32[5], index: 0, kind: input, shape index: {}]   ;;  %s23_s1 = inlined_call_operand.vmem [shape: f32[2,5], index: 1, kind: output, shape index: {}]  }
   0x1   :  { %v4_v0 = vld [vmem:[%s22_s0] ss:$0 sm:$0xff] }
   0x2   :  { %5 = vst [vmem:[%s23_s1] sm:$0x3] %v4_v0 }

// kernel: transformer_forward.1
= control target key start
LH: loop header
LB: loop body
LE: loop exit
PB: predicated region body
PF: predicated region fallthrough
CT: control target
= control target key end

     0   :  { %vm92_vm0 = vcmask 261120   ;;  %vm96_vm1 = vcmask 254976   ;;  %v4982_v15 = vmov 0   ;;  %v4983_v19 = vmov 0.0   ;;  %s4987_s30 = smov 96   ;;  %s6540_s0 = inlined_call_operand.vmem [shape: f32[10,32], index: 0, kind: input, shape index: {}]   ;;  %s6541_s1 = inlined_call_operand.vmem [shape: bf16[32,384], index: 1, kind: input, shape index: {}]   ;;  %s6542_s12 = inlined_call_operand.vmem [shape: bf16[320,10], index: 12, kind: input, shape index: {}]   ;;  %s6543_s2 = inlined_call_operand.vmem [shape: f32[1,384], index: 2, kind: input, shape index: {}]   ;;  %s6544_s13 = inlined_call_operand.vmem [shape: bf16[320,128], index: 13, kind: input, shape index: {}]   ;;  %s6545_s14 = inlined_call_operand.vmem [shape: f32[320,10], index: 14, kind: input, shape index: {}]   ;;  %s6546_s15 = inlined_call_operand.vmem [shape: bf16[10,320], index: 15, kind: input, shape index: {}]   ;;  %s6547_s3 = inlined_call_operand.vmem [shape: bf16[128,128], index: 3, kind: input, shape index: {}]   ;;  %s6548_s5 = inlined_call_operand.vmem [shape: bf16[128,128], index: 5, kind: input, shape index: {}]   ;;  %s6549_s6 = inlined_call_operand.vmem [shape: bf16[128,256], index: 6, kind: input, shape index: {}]   ;;  %s6550_s4 = inlined_call_operand.vmem [shape: f32[1,128], index: 4, kind: input, shape index: {}]   ;;  %s6551_s8 = inlined_call_operand.vmem [shape: bf16[256,128], index: 8, kind: input, shape index: {}]   ;;  %s6552_s7 = inlined_call_operand.vmem [shape: f32[1,256], index: 7, kind: input, shape index: {}]   ;;  %s6553_s10 = inlined_call_operand.vmem [shape: bf16[5,10,10], index: 10, kind: input, shape index: {}]   ;;  %s6554_s9 = inlined_call_operand.vmem [shape: f32[1,128], index: 9, kind: input, shape index: {}]   ;;  %s6555_s11 = inlined_call_operand.vmem [shape: f32[10,32], index: 11, kind: input, shape index: {}]   ;;  %s6556_s16 = inlined_call_operand.vmem [shape: bf16[32,96], index: 16, kind: input, shape index: {}]   ;;  %s6557_s24 = inlined_call_operand.vmem [shape: bf16[80,10], index: 24, kind: input, shape index: {}]   ;;  %s6558_s17 = inlined_call_operand.vmem [shape: f32[1,96], index: 17, kind: input, shape index: {}]   ;;  %s6559_s25 = inlined_call_operand.vmem [shape: bf16[80,32], index: 25, kind: input, shape index: {}]   ;;  %s6560_s26 = inlined_call_operand.vmem [shape: f32[80,10], index: 26, kind: input, shape index: {}]   ;;  %s6561_s27 = inlined_call_operand.vmem [shape: bf16[10,80], index: 27, kind: input, shape index: {}]   ;;  %s6562_s18 = inlined_call_operand.vmem [shape: bf16[32,32], index: 18, kind: input, shape index: {}]   ;;  %s6563_s19 = inlined_call_operand.vmem [shape: f32[1,32], index: 19, kind: input, shape index: {}]   ;;  %s6564_s20 = inlined_call_operand.vmem [shape: bf16[32,64], index: 20, kind: input, shape index: {}]   ;;  %s6565_s22 = inlined_call_operand.vmem [shape: bf16[64,32], index: 22, kind: input, shape index: {}]   ;;  %s6566_s21 = inlined_call_operand.vmem [shape: f32[1,64], index: 21, kind: input, shape index: {}]   ;;  %s6567_s23 = inlined_call_operand.vmem [shape: f32[1,32], index: 23, kind: input, shape index: {}]   ;;  %s6568_s28 = inlined_call_operand.vmem [shape: f32[10,32], index: 28, kind: output, shape index: {}]  }
   0x1   :  { %6579 = sst [smem:[#allocation2_spill]] %s6540_s0  ;;  %214 = vmatprep.mubr.bf16.mxu1 %v4982_v15  ;;  %vm4984_vm2 = vmmov 0   ;;  %vm493_vm3 = vcmask 80896   ;;  %v132_v34 = vlaneseq  ;;  %vm554_vm4 = vcmask 1044480  }
   0x2   :  { %6580 = sst [smem:[#allocation3_spill]] %s6541_s1  ;;  %vm1875_vm5 = vcmask 523264   ;;  %vm2098_vm6 = vcmask 785408   ;;  %vm3510_vm7 = vcmask 654336  }
   0x3   :  { %6581 = sst [smem:[#allocation4_spill]] %s6542_s12  ;;  %s6593_s0 = sld [smem:[#allocation3_spill]]  ;;  %v5172_v35 = vshrl.u32 %v132_v34, 7 }
   0x4   :  { %6582 = sst [smem:[#allocation5_spill]] %s6543_s2 }
   0x5   :  { %6583 = sst [smem:[#allocation6_spill]] %s6544_s13  ;;  %v134_v36 = vsub.s32 0, %v5172_v35  ;;  %s6595_s29 = sld [smem:[#allocation5_spill]]  ;;  %v138_v38 = vsub.s32 1, %v5172_v35  ;;  %v142_v47 = vsub.s32 2, %v5172_v35 }
   0x6   :  { %6584 = sst [smem:[#allocation7_spill]] %s6545_s14  ;;  %s6592_s14 = sld [smem:[#allocation2_spill]] }
   0x7   :  { %6585 = sst [smem:[#allocation8_spill]] %s6546_s15  ;;  %s6594_s15 = sld [smem:[#allocation4_spill]] }
   0x8   :  { %6586 = sst [smem:[#allocation9_spill]] %s6547_s3  ;;  %s6596_s12 = sld [smem:[#allocation6_spill]] }
   0x9   :  { %6587 = sst [smem:[#allocation10_spill]] %s6548_s5  ;;  %v4598_v14 = vld [vmem:[%s6593_s0 + $0x4] ss:$12 sps:$4 sm:$0xff]   ;;  %v4600_v16 = vld [vmem:[%s6593_s0] ss:$12 sps:$4 sm:$0xff]   ;;  %s6597_s5 = sld [smem:[#allocation7_spill]] }
   0xa   :  { %6588 = sst [smem:[#allocation11_spill]] %s6549_s6  ;;  %182 = vmatprep.subr.bf16.mxu1 %v4598_v14  ;;  %v4601_v17 = vld [vmem:[%s6593_s0 + $0x1c] ss:$12 sps:$4 sm:$0xff]   ;;  %v4603_v18 = vld [vmem:[%s6593_s0 + $0x18] ss:$12 sps:$4 sm:$0xff]   ;;  %s4986_s13 = smov 64  }
   0xb   :  { %6589 = sst [smem:[#allocation12_spill]] %s6550_s4  ;;  %183 = vmatpush1.bf16.msra.mxu1 %v4600_v16  ;;  %v4604_v30 = vld [vmem:[%s6593_s0 + $0x8] ss:$12 sps:$4 sm:$0xff]   ;;  %v4605_v32 = vld [vmem:[%s6593_s0 + $0x20] ss:$12 sps:$4 sm:$0xff]   ;;  %s6598_s0 = sld [smem:[#allocation8_spill]] }
   0xc   :  { %6590 = sst [smem:[#allocation13_spill]] %s6551_s8  ;;  %v90_v0 = vld [vmem:[%s6592_s14] sm:$0xff]  ;;  %v91_v1 = vld [vmem:[%s6592_s14 + $0x8] sm:$0x3]  ;;  %184 = vmatprep.subr.bf16.mxu1 %v4601_v17  ;;  %s6601_s8 = sld [smem:[#allocation11_spill]] }
   0xd   :  { %6591 = sst [smem:[#allocation14_spill]] %s6552_s7  ;;  %v93_v2 = vsel %vm92_vm0, %v90_v0, 0.0  ;;  %v97_v3 = vsel %vm96_vm1, %v91_v1, 0.0  ;;  %v4606_v33 = vld [vmem:[%s6594_s15] sm:$0xff]   ;;  %v4607_v54 = vld [vmem:[%s6594_s15 + $0x8] sm:$0xff]   ;;  %v4608_v56 = vld [vmem:[%s6594_s15 + $0x10] sm:$0xff]  }
   0xe   :  { %94 = vadd.xlane.f32.xlu0 %v93_v2  ;;  %4230 = vmatprep.mubr.msk.bf16.mxu0 %vm493_vm3, %v4606_v33  ;;  %v130_v37 = vld [vmem:[%s6595_s29] sm:$0x7]  ;;  %v4611_v2 = vld [vmem:[%s6594_s15 + $0x28] sm:$0xff]   ;;  %v4624_v16 = vld [vmem:[%s6594_s15 + $0x90] sm:$0xff]   ;;  %s6604_s29 = sld [smem:[#allocation14_spill]] }
   0xf   :  { %185 = vmatpush1.bf16.msra.mxu1 %v4603_v18  ;;  %v135_v39 = vrot.slane %v130_v37, %v134_v36  ;;  %v139_v41 = vrot.slane %v130_v37, %v138_v38  ;;  %v143_v52 = vrot.slane %v130_v37, %v142_v47  ;;  %v4623_v14 = vld [vmem:[%s6594_s15 + $0x88] sm:$0xff]   ;;  %v4625_v17 = vld [vmem:[%s6594_s15 + $0x98] sm:$0xff]  }
  0x10   :  { %4220 = vmatprep.subr.bf16.mxu1 %v4983_v19  ;;  %v4628_v34 = vld [vmem:[%s6596_s12 + $0x18] sm:$0xff]   ;;  %v4630_v47 = vld [vmem:[%s6596_s12 + $0x28] sm:$0xff]  }
  0x12   :  { %98 = vadd.xlane.f32.xlu0 %v97_v3  ;;  %v4612_v3 = vld [vmem:[%s6594_s15 + $0x30] sm:$0xff]  }
  0x9b   :  { %v95_v4 = vpop.xlane.xlu0 %94 }
  0x9c   :  { %v101_v5 = vmul.f32 0.03125, %v95_v4  ;;  %v4613_v4 = vld [vmem:[%s6594_s15 + $0x38] sm:$0xff]  }
  0x9e   :  { %v103_v6 = vsub.f32 %v90_v0, %v101_v5  ;;  %v4609_v0 = vld [vmem:[%s6594_s15 + $0x18] sm:$0xff]   ;;  %v4614_v5 = vld [vmem:[%s6594_s15 + $0x40] sm:$0xff]  }
  0x9f   :  { %v99_v7 = vpop.xlane.xlu0 %98 }
  0xa0   :  { %v102_v8 = vmul.f32 0.03125, %v99_v7  ;;  %v105_v9 = vmul.f32 %v103_v6, %v103_v6  ;;  %v4616_v7 = vld [vmem:[%s6594_s15 + $0x50] sm:$0xff]  }
  0xa2   :  { %v104_v10 = vsub.f32 %v91_v1, %v102_v8  ;;  %v107_v11 = vsel %vm92_vm0, %v105_v9, 0.0  ;;  %v4610_v1 = vld [vmem:[%s6594_s15 + $0x20] sm:$0xff]   ;;  %v4617_v8 = vld [vmem:[%s6594_s15 + $0x58] sm:$0xff]  }
  0xa3   :  { %108 = vadd.xlane.f32.xlu1 %v107_v11  ;;  %v4618_v9 = vld [vmem:[%s6594_s15 + $0x60] sm:$0xff]   ;;  %v4620_v11 = vld [vmem:[%s6594_s15 + $0x70] sm:$0xff]  }
  0xa4   :  { %v106_v12 = vmul.f32 %v104_v10, %v104_v10 }
  0xa6   :  { %v110_v13 = vsel %vm96_vm1, %v106_v12, 0.0  ;;  %v4621_v12 = vld [vmem:[%s6594_s15 + $0x78] sm:$0xff]  }
  0xa7   :  { %111 = vadd.xlane.f32.xlu1 %v110_v13  ;;  %v4622_v13 = vld [vmem:[%s6594_s15 + $0x80] sm:$0xff]  }
 0x130   :  { %v109_v20 = vpop.xlane.xlu1 %108 }
 0x131   :  { %v113_v21 = vmul.f32 0.03125, %v109_v20 }
 0x133   :  { %v115_v22 = vadd.f32 1e-05, %v113_v21 }
 0x134   :  { %v112_v23 = vpop.xlane.xlu1 %111 }
 0x135   :  { %v114_v24 = vmul.f32 0.03125, %v112_v23  ;;  %4732 = vrsqrt.f32 %v115_v22  ;;  %v4627_v22 = vld [vmem:[%s6596_s12] sm:$0xff]  }
 0x137   :  { %v116_v25 = vadd.f32 1e-05, %v114_v24  ;;  %v4626_v24 = vld [vmem:[%s6596_s12 + $0x8] sm:$0xff]  }
 0x139   :  { %4734 = vrsqrt.f32 %v116_v25 }
 0x13f   :  { %v4733_v26 = vpop.eup %4732 }
 0x140   :  { %v119_v28 = vmul.f32 %v4733_v26, %v103_v6  ;;  %v4615_v6 = vld [vmem:[%s6594_s15 + $0x48] sm:$0xff]  }
 0x143   :  { %v4735_v27 = vpop.eup %4734 }
 0x144   :  { %v120_v29 = vmul.f32 %v4735_v27, %v104_v10  ;;  %v4619_v10 = vld [vmem:[%s6594_s15 + $0x68] sm:$0xff]   ;;  %s6600_s15 = sld [smem:[#allocation10_spill]] }
 0x146   :  { %v129_v31 = vpack.c.bf16 %v120_v29, %v119_v28 }
 0x148   :  { %3831 = vmatmul.mubr.msk.bf16.vlgmr.msra.gmra.mrb[0].mxu1 %vm92_vm0, %v129_v31 }
 0x149   :  { %4221 = vmatpush3.bf16.msra.mxu1 %v4604_v30  ;;  %4224 = vmatprep.mubr.msk.bf16.mxu1 %vm4984_vm2, %v4983_v19 }
 0x14a   :  { %4222 = vmatprep.subr.bf16.mxu1 %v4983_v19 }
 0x14d   :  { %4223 = vmatpush3.bf16.msra.mxu1 %v4605_v32  ;;  %v4629_v32 = vld [vmem:[%s6596_s12 + $0x10] sm:$0xff]  }
 0x150   :  { %4225 = vmatmul.mubr.msk.bf16.vlgmr.msra.gmra.mrb[4].mxu1 %vm92_vm0, %v129_v31 }
 0x21b   :  { %v216_v40 = vpop.f32.mrb[0].mxu1 }
 0x21c   :  { %v218_v42 = vpop.f32.mrb[1].mxu1  ;;  %v217_v44 = vadd.f32 %v216_v40, %v135_v39 }
 0x21d   :  { %v220_v43 = vpop.f32.mrb[2].mxu1  ;;  %v219_v48 = vadd.f32 %v218_v42, %v139_v41 }
 0x21e   :  { %v221_v45 = vadd.f32 %v220_v43, %v135_v39  ;;  %v222_v46 = vpop.f32.mrb[3].mxu1 }
 0x21f   :  { %v223_v49 = vadd.f32 %v222_v46, %v139_v41 }
 0x220   :  { %v390_v50 = vpack.c.bf16 %v221_v45, %v217_v44  ;;  %v4631_v45 = vld [vmem:[%s6596_s12 + $0x20] sm:$0xff]  }
 0x221   :  { %v391_v51 = vpack.c.bf16 %v223_v49, %v219_v48 }
 0x222   :  { %4590 = vmatprep.subr.msk.bf16.mxu0 %vm554_vm4, %v390_v50  ;;  %v556_v53 = vsel %vm554_vm4, %v390_v50, 0 }
 0x223   :  { %v259_v55 = vpop.f32.mrb[4].mxu1  ;;  %4229 = vmatpush3.bf16.msra.mxu0 %v556_v53  ;;  %4270 = vmatprep.subr.bf16.mxu1 %v391_v51 }
 0x224   :  { %v4226_v57 = vpop.f32.mrb[5].mxu1  ;;  %4271 = vmatpush3.bf16.xpose.msra.mxu1 %v391_v51  ;;  %v260_v59 = vadd.f32 %v259_v55, %v143_v52  ;;  %v4633_v55 = vld [vmem:[%s6596_s12 + $0x30] sm:$0xff]  }
 0x225   :  { %v262_v58 = vpop.f32.mrb[6].mxu1  ;;  %v4632_v57 = vld [vmem:[%s6596_s12 + $0x38] sm:$0xff]  }
 0x226   :  { %v263_v60 = vadd.f32 %v262_v58, %v143_v52  ;;  %v4227_v61 = vpop.f32.mrb[7].mxu1  ;;  %4231 = vmatmul.mubr.msk.bf16.vlgmr.msra.gmra.mrb[0].mxu0 %vm493_vm3, %v4607_v54 }
 0x227   :  { %4234 = vmatprep.mubr.msk.bf16.mxu0 %vm493_vm3, %v4608_v56 }
 0x228   :  { %v392_v62 = vpack.c.bf16 %v263_v60, %v260_v59 }
 0x22a   :  { %4591 = vmatprep.subr.msk.bf16.mxu0 %vm554_vm4, %v392_v62  ;;  %v1625_v63 = vsel %vm554_vm4, %v392_v62, 0 }
 0x22b   :  { %4313 = vmatpush3.bf16.msra.mxu0 %v1625_v63 }
 0x22c   :  { %4386 = vmatprep.subr.bf16.mxu0 %v4983_v19 }
 0x22e   :  { %4235 = vmatmul.mubr.msk.bf16.gmra.mrb[4].mxu0 %vm493_vm3, %v4609_v0 }
 0x22f   :  { %4238 = vmatprep.mubr.msk.bf16.mxu0 %vm493_vm3, %v4610_v1  ;;  %v4635_v1 = vld [vmem:[%s6596_s12 + $0x40] sm:$0xff]  }
 0x236   :  { %4239 = vmatmul.mubr.msk.bf16.gmra.mrb[8].mxu0 %vm493_vm3, %v4611_v2 }
 0x237   :  { %4242 = vmatprep.mubr.msk.bf16.mxu0 %vm493_vm3, %v4612_v3  ;;  %v4634_v3 = vld [vmem:[%s6596_s12 + $0x48] sm:$0xff]  }
 0x23e   :  { %4243 = vmatmul.mubr.msk.bf16.gmra.mrb[12].mxu0 %vm493_vm3, %v4613_v4 }
 0x23f   :  { %4246 = vmatprep.mubr.msk.bf16.mxu0 %vm493_vm3, %v4614_v5 }
 0x246   :  { %4247 = vmatmul.mubr.msk.bf16.gmra.mrb[16].mxu0 %vm493_vm3, %v4615_v6 }
 0x247   :  { %4250 = vmatprep.mubr.msk.bf16.mxu0 %vm493_vm3, %v4616_v7 }
 0x24e   :  { %4251 = vmatmul.mubr.msk.bf16.gmra.mrb[20].mxu0 %vm493_vm3, %v4617_v8 }
 0x24f   :  { %4254 = vmatprep.mubr.msk.bf16.mxu0 %vm493_vm3, %v4618_v9 }
 0x256   :  { %4255 = vmatmul.mubr.msk.bf16.gmra.mrb[24].mxu0 %vm493_vm3, %v4619_v10 }
 0x257   :  { %4258 = vmatprep.mubr.msk.bf16.mxu0 %vm493_vm3, %v4620_v11  ;;  %v4637_v11 = vld [vmem:[%s6596_s12 + $0x50] sm:$0xff]  }
 0x25e   :  { %4259 = vmatmul.mubr.msk.bf16.gmra.mrb[28].mxu0 %vm493_vm3, %v4621_v12 }
 0x25f   :  { %4262 = vmatprep.mubr.msk.bf16.mxu0 %vm493_vm3, %v4622_v13  ;;  %v4636_v13 = vld [vmem:[%s6596_s12 + $0x58] sm:$0xff]  }
 0x266   :  { %4263 = vmatmul.mubr.msk.bf16.gmra.mrb[32].mxu0 %vm493_vm3, %v4623_v14 }
 0x267   :  { %4266 = vmatprep.mubr.msk.bf16.mxu0 %vm493_vm3, %v4624_v16 }
 0x26e   :  { %4267 = vmatmul.mubr.msk.bf16.gmra.mrb[36].mxu0 %vm493_vm3, %v4625_v17 }
 0x2f9   :  { %v4232_v18 = vpop.f32.mrb[0].mxu0 }
 0x2fa   :  { %v592_v20 = vpop.f32.mrb[1].mxu0 }
 0x2fb   :  { %v4233_v21 = vpop.f32.mrb[2].mxu0 }
 0x2fc   :  { %v752_v23 = vpack.c.bf16 %v4233_v21, %v4232_v18  ;;  %v595_v25 = vpop.f32.mrb[3].mxu0 }
 0x2fd   :  { %v751_v26 = vpack.c.bf16 %v595_v25, %v592_v20  ;;  %v4638_v25 = vld [vmem:[%s6596_s12 + $0x68] sm:$0xff]  }
 0x2fe   :  { %v892_v28 = vmul.bf16 %v4626_v24, %v752_v23  ;;  %v4639_v23 = vld [vmem:[%s6596_s12 + $0x60] sm:$0xff]  }
 0x2ff   :  { %v891_v27 = vmul.bf16 %v4627_v22, %v751_v26 }
 0x301   :  { %v4236_v29 = vpop.f32.mrb[4].mxu0  ;;  %4272 = vmatprep.mubr.bf16.mxu1 %v891_v27 }
 0x302   :  { %v608_v30 = vpop.f32.mrb[5].mxu0  ;;  %4273 = vmatmul.mubr.bf16.vlgmr.msra.gmra.mrb[8].mxu1 %v892_v28 }
 0x303   :  { %v4237_v31 = vpop.f32.mrb[6].mxu0 }
 0x304   :  { %v754_v33 = vpack.c.bf16 %v4237_v31, %v4236_v29  ;;  %v611_v37 = vpop.f32.mrb[7].mxu0 }
 0x305   :  { %v753_v39 = vpack.c.bf16 %v611_v37, %v608_v30  ;;  %v4640_v37 = vld [vmem:[%s6596_s12 + $0x78] sm:$0xff]  }
 0x306   :  { %v894_v41 = vmul.bf16 %v4628_v34, %v754_v33  ;;  %v4641_v33 = vld [vmem:[%s6596_s12 + $0x70] sm:$0xff]  }
 0x307   :  { %v893_v40 = vmul.bf16 %v4629_v32, %v753_v39 }
 0x309   :  { %v4240_v42 = vpop.f32.mrb[8].mxu0  ;;  %4276 = vmatprep.mubr.bf16.mxu1 %v893_v40 }
 0x30a   :  { %v624_v43 = vpop.f32.mrb[9].mxu0  ;;  %4277 = vmatmul.mubr.bf16.gmra.mrb[12].mxu1 %v894_v41 }
 0x30b   :  { %v4241_v44 = vpop.f32.mrb[10].mxu0 }
 0x30c   :  { %v756_v46 = vpack.c.bf16 %v4241_v44, %v4240_v42  ;;  %v627_v48 = vpop.f32.mrb[11].mxu0 }
 0x30d   :  { %v755_v49 = vpack.c.bf16 %v627_v48, %v624_v43  ;;  %v4642_v48 = vld [vmem:[%s6596_s12 + $0x88] sm:$0xff]  }
 0x30e   :  { %v896_v51 = vmul.bf16 %v4630_v47, %v756_v46  ;;  %v4643_v46 = vld [vmem:[%s6596_s12 + $0x80] sm:$0xff]  }
 0x30f   :  { %v895_v50 = vmul.bf16 %v4631_v45, %v755_v49 }
 0x311   :  { %v4244_v52 = vpop.f32.mrb[12].mxu0  ;;  %4280 = vmatprep.mubr.bf16.mxu1 %v895_v50 }
 0x312   :  { %v640_v53 = vpop.f32.mrb[13].mxu0  ;;  %4281 = vmatmul.mubr.bf16.gmra.mrb[16].mxu1 %v896_v51 }
 0x313   :  { %v4245_v54 = vpop.f32.mrb[14].mxu0 }
 0x314   :  { %v758_v56 = vpack.c.bf16 %v4245_v54, %v4244_v52  ;;  %v643_v58 = vpop.f32.mrb[15].mxu0 }
 0x315   :  { %v757_v59 = vpack.c.bf16 %v643_v58, %v640_v53  ;;  %v4644_v58 = vld [vmem:[%s6596_s12 + $0x98] sm:$0xff]  }
 0x316   :  { %v898_v61 = vmul.bf16 %v4632_v57, %v758_v56  ;;  %v4645_v56 = vld [vmem:[%s6596_s12 + $0x90] sm:$0xff]  }
 0x317   :  { %v897_v60 = vmul.bf16 %v4633_v55, %v757_v59 }
 0x319   :  { %v4248_v62 = vpop.f32.mrb[16].mxu0  ;;  %4284 = vmatprep.mubr.bf16.mxu1 %v897_v60 }
 0x31a   :  { %v656_v63 = vpop.f32.mrb[17].mxu0  ;;  %4285 = vmatmul.mubr.bf16.gmra.mrb[20].mxu1 %v898_v61 }
 0x31b   :  { %v4249_v0 = vpop.f32.mrb[18].mxu0 }
 0x31c   :  { %v760_v2 = vpack.c.bf16 %v4249_v0, %v4248_v62  ;;  %v659_v4 = vpop.f32.mrb[19].mxu0 }
 0x31d   :  { %v759_v5 = vpack.c.bf16 %v659_v4, %v656_v63  ;;  %v346_v63 = vld [vmem:[%s6597_s5] sm:$0xff] }
 0x31e   :  { %v900_v7 = vmul.bf16 %v4634_v3, %v760_v2  ;;  %v347_v3 = vld [vmem:[%s6597_s5 + $0x8] sm:$0xff] }
 0x31f   :  { %v899_v6 = vmul.bf16 %v4635_v1, %v759_v5  ;;  %v348_v1 = vld [vmem:[%s6597_s5 + $0x10] sm:$0xff] }
 0x321   :  { %v4252_v8 = vpop.f32.mrb[20].mxu0  ;;  %4288 = vmatprep.mubr.bf16.mxu1 %v899_v6  ;;  %v349_v6 = vld [vmem:[%s6597_s5 + $0x18] sm:$0xff] }
 0x322   :  { %v672_v9 = vpop.f32.mrb[21].mxu0  ;;  %4289 = vmatmul.mubr.bf16.gmra.mrb[24].mxu1 %v900_v7 }
 0x323   :  { %v4253_v10 = vpop.f32.mrb[22].mxu0 }
 0x324   :  { %v762_v12 = vpack.c.bf16 %v4253_v10, %v4252_v8  ;;  %v675_v14 = vpop.f32.mrb[23].mxu0 }
 0x325   :  { %v761_v16 = vpack.c.bf16 %v675_v14, %v672_v9 }
 0x326   :  { %v902_v18 = vmul.bf16 %v4636_v13, %v762_v12  ;;  %v350_v13 = vld [vmem:[%s6597_s5 + $0x20] sm:$0xff] }
 0x327   :  { %v901_v17 = vmul.bf16 %v4637_v11, %v761_v16 }
 0x329   :  { %v4256_v20 = vpop.f32.mrb[24].mxu0  ;;  %4292 = vmatprep.mubr.bf16.mxu1 %v901_v17  ;;  %v352_v17 = vld [vmem:[%s6597_s5 + $0x30] sm:$0xff] }
 0x32a   :  { %v688_v21 = vpop.f32.mrb[25].mxu0  ;;  %4293 = vmatmul.mubr.bf16.gmra.mrb[28].mxu1 %v902_v18 }
 0x32b   :  { %v4257_v22 = vpop.f32.mrb[26].mxu0 }
 0x32c   :  { %v764_v24 = vpack.c.bf16 %v4257_v22, %v4256_v20  ;;  %v691_v26 = vpop.f32.mrb[27].mxu0  ;;  %v351_v20 = vld [vmem:[%s6597_s5 + $0x28] sm:$0xff] }
 0x32d   :  { %v763_v27 = vpack.c.bf16 %v691_v26, %v688_v21 }
 0x32e   :  { %v904_v29 = vmul.bf16 %v4638_v25, %v764_v24  ;;  %v353_v24 = vld [vmem:[%s6597_s5 + $0x38] sm:$0xff] }
 0x32f   :  { %v903_v28 = vmul.bf16 %v4639_v23, %v763_v27 }
 0x331   :  { %v4260_v30 = vpop.f32.mrb[28].mxu0  ;;  %4296 = vmatprep.mubr.bf16.mxu1 %v903_v28 }
 0x332   :  { %v704_v31 = vpop.f32.mrb[29].mxu0  ;;  %4297 = vmatmul.mubr.bf16.gmra.mrb[32].mxu1 %v904_v29 }
 0x333   :  { %v4261_v32 = vpop.f32.mrb[30].mxu0 }
 0x334   :  { %v766_v34 = vpack.c.bf16 %v4261_v32, %v4260_v30  ;;  %v707_v39 = vpop.f32.mrb[31].mxu0 }
 0x335   :  { %v765_v40 = vpack.c.bf16 %v707_v39, %v704_v31  ;;  %v354_v31 = vld [vmem:[%s6597_s5 + $0x40] sm:$0xff]  ;;  %v355_v39 = vld [vmem:[%s6597_s5 + $0x48] sm:$0xff] }
 0x336   :  { %v906_v42 = vmul.bf16 %v4640_v37, %v766_v34  ;;  %v356_v34 = vld [vmem:[%s6597_s5 + $0x50] sm:$0xff] }
 0x337   :  { %v905_v41 = vmul.bf16 %v4641_v33, %v765_v40 }
 0x339   :  { %v4264_v43 = vpop.f32.mrb[32].mxu0  ;;  %4300 = vmatprep.mubr.bf16.mxu1 %v905_v41 }
 0x33a   :  { %v720_v44 = vpop.f32.mrb[33].mxu0  ;;  %4301 = vmatmul.mubr.bf16.gmra.mrb[36].mxu1 %v906_v42 }
 0x33b   :  { %v4265_v45 = vpop.f32.mrb[34].mxu0 }
 0x33c   :  { %v768_v47 = vpack.c.bf16 %v4265_v45, %v4264_v43  ;;  %v723_v49 = vpop.f32.mrb[35].mxu0  ;;  %v357_v43 = vld [vmem:[%s6597_s5 + $0x58] sm:$0xff] }
 0x33d   :  { %v767_v50 = vpack.c.bf16 %v723_v49, %v720_v44 }
 0x33e   :  { %v908_v52 = vmul.bf16 %v4642_v48, %v768_v47 }
 0x33f   :  { %v907_v51 = vmul.bf16 %v4643_v46, %v767_v50  ;;  %v358_v50 = vld [vmem:[%s6597_s5 + $0x60] sm:$0xff] }
 0x341   :  { %v4268_v53 = vpop.f32.mrb[36].mxu0  ;;  %4304 = vmatprep.mubr.bf16.mxu1 %v907_v51 }
 0x342   :  { %v736_v54 = vpop.f32.mrb[37].mxu0  ;;  %4305 = vmatmul.mubr.bf16.gmra.mrb[40].mxu1 %v908_v52 }
 0x343   :  { %v4269_v55 = vpop.f32.mrb[38].mxu0 }
 0x344   :  { %v770_v57 = vpack.c.bf16 %v4269_v55, %v4268_v53  ;;  %v739_v59 = vpop.f32.mrb[39].mxu0  ;;  %v360_v53 = vld [vmem:[%s6597_s5 + $0x70] sm:$0xff]  ;;  %v359_v55 = vld [vmem:[%s6597_s5 + $0x68] sm:$0xff] }
 0x345   :  { %v769_v60 = vpack.c.bf16 %v739_v59, %v736_v54  ;;  %v361_v59 = vld [vmem:[%s6597_s5 + $0x78] sm:$0xff] }
 0x346   :  { %v910_v62 = vmul.bf16 %v4644_v58, %v770_v57 }
 0x347   :  { %v909_v61 = vmul.bf16 %v4645_v56, %v769_v60 }
 0x349   :  { %4308 = vmatprep.mubr.bf16.mxu1 %v909_v61 }
 0x34a   :  { %4309 = vmatmul.mubr.bf16.gmra.mrb[44].mxu1 %v910_v62 }
 0x3d5   :  { %v4274_v0 = vpop.f32.mrb[8].mxu1 }
 0x3d6   :  { %v945_v2 = vpop.f32.mrb[9].mxu1  ;;  %v5339_v8 = vadd.f32 %v4274_v0, %v348_v1 }
 0x3d7   :  { %v5334_v4 = vadd.f32 %v945_v2, %v346_v63  ;;  %v4275_v5 = vpop.f32.mrb[10].mxu1  ;;  %v362_v2 = vld [vmem:[%s6597_s5 + $0x80] sm:$0xff] }
 0x3d8   :  { %v948_v7 = vpop.f32.mrb[11].mxu1  ;;  %v5345_v11 = vadd.f32 %v4275_v5, %v349_v6  ;;  %v1110_v16 = vsel %vm493_vm3, %v5339_v8, -inf  ;;  %v364_v6 = vld [vmem:[%s6597_s5 + $0x90] sm:$0xff] }
 0x3d9   :  { %v5341_v9 = vadd.f32 %v948_v7, %v347_v3  ;;  %v1104_v10 = vsel %vm493_vm3, %v5334_v4, -inf }
 0x3da   :  { %1105 = vmax.xlane.f32.xlu0 %v1104_v10  ;;  %v1113_v23 = vsel %vm493_vm3, %v5345_v11, -inf  ;;  %v363_v10 = vld [vmem:[%s6597_s5 + $0x88] sm:$0xff] }
 0x3db   :  { %v1107_v12 = vsel %vm493_vm3, %v5341_v9, -inf }
 0x3dc   :  { %1108 = vmax.xlane.f32.xlu1 %v1107_v12 }
 0x3dd   :  { %v4278_v14 = vpop.f32.mrb[12].mxu1 }
 0x3de   :  { %1111 = vmax.xlane.f32.xlu0 %v1110_v16  ;;  %v961_v18 = vpop.f32.mrb[13].mxu1  ;;  %v5367_v26 = vadd.f32 %v4278_v14, %v352_v17  ;;  %v365_v16 = vld [vmem:[%s6597_s5 + $0x98] sm:$0xff] }
 0x3df   :  { %v5360_v21 = vadd.f32 %v961_v18, %v350_v13  ;;  %v4279_v22 = vpop.f32.mrb[14].mxu1 }
 0x3e0   :  { %1114 = vmax.xlane.f32.xlu1 %v1113_v23  ;;  %v964_v25 = vpop.f32.mrb[15].mxu1  ;;  %v5373_v29 = vadd.f32 %v4279_v22, %v353_v24  ;;  %v1122_v33 = vsel %vm493_vm3, %v5367_v26, -inf }
 0x3e1   :  { %v5369_v27 = vadd.f32 %v964_v25, %v351_v20  ;;  %v1116_v28 = vsel %vm493_vm3, %v5360_v21, -inf  ;;  %v366_v25 = vld [vmem:[%s6597_s5 + $0xa0] sm:$0xff] }
 0x3e2   :  { %1117 = vmax.xlane.f32.xlu0 %v1116_v28  ;;  %v1125_v42 = vsel %vm493_vm3, %v5373_v29, -inf }
 0x3e3   :  { %v1119_v30 = vsel %vm493_vm3, %v5369_v27, -inf }
 0x3e4   :  { %1120 = vmax.xlane.f32.xlu1 %v1119_v30 }
 0x3e5   :  { %v4282_v32 = vpop.f32.mrb[16].mxu1 }
 0x3e6   :  { %1123 = vmax.xlane.f32.xlu0 %v1122_v33  ;;  %v977_v37 = vpop.f32.mrb[17].mxu1  ;;  %v5395_v45 = vadd.f32 %v4282_v32, %v356_v34  ;;  %v367_v33 = vld [vmem:[%s6597_s5 + $0xa8] sm:$0xff] }
 0x3e7   :  { %v5388_v40 = vadd.f32 %v977_v37, %v354_v31  ;;  %v4283_v41 = vpop.f32.mrb[18].mxu1  ;;  %v368_v31 = vld [vmem:[%s6597_s5 + $0xb0] sm:$0xff] }
 0x3e8   :  { %1126 = vmax.xlane.f32.xlu1 %v1125_v42  ;;  %v980_v44 = vpop.f32.mrb[19].mxu1  ;;  %v5401_v48 = vadd.f32 %v4283_v41, %v357_v43  ;;  %v1134_v52 = vsel %vm493_vm3, %v5395_v45, -inf  ;;  %v369_v41 = vld [vmem:[%s6597_s5 + $0xb8] sm:$0xff] }
 0x3e9   :  { %v5397_v46 = vadd.f32 %v980_v44, %v355_v39  ;;  %v1128_v47 = vsel %vm493_vm3, %v5388_v40, -inf }
 0x3ea   :  { %1129 = vmax.xlane.f32.xlu0 %v1128_v47  ;;  %v1137_v58 = vsel %vm493_vm3, %v5401_v48, -inf }
 0x3eb   :  { %v1131_v49 = vsel %vm493_vm3, %v5397_v46, -inf }
 0x3ec   :  { %1132 = vmax.xlane.f32.xlu1 %v1131_v49 }
 0x3ed   :  { %v4286_v51 = vpop.f32.mrb[20].mxu1 }
 0x3ee   :  { %1135 = vmax.xlane.f32.xlu0 %v1134_v52  ;;  %v993_v54 = vpop.f32.mrb[21].mxu1  ;;  %v5423_v61 = vadd.f32 %v4286_v51, %v360_v53  ;;  %v370_v51 = vld [vmem:[%s6597_s5 + $0xc0] sm:$0xff] }
 0x3ef   :  { %v5416_v56 = vadd.f32 %v993_v54, %v358_v50  ;;  %v4287_v57 = vpop.f32.mrb[22].mxu1  ;;  %v372_v54 = vld [vmem:[%s6597_s5 + $0xd0] sm:$0xff] }
 0x3f0   :  { %1138 = vmax.xlane.f32.xlu1 %v1137_v58  ;;  %v996_v60 = vpop.f32.mrb[23].mxu1  ;;  %v5429_v0 = vadd.f32 %v4287_v57, %v361_v59  ;;  %v1146_v5 = vsel %vm493_vm3, %v5423_v61, -inf  ;;  %v371_v57 = vld [vmem:[%s6597_s5 + $0xc8] sm:$0xff] }
 0x3f1   :  { %v5425_v62 = vadd.f32 %v996_v60, %v359_v55  ;;  %v1140_v63 = vsel %vm493_vm3, %v5416_v56, -inf }
 0x3f2   :  { %1141 = vmax.xlane.f32.xlu0 %v1140_v63  ;;  %v1149_v14 = vsel %vm493_vm3, %v5429_v0, -inf  ;;  %v373_v63 = vld [vmem:[%s6597_s5 + $0xd8] sm:$0xff] }
 0x3f3   :  { %v1143_v1 = vsel %vm493_vm3, %v5425_v62, -inf }
 0x3f4   :  { %1144 = vmax.xlane.f32.xlu1 %v1143_v1 }
 0x3f5   :  { %v4290_v3 = vpop.f32.mrb[24].mxu1 }
 0x3f6   :  { %1147 = vmax.xlane.f32.xlu0 %v1146_v5  ;;  %v1009_v7 = vpop.f32.mrb[25].mxu1  ;;  %v5451_v18 = vadd.f32 %v4290_v3, %v364_v6 }
 0x3f7   :  { %v5444_v12 = vadd.f32 %v1009_v7, %v362_v2  ;;  %v4291_v13 = vpop.f32.mrb[26].mxu1 }
 0x3f8   :  { %1150 = vmax.xlane.f32.xlu1 %v1149_v14  ;;  %v1012_v17 = vpop.f32.mrb[27].mxu1  ;;  %v5457_v23 = vadd.f32 %v4291_v13, %v365_v16  ;;  %v1158_v30 = vsel %vm493_vm3, %v5451_v18, -inf  ;;  %v376_v16 = vld [vmem:[%s6597_s5 + $0xf0] sm:$0xff] }
 0x3f9   :  { %v5453_v20 = vadd.f32 %v1012_v17, %v363_v10  ;;  %v1152_v22 = vsel %vm493_vm3, %v5444_v12, -inf  ;;  %v374_v10 = vld [vmem:[%s6597_s5 + $0xe0] sm:$0xff] }
 0x3fa   :  { %1153 = vmax.xlane.f32.xlu0 %v1152_v22  ;;  %v1161_v39 = vsel %vm493_vm3, %v5457_v23, -inf  ;;  %v375_v22 = vld [vmem:[%s6597_s5 + $0xe8] sm:$0xff] }
 0x3fb   :  { %v1155_v24 = vsel %vm493_vm3, %v5453_v20, -inf }
 0x3fc   :  { %1156 = vmax.xlane.f32.xlu1 %v1155_v24 }
 0x3fd   :  { %v4294_v28 = vpop.f32.mrb[28].mxu1 }
 0x3fe   :  { %1159 = vmax.xlane.f32.xlu0 %v1158_v30  ;;  %v1025_v32 = vpop.f32.mrb[29].mxu1  ;;  %v5479_v43 = vadd.f32 %v4294_v28, %v368_v31  ;;  %v377_v30 = vld [vmem:[%s6597_s5 + $0xf8] sm:$0xff] }
 0x3ff   :  { %v5472_v34 = vadd.f32 %v1025_v32, %v366_v25  ;;  %v4295_v37 = vpop.f32.mrb[30].mxu1 }
 0x400   :  { %1162 = vmax.xlane.f32.xlu1 %v1161_v39  ;;  %v1028_v42 = vpop.f32.mrb[31].mxu1  ;;  %v5485_v49 = vadd.f32 %v4295_v37, %v369_v41  ;;  %v1170_v53 = vsel %vm493_vm3, %v5479_v43, -inf }
 0x401   :  { %v5481_v44 = vadd.f32 %v1028_v42, %v367_v33  ;;  %v1164_v47 = vsel %vm493_vm3, %v5472_v34, -inf  ;;  %v378_v42 = vld [vmem:[%s6597_s5 + $0x100] sm:$0xff] }
 0x402   :  { %1165 = vmax.xlane.f32.xlu0 %v1164_v47  ;;  %v1173_v60 = vsel %vm493_vm3, %v5485_v49, -inf }
 0x403   :  { %v1167_v50 = vsel %vm493_vm3, %v5481_v44, -inf }
 0x404   :  { %1168 = vmax.xlane.f32.xlu1 %v1167_v50 }
 0x405   :  { %v4298_v52 = vpop.f32.mrb[32].mxu1 }
 0x406   :  { %1171 = vmax.xlane.f32.xlu0 %v1170_v53  ;;  %v1041_v55 = vpop.f32.mrb[33].mxu1  ;;  %v5507_v2 = vadd.f32 %v4298_v52, %v372_v54  ;;  %v379_v53 = vld [vmem:[%s6597_s5 + $0x108] sm:$0xff] }
 0x407   :  { %v5500_v58 = vadd.f32 %v1041_v55, %v370_v51  ;;  %v4299_v59 = vpop.f32.mrb[34].mxu1  ;;  %v380_v51 = vld [vmem:[%s6597_s5 + $0x110] sm:$0xff] }
 0x408   :  { %1174 = vmax.xlane.f32.xlu1 %v1173_v60  ;;  %v1044_v1 = vpop.f32.mrb[35].mxu1  ;;  %v5513_v6 = vadd.f32 %v4299_v59, %v373_v63  ;;  %v1182_v14 = vsel %vm493_vm3, %v5507_v2, -inf  ;;  %v381_v59 = vld [vmem:[%s6597_s5 + $0x118] sm:$0xff] }
 0x409   :  { %v5509_v3 = vadd.f32 %v1044_v1, %v371_v57  ;;  %v1176_v5 = vsel %vm493_vm3, %v5500_v58, -inf }
 0x40a   :  { %1177 = vmax.xlane.f32.xlu0 %v1176_v5  ;;  %v1185_v28 = vsel %vm493_vm3, %v5513_v6, -inf }
 0x40b   :  { %v1179_v7 = vsel %vm493_vm3, %v5509_v3, -inf }
 0x40c   :  { %1180 = vmax.xlane.f32.xlu1 %v1179_v7 }
 0x40d   :  { %v4302_v13 = vpop.f32.mrb[36].mxu1 }
 0x40e   :  { %1183 = vmax.xlane.f32.xlu0 %v1182_v14  ;;  %v1057_v17 = vpop.f32.mrb[37].mxu1  ;;  %v5535_v32 = vadd.f32 %v4302_v13, %v376_v16  ;;  %v382_v13 = vld [vmem:[%s6597_s5 + $0x120] sm:$0xff] }
 0x40f   :  { %v5528_v24 = vadd.f32 %v1057_v17, %v374_v10  ;;  %v4303_v25 = vpop.f32.mrb[38].mxu1  ;;  %v384_v17 = vld [vmem:[%s6597_s5 + $0x130] sm:$0xff] }
 0x410   :  { %1186 = vmax.xlane.f32.xlu1 %v1185_v28  ;;  %v1060_v31 = vpop.f32.mrb[39].mxu1  ;;  %v5541_v39 = vadd.f32 %v4303_v25, %v377_v30  ;;  %v1194_v50 = vsel %vm493_vm3, %v5535_v32, -inf  ;;  %v383_v25 = vld [vmem:[%s6597_s5 + $0x128] sm:$0xff] }
 0x411   :  { %v5537_v33 = vadd.f32 %v1060_v31, %v375_v22  ;;  %v1188_v37 = vsel %vm493_vm3, %v5528_v24, -inf }
 0x412   :  { %1189 = vmax.xlane.f32.xlu0 %v1188_v37  ;;  %v1197_v57 = vsel %vm493_vm3, %v5541_v39, -inf  ;;  %v385_v37 = vld [vmem:[%s6597_s5 + $0x138] sm:$0xff]  ;;  %s6599_s5 = sld [smem:[#allocation9_spill]] }
 0x413   :  { %v1191_v41 = vsel %vm493_vm3, %v5537_v33, -inf }
 0x414   :  { %1192 = vmax.xlane.f32.xlu1 %v1191_v41 }
 0x415   :  { %v4306_v47 = vpop.f32.mrb[40].mxu1 }
 0x416   :  { %1195 = vmax.xlane.f32.xlu0 %v1194_v50  ;;  %v1073_v52 = vpop.f32.mrb[41].mxu1  ;;  %v5563_v63 = vadd.f32 %v4306_v47, %v380_v51 }
 0x417   :  { %v5556_v54 = vadd.f32 %v1073_v52, %v378_v42  ;;  %v4307_v55 = vpop.f32.mrb[42].mxu1 }
 0x418   :  { %1198 = vmax.xlane.f32.xlu1 %v1197_v57  ;;  %v1076_v60 = vpop.f32.mrb[43].mxu1  ;;  %v5569_v7 = vadd.f32 %v4307_v55, %v381_v59  ;;  %v1206_v16 = vsel %vm493_vm3, %v5563_v63, -inf }
 0x419   :  { %v5565_v1 = vadd.f32 %v1076_v60, %v379_v53  ;;  %v1200_v5 = vsel %vm493_vm3, %v5556_v54, -inf }
 0x41a   :  { %1201 = vmax.xlane.f32.xlu0 %v1200_v5  ;;  %v1209_v31 = vsel %vm493_vm3, %v5569_v7, -inf }
 0x41b   :  { %v1203_v10 = vsel %vm493_vm3, %v5565_v1, -inf }
 0x41c   :  { %1204 = vmax.xlane.f32.xlu1 %v1203_v10 }
 0x41d   :  { %v4310_v14 = vpop.f32.mrb[44].mxu1 }
 0x41e   :  { %1207 = vmax.xlane.f32.xlu0 %v1206_v16  ;;  %v1089_v22 = vpop.f32.mrb[45].mxu1  ;;  %v5591_v42 = vadd.f32 %v4310_v14, %v384_v17 }
 0x41f   :  { %v5584_v28 = vadd.f32 %v1089_v22, %v382_v13  ;;  %v4311_v30 = vpop.f32.mrb[46].mxu1 }
 0x420   :  { %1210 = vmax.xlane.f32.xlu1 %v1209_v31  ;;  %v1092_v41 = vpop.f32.mrb[47].mxu1  ;;  %v5597_v51 = vadd.f32 %v4311_v30, %v385_v37  ;;  %v1218_v53 = vsel %vm493_vm3, %v5591_v42, -inf }
 0x421   :  { %v5593_v47 = vadd.f32 %v1092_v41, %v383_v25  ;;  %v1212_v50 = vsel %vm493_vm3, %v5584_v28, -inf }
 0x422   :  { %1213 = vmax.xlane.f32.xlu0 %v1212_v50  ;;  %v1221_v55 = vsel %vm493_vm3, %v5597_v51, -inf }
 0x423   :  { %v1215_v52 = vsel %vm493_vm3, %v5593_v47, -inf }
 0x424   :  { %1216 = vmax.xlane.f32.xlu1 %v1215_v52 }
 0x426   :  { %1219 = vmax.xlane.f32.xlu0 %v1218_v53 }
 0x428   :  { %1222 = vmax.xlane.f32.xlu1 %v1221_v55 }
 0x467   :  { %v1106_v57 = vpop.xlane.xlu0 %1105 }
 0x468   :  { %v1224_v59 = vsub.f32 %v5334_v4, %v1106_v57 }
 0x469   :  { %v1109_v60 = vpop.xlane.xlu1 %1108 }
 0x46a   :  { %v1264_v5 = vmul.f32 1.442695, %v1224_v59  ;;  %v1225_v10 = vsub.f32 %v5341_v9, %v1109_v60 }
 0x46b   :  { %v1112_v13 = vpop.xlane.xlu0 %1111 }
 0x46c   :  { %4736 = vpow2.f32 %v1264_v5  ;;  %v1266_v14 = vmul.f32 1.442695, %v1225_v10  ;;  %v1226_v16 = vsub.f32 %v5339_v8, %v1112_v13 }
 0x46d   :  { %v1115_v17 = vpop.xlane.xlu1 %1114 }
 0x46e   :  { %4738 = vpow2.f32 %v1266_v14  ;;  %v1268_v22 = vmul.f32 1.442695, %v1226_v16  ;;  %v1227_v25 = vsub.f32 %v5345_v11, %v1115_v17 }
 0x46f   :  { %v1118_v30 = vpop.xlane.xlu0 %1117 }
 0x470   :  { %4740 = vpow2.f32 %v1268_v22  ;;  %v1270_v31 = vmul.f32 1.442695, %v1227_v25  ;;  %v1228_v37 = vsub.f32 %v5360_v21, %v1118_v30 }
 0x471   :  { %v1121_v4 = vpop.xlane.xlu1 %1120 }
 0x472   :  { %4742 = vpow2.f32 %v1270_v31  ;;  %v1272_v41 = vmul.f32 1.442695, %v1228_v37  ;;  %v1229_v9 = vsub.f32 %v5369_v27, %v1121_v4 }
 0x473   :  { %v1124_v50 = vpop.xlane.xlu0 %1123 }
 0x474   :  { %4744 = vpow2.f32 %v1272_v41  ;;  %v1274_v52 = vmul.f32 1.442695, %v1229_v9  ;;  %v1230_v8 = vsub.f32 %v5367_v26, %v1124_v50 }
 0x475   :  { %v1127_v53 = vpop.xlane.xlu1 %1126 }
 0x476   :  { %v5612_v55 = vpop.eup %4736  ;;  %4746 = vpow2.f32 %v1274_v52  ;;  %v1276_v11 = vmul.f32 1.442695, %v1230_v8  ;;  %v1231_v57 = vsub.f32 %v5373_v29, %v1127_v53 }
 0x477   :  { %v1130_v59 = vpop.xlane.xlu0 %1129  ;;  %v1344_v21 = vsel %vm493_vm3, %v5612_v55, 0.0 }
 0x478   :  { %v5617_v60 = vpop.eup %4738  ;;  %4748 = vpow2.f32 %v1276_v11  ;;  %v1278_v27 = vmul.f32 1.442695, %v1231_v57  ;;  %v1232_v5 = vsub.f32 %v5388_v40, %v1130_v59  ;;  %1345 = vadd.xlane.f32.xlu0 %v1344_v21 }
 0x479   :  { %v1133_v10 = vpop.xlane.xlu1 %1132  ;;  %v1347_v26 = vsel %vm493_vm3, %v5617_v60, 0.0 }
 0x47a   :  { %v5622_v13 = vpop.eup %4740  ;;  %4750 = vpow2.f32 %v1278_v27  ;;  %v1280_v14 = vmul.f32 1.442695, %v1232_v5  ;;  %v1233_v29 = vsub.f32 %v5397_v46, %v1133_v10  ;;  %1348 = vadd.xlane.f32.xlu1 %v1347_v26 }
 0x47b   :  { %v1136_v16 = vpop.xlane.xlu0 %1135  ;;  %v1350_v17 = vsel %vm493_vm3, %v5622_v13, 0.0 }
 0x47c   :  { %v5627_v22 = vpop.eup %4742  ;;  %4752 = vpow2.f32 %v1280_v14  ;;  %v1282_v40 = vmul.f32 1.442695, %v1233_v29  ;;  %v1234_v25 = vsub.f32 %v5395_v45, %v1136_v16  ;;  %1351 = vadd.xlane.f32.xlu0 %v1350_v17 }
 0x47d   :  { %v1139_v30 = vpop.xlane.xlu1 %1138  ;;  %v1353_v31 = vsel %vm493_vm3, %v5627_v22, 0.0 }
 0x47e   :  { %v5632_v37 = vpop.eup %4744  ;;  %4754 = vpow2.f32 %v1282_v40  ;;  %v1284_v46 = vmul.f32 1.442695, %v1234_v25  ;;  %v1235_v4 = vsub.f32 %v5401_v48, %v1139_v30  ;;  %1354 = vadd.xlane.f32.xlu1 %v1353_v31 }
 0x47f   :  { %v1142_v41 = vpop.xlane.xlu0 %1141  ;;  %v1356_v9 = vsel %vm493_vm3, %v5632_v37, 0.0 }
 0x480   :  { %v5637_v50 = vpop.eup %4746  ;;  %4756 = vpow2.f32 %v1284_v46  ;;  %v1286_v45 = vmul.f32 1.442695, %v1235_v4  ;;  %v1236_v52 = vsub.f32 %v5416_v56, %v1142_v41  ;;  %1357 = vadd.xlane.f32.xlu0 %v1356_v9 }
 0x481   :  { %v1145_v8 = vpop.xlane.xlu1 %1144  ;;  %v1359_v53 = vsel %vm493_vm3, %v5637_v50, 0.0 }
 0x482   :  { %v5642_v11 = vpop.eup %4748  ;;  %4758 = vpow2.f32 %v1286_v45  ;;  %v1288_v48 = vmul.f32 1.442695, %v1236_v52  ;;  %v1237_v57 = vsub.f32 %v5425_v62, %v1145_v8  ;;  %1360 = vadd.xlane.f32.xlu1 %v1359_v53 }
 0x483   :  { %v1148_v59 = vpop.xlane.xlu0 %1147  ;;  %v1362_v21 = vsel %vm493_vm3, %v5642_v11, 0.0 }
 0x484   :  { %v5647_v27 = vpop.eup %4750  ;;  %4760 = vpow2.f32 %v1288_v48  ;;  %v1290_v56 = vmul.f32 1.442695, %v1237_v57  ;;  %v1238_v5 = vsub.f32 %v5423_v61, %v1148_v59  ;;  %1363 = vadd.xlane.f32.xlu0 %v1362_v21 }
 0x485   :  { %v1151_v10 = vpop.xlane.xlu1 %1150  ;;  %v1365_v26 = vsel %vm493_vm3, %v5647_v27, 0.0 }
 0x486   :  { %v5652_v14 = vpop.eup %4752  ;;  %4762 = vpow2.f32 %v1290_v56  ;;  %v1292_v62 = vmul.f32 1.442695, %v1238_v5  ;;  %v1239_v29 = vsub.f32 %v5429_v0, %v1151_v10  ;;  %1366 = vadd.xlane.f32.xlu1 %v1365_v26 }
 0x487   :  { %v1154_v16 = vpop.xlane.xlu0 %1153  ;;  %v1368_v17 = vsel %vm493_vm3, %v5652_v14, 0.0 }
 0x488   :  { %v5657_v40 = vpop.eup %4754  ;;  %4764 = vpow2.f32 %v1292_v62  ;;  %v1294_v61 = vmul.f32 1.442695, %v1239_v29  ;;  %v1240_v25 = vsub.f32 %v5444_v12, %v1154_v16  ;;  %1369 = vadd.xlane.f32.xlu0 %v1368_v17 }
 0x489   :  { %v1157_v30 = vpop.xlane.xlu1 %1156  ;;  %v1371_v31 = vsel %vm493_vm3, %v5657_v40, 0.0 }
 0x48a   :  { %v5662_v46 = vpop.eup %4756  ;;  %4766 = vpow2.f32 %v1294_v61  ;;  %v1296_v0 = vmul.f32 1.442695, %v1240_v25  ;;  %v1241_v4 = vsub.f32 %v5453_v20, %v1157_v30  ;;  %1372 = vadd.xlane.f32.xlu1 %v1371_v31 }
 0x48b   :  { %v1160_v41 = vpop.xlane.xlu0 %1159  ;;  %v1374_v9 = vsel %vm493_vm3, %v5662_v46, 0.0 }
 0x48c   :  { %v5667_v45 = vpop.eup %4758  ;;  %4768 = vpow2.f32 %v1296_v0  ;;  %v1298_v12 = vmul.f32 1.442695, %v1241_v4  ;;  %v1242_v52 = vsub.f32 %v5451_v18, %v1160_v41  ;;  %1375 = vadd.xlane.f32.xlu0 %v1374_v9 }
 0x48d   :  { %v1163_v8 = vpop.xlane.xlu1 %1162  ;;  %v1377_v53 = vsel %vm493_vm3, %v5667_v45, 0.0 }
 0x48e   :  { %v5672_v48 = vpop.eup %4760  ;;  %4770 = vpow2.f32 %v1298_v12  ;;  %v1300_v20 = vmul.f32 1.442695, %v1242_v52  ;;  %v1243_v57 = vsub.f32 %v5457_v23, %v1163_v8  ;;  %1378 = vadd.xlane.f32.xlu1 %v1377_v53 }
 0x48f   :  { %v1166_v59 = vpop.xlane.xlu0 %1165  ;;  %v1380_v21 = vsel %vm493_vm3, %v5672_v48, 0.0 }
 0x490   :  { %v5677_v56 = vpop.eup %4762  ;;  %4772 = vpow2.f32 %v1300_v20  ;;  %v1302_v18 = vmul.f32 1.442695, %v1243_v57  ;;  %v1244_v5 = vsub.f32 %v5472_v34, %v1166_v59  ;;  %1381 = vadd.xlane.f32.xlu0 %v1380_v21 }
 0x491   :  { %v1169_v10 = vpop.xlane.xlu1 %1168  ;;  %v1383_v26 = vsel %vm493_vm3, %v5677_v56, 0.0 }
 0x492   :  { %v5682_v62 = vpop.eup %4764  ;;  %4774 = vpow2.f32 %v1302_v18  ;;  %v1304_v23 = vmul.f32 1.442695, %v1244_v5  ;;  %v1245_v29 = vsub.f32 %v5481_v44, %v1169_v10  ;;  %1384 = vadd.xlane.f32.xlu1 %v1383_v26 }
 0x493   :  { %v1172_v16 = vpop.xlane.xlu0 %1171  ;;  %v1386_v17 = vsel %vm493_vm3, %v5682_v62, 0.0 }
 0x494   :  { %v5687_v61 = vpop.eup %4766  ;;  %4776 = vpow2.f32 %v1304_v23  ;;  %v1306_v34 = vmul.f32 1.442695, %v1245_v29  ;;  %v1246_v25 = vsub.f32 %v5479_v43, %v1172_v16  ;;  %1387 = vadd.xlane.f32.xlu0 %v1386_v17 }
 0x495   :  { %v1175_v30 = vpop.xlane.xlu1 %1174  ;;  %v1389_v31 = vsel %vm493_vm3, %v5687_v61, 0.0 }
 0x496   :  { %v5692_v0 = vpop.eup %4768  ;;  %4778 = vpow2.f32 %v1306_v34  ;;  %v1308_v44 = vmul.f32 1.442695, %v1246_v25  ;;  %v1247_v4 = vsub.f32 %v5485_v49, %v1175_v30  ;;  %1390 = vadd.xlane.f32.xlu1 %v1389_v31 }
 0x497   :  { %v1178_v41 = vpop.xlane.xlu0 %1177  ;;  %v1392_v9 = vsel %vm493_vm3, %v5692_v0, 0.0 }
 0x498   :  { %v5697_v12 = vpop.eup %4770  ;;  %4780 = vpow2.f32 %v1308_v44  ;;  %v1310_v43 = vmul.f32 1.442695, %v1247_v4  ;;  %v1248_v52 = vsub.f32 %v5500_v58, %v1178_v41  ;;  %1393 = vadd.xlane.f32.xlu0 %v1392_v9 }
 0x499   :  { %v1181_v8 = vpop.xlane.xlu1 %1180  ;;  %v1395_v53 = vsel %vm493_vm3, %v5697_v12, 0.0 }
 0x49a   :  { %v5702_v20 = vpop.eup %4772  ;;  %4782 = vpow2.f32 %v1310_v43  ;;  %v1312_v49 = vmul.f32 1.442695, %v1248_v52  ;;  %v1249_v57 = vsub.f32 %v5509_v3, %v1181_v8  ;;  %1396 = vadd.xlane.f32.xlu1 %v1395_v53 }
 0x49b   :  { %v1184_v59 = vpop.xlane.xlu0 %1183  ;;  %v1398_v21 = vsel %vm493_vm3, %v5702_v20, 0.0 }
 0x49c   :  { %v5707_v18 = vpop.eup %4774  ;;  %4784 = vpow2.f32 %v1312_v49  ;;  %v1314_v58 = vmul.f32 1.442695, %v1249_v57  ;;  %v1250_v5 = vsub.f32 %v5507_v2, %v1184_v59  ;;  %1399 = vadd.xlane.f32.xlu0 %v1398_v21 }
 0x49d   :  { %v1187_v10 = vpop.xlane.xlu1 %1186  ;;  %v1401_v26 = vsel %vm493_vm3, %v5707_v18, 0.0 }
 0x49e   :  { %v5712_v23 = vpop.eup %4776  ;;  %4786 = vpow2.f32 %v1314_v58  ;;  %v1316_v3 = vmul.f32 1.442695, %v1250_v5  ;;  %v1251_v29 = vsub.f32 %v5513_v6, %v1187_v10  ;;  %1402 = vadd.xlane.f32.xlu1 %v1401_v26 }
 0x49f   :  { %v1190_v16 = vpop.xlane.xlu0 %1189  ;;  %v1404_v17 = vsel %vm493_vm3, %v5712_v23, 0.0 }
 0x4a0   :  { %v5717_v34 = vpop.eup %4778  ;;  %4788 = vpow2.f32 %v1316_v3  ;;  %v1318_v2 = vmul.f32 1.442695, %v1251_v29  ;;  %v1252_v25 = vsub.f32 %v5528_v24, %v1190_v16  ;;  %1405 = vadd.xlane.f32.xlu0 %v1404_v17 }
 0x4a1   :  { %v1193_v30 = vpop.xlane.xlu1 %1192  ;;  %v1407_v31 = vsel %vm493_vm3, %v5717_v34, 0.0 }
 0x4a2   :  { %v5722_v44 = vpop.eup %4780  ;;  %4790 = vpow2.f32 %v1318_v2  ;;  %v1320_v6 = vmul.f32 1.442695, %v1252_v25  ;;  %v1253_v4 = vsub.f32 %v5537_v33, %v1193_v30  ;;  %1408 = vadd.xlane.f32.xlu1 %v1407_v31 }
 0x4a3   :  { %v1196_v41 = vpop.xlane.xlu0 %1195  ;;  %v1410_v9 = vsel %vm493_vm3, %v5722_v44, 0.0 }
 0x4a4   :  { %v5727_v43 = vpop.eup %4782  ;;  %4792 = vpow2.f32 %v1320_v6  ;;  %v1322_v24 = vmul.f32 1.442695, %v1253_v4  ;;  %v1254_v52 = vsub.f32 %v5535_v32, %v1196_v41  ;;  %1411 = vadd.xlane.f32.xlu0 %v1410_v9 }
 0x4a5   :  { %v1199_v8 = vpop.xlane.xlu1 %1198  ;;  %v1413_v53 = vsel %vm493_vm3, %v5727_v43, 0.0 }
 0x4a6   :  { %v5732_v49 = vpop.eup %4784  ;;  %4794 = vpow2.f32 %v1322_v24  ;;  %v1324_v33 = vmul.f32 1.442695, %v1254_v52  ;;  %v1255_v57 = vsub.f32 %v5541_v39, %v1199_v8  ;;  %1414 = vadd.xlane.f32.xlu1 %v1413_v53 }
 0x4a7   :  { %v1202_v59 = vpop.xlane.xlu0 %1201  ;;  %v1416_v21 = vsel %vm493_vm3, %v5732_v49, 0.0 }
 0x4a8   :  { %v5737_v58 = vpop.eup %4786  ;;  %4796 = vpow2.f32 %v1324_v33  ;;  %v1326_v32 = vmul.f32 1.442695, %v1255_v57  ;;  %v1256_v5 = vsub.f32 %v5556_v54, %v1202_v59  ;;  %1417 = vadd.xlane.f32.xlu0 %v1416_v21 }
 0x4a9   :  { %v1205_v10 = vpop.xlane.xlu1 %1204  ;;  %v1419_v26 = vsel %vm493_vm3, %v5737_v58, 0.0 }
 0x4aa   :  { %v5742_v3 = vpop.eup %4788  ;;  %4798 = vpow2.f32 %v1326_v32  ;;  %v1328_v39 = vmul.f32 1.442695, %v1256_v5  ;;  %v1257_v29 = vsub.f32 %v5565_v1, %v1205_v10  ;;  %1420 = vadd.xlane.f32.xlu1 %v1419_v26 }
 0x4ab   :  { %v1208_v16 = vpop.xlane.xlu0 %1207  ;;  %v1422_v17 = vsel %vm493_vm3, %v5742_v3, 0.0 }
 0x4ac   :  { %v5747_v2 = vpop.eup %4790  ;;  %4800 = vpow2.f32 %v1328_v39  ;;  %v1330_v54 = vmul.f32 1.442695, %v1257_v29  ;;  %v1258_v25 = vsub.f32 %v5563_v63, %v1208_v16  ;;  %1423 = vadd.xlane.f32.xlu0 %v1422_v17 }
 0x4ad   :  { %v1211_v30 = vpop.xlane.xlu1 %1210  ;;  %v1425_v31 = vsel %vm493_vm3, %v5747_v2, 0.0 }
 0x4ae   :  { %v5752_v6 = vpop.eup %4792  ;;  %4802 = vpow2.f32 %v1330_v54  ;;  %v1332_v1 = vmul.f32 1.442695, %v1258_v25  ;;  %v1259_v4 = vsub.f32 %v5569_v7, %v1211_v30  ;;  %1426 = vadd.xlane.f32.xlu1 %v1425_v31 }
 0x4af   :  { %v1214_v41 = vpop.xlane.xlu0 %1213  ;;  %v1428_v9 = vsel %vm493_vm3, %v5752_v6, 0.0 }
 0x4b0   :  { %v5757_v24 = vpop.eup %4794  ;;  %4804 = vpow2.f32 %v1332_v1  ;;  %v1334_v63 = vmul.f32 1.442695, %v1259_v4  ;;  %v1260_v52 = vsub.f32 %v5584_v28, %v1214_v41  ;;  %1429 = vadd.xlane.f32.xlu0 %v1428_v9 }
 0x4b1   :  { %v1217_v8 = vpop.xlane.xlu1 %1216  ;;  %v1431_v53 = vsel %vm493_vm3, %v5757_v24, 0.0 }
 0x4b2   :  { %v5762_v33 = vpop.eup %4796  ;;  %4806 = vpow2.f32 %v1334_v63  ;;  %v1336_v7 = vmul.f32 1.442695, %v1260_v52  ;;  %v1261_v57 = vsub.f32 %v5593_v47, %v1217_v8  ;;  %1432 = vadd.xlane.f32.xlu1 %v1431_v53 }
 0x4b3   :  { %v1220_v59 = vpop.xlane.xlu0 %1219  ;;  %v1434_v21 = vsel %vm493_vm3, %v5762_v33, 0.0 }
 0x4b4   :  { %v5767_v32 = vpop.eup %4798  ;;  %4808 = vpow2.f32 %v1336_v7  ;;  %v1338_v28 = vmul.f32 1.442695, %v1261_v57  ;;  %v1262_v5 = vsub.f32 %v5591_v42, %v1220_v59  ;;  %1435 = vadd.xlane.f32.xlu0 %v1434_v21 }
 0x4b5   :  { %v1223_v10 = vpop.xlane.xlu1 %1222  ;;  %v1437_v26 = vsel %vm493_vm3, %v5767_v32, 0.0 }
 0x4b6   :  { %v5772_v39 = vpop.eup %4800  ;;  %4810 = vpow2.f32 %v1338_v28  ;;  %v1340_v47 = vmul.f32 1.442695, %v1262_v5  ;;  %v1263_v29 = vsub.f32 %v5597_v51, %v1223_v10  ;;  %1438 = vadd.xlane.f32.xlu1 %v1437_v26 }
 0x4b7   :  { %v1440_v16 = vsel %vm493_vm3, %v5772_v39, 0.0 }
 0x4b8   :  { %v5777_v17 = vpop.eup %4802  ;;  %4812 = vpow2.f32 %v1340_v47  ;;  %v1342_v54 = vmul.f32 1.442695, %v1263_v29  ;;  %1441 = vadd.xlane.f32.xlu0 %v1440_v16 }
 0x4b9   :  { %v1443_v42 = vsel %vm493_vm3, %v5777_v17, 0.0 }
 0x4ba   :  { %v5781_v25 = vpop.eup %4804  ;;  %4814 = vpow2.f32 %v1342_v54  ;;  %1444 = vadd.xlane.f32.xlu1 %v1443_v42 }
 0x4bb   :  { %v1446_v30 = vsel %vm493_vm3, %v5781_v25, 0.0 }
 0x4bc   :  { %v5785_v51 = vpop.eup %4806  ;;  %1447 = vadd.xlane.f32.xlu0 %v1446_v30 }
 0x4bd   :  { %v1449_v31 = vsel %vm493_vm3, %v5785_v51, 0.0 }
 0x4be   :  { %v5789_v1 = vpop.eup %4808  ;;  %1450 = vadd.xlane.f32.xlu1 %v1449_v31 }
 0x4bf   :  { %v1452_v4 = vsel %vm493_vm3, %v5789_v1, 0.0 }
 0x4c0   :  { %v5793_v41 = vpop.eup %4810  ;;  %1453 = vadd.xlane.f32.xlu0 %v1452_v4 }
 0x4c1   :  { %v1455_v9 = vsel %vm493_vm3, %v5793_v41, 0.0 }
 0x4c2   :  { %v5797_v63 = vpop.eup %4812  ;;  %1456 = vadd.xlane.f32.xlu1 %v1455_v9 }
 0x4c3   :  { %v1458_v52 = vsel %vm493_vm3, %v5797_v63, 0.0 }
 0x4c4   :  { %v5801_v8 = vpop.eup %4814  ;;  %1459 = vadd.xlane.f32.xlu0 %v1458_v52 }
 0x4c5   :  { %v1461_v53 = vsel %vm493_vm3, %v5801_v8, 0.0 }
 0x4c6   :  { %1462 = vadd.xlane.f32.xlu1 %v1461_v53 }
 0x505   :  { %v1346_v7 = vpop.xlane.xlu0 %1345 }
 0x506   :  { %4816 = vrcp.f32 %v1346_v7 }
 0x507   :  { %v1349_v57 = vpop.xlane.xlu1 %1348 }
 0x508   :  { %4818 = vrcp.f32 %v1349_v57 }
 0x509   :  { %v1352_v59 = vpop.xlane.xlu0 %1351 }
 0x50a   :  { %4820 = vrcp.f32 %v1352_v59 }
 0x50b   :  { %v1355_v21 = vpop.xlane.xlu1 %1354 }
 0x50c   :  { %4822 = vrcp.f32 %v1355_v21 }
 0x50d   :  { %v1358_v28 = vpop.xlane.xlu0 %1357 }
 0x50e   :  { %4824 = vrcp.f32 %v1358_v28 }
 0x50f   :  { %v1361_v5 = vpop.xlane.xlu1 %1360 }
 0x510   :  { %v4817_v10 = vpop.eup %4816  ;;  %4826 = vrcp.f32 %v1361_v5 }
 0x511   :  { %v1364_v26 = vpop.xlane.xlu0 %1363  ;;  %v1504_v16 = vmul.f32 %v4817_v10, %v5612_v55 }
 0x512   :  { %v4819_v47 = vpop.eup %4818  ;;  %4828 = vrcp.f32 %v1364_v26 }
 0x513   :  { %v1367_v29 = vpop.xlane.xlu1 %1366  ;;  %v1505_v54 = vmul.f32 %v4819_v47, %v5617_v60 }
 0x514   :  { %v4821_v42 = vpop.eup %4820  ;;  %4830 = vrcp.f32 %v1367_v29 }
 0x515   :  { %v1370_v30 = vpop.xlane.xlu0 %1369  ;;  %v1544_v31 = vpack.c.bf16 %v1505_v54, %v1504_v16  ;;  %v1506_v9 = vmul.f32 %v4821_v42, %v5622_v13 }
 0x516   :  { %v4823_v4 = vpop.eup %4822  ;;  %4832 = vrcp.f32 %v1370_v30 }
 0x517   :  { %v1507_v52 = vmul.f32 %v4823_v4, %v5627_v22  ;;  %v1373_v53 = vpop.xlane.xlu1 %1372  ;;  %4314 = vmatprep.mubr.msk.bf16.mxu0 %vm493_vm3, %v1544_v31 }
 0x518   :  { %v4825_v7 = vpop.eup %4824  ;;  %4834 = vrcp.f32 %v1373_v53 }
 0x519   :  { %v1545_v57 = vpack.c.bf16 %v1507_v52, %v1506_v9  ;;  %v1376_v59 = vpop.xlane.xlu0 %1375  ;;  %v1508_v21 = vmul.f32 %v4825_v7, %v5632_v37 }
 0x51a   :  { %v4827_v55 = vpop.eup %4826  ;;  %4836 = vrcp.f32 %v1376_v59 }
 0x51b   :  { %v1379_v60 = vpop.xlane.xlu1 %1378  ;;  %4315 = vmatmul.mubr.msk.bf16.vlgmr.msra.gmra.mrb[40].mxu0 %vm493_vm3, %v1545_v57  ;;  %v1509_v28 = vmul.f32 %v4827_v55, %v5637_v50 }
 0x51c   :  { %v4829_v5 = vpop.eup %4828  ;;  %4838 = vrcp.f32 %v1379_v60 }
 0x51d   :  { %v1382_v13 = vpop.xlane.xlu0 %1381  ;;  %v1546_v22 = vpack.c.bf16 %v1509_v28, %v1508_v21  ;;  %v1510_v47 = vmul.f32 %v4829_v5, %v5642_v11 }
 0x51e   :  { %v4831_v10 = vpop.eup %4830  ;;  %4840 = vrcp.f32 %v1382_v13 }
 0x51f   :  { %v1385_v26 = vpop.xlane.xlu1 %1384  ;;  %4318 = vmatprep.mubr.msk.bf16.mxu0 %vm493_vm3, %v1546_v22  ;;  %v1511_v29 = vmul.f32 %v4831_v10, %v5647_v27 }
 0x520   :  { %v4833_v16 = vpop.eup %4832  ;;  %4842 = vrcp.f32 %v1385_v26 }
 0x521   :  { %v1388_v54 = vpop.xlane.xlu0 %1387  ;;  %v1547_v42 = vpack.c.bf16 %v1511_v29, %v1510_v47  ;;  %v1512_v30 = vmul.f32 %v4833_v16, %v5652_v14 }
 0x522   :  { %v4835_v37 = vpop.eup %4834  ;;  %4844 = vrcp.f32 %v1388_v54 }
 0x523   :  { %v1391_v50 = vpop.xlane.xlu1 %1390  ;;  %4319 = vmatmul.mubr.msk.bf16.gmra.mrb[44].mxu0 %vm493_vm3, %v1547_v42  ;;  %v1513_v31 = vmul.f32 %v4835_v37, %v5657_v40 }
 0x524   :  { %v4837_v4 = vpop.eup %4836  ;;  %4846 = vrcp.f32 %v1391_v50 }
 0x525   :  { %v1394_v9 = vpop.xlane.xlu0 %1393  ;;  %v1548_v52 = vpack.c.bf16 %v1513_v31, %v1512_v30  ;;  %v1514_v53 = vmul.f32 %v4837_v4, %v5662_v46 }
 0x526   :  { %v4839_v11 = vpop.eup %4838  ;;  %4848 = vrcp.f32 %v1394_v9 }
 0x527   :  { %v1397_v27 = vpop.xlane.xlu1 %1396  ;;  %4322 = vmatprep.mubr.msk.bf16.mxu0 %vm493_vm3, %v1548_v52  ;;  %v1515_v7 = vmul.f32 %v4839_v11, %v5667_v45 }
 0x528   :  { %v4841_v57 = vpop.eup %4840  ;;  %4850 = vrcp.f32 %v1397_v27 }
 0x529   :  { %v1400_v59 = vpop.xlane.xlu0 %1399  ;;  %v1549_v55 = vpack.c.bf16 %v1515_v7, %v1514_v53  ;;  %v1516_v60 = vmul.f32 %v4841_v57, %v5672_v48 }
 0x52a   :  { %v4843_v14 = vpop.eup %4842  ;;  %4852 = vrcp.f32 %v1400_v59 }
 0x52b   :  { %v1403_v40 = vpop.xlane.xlu1 %1402  ;;  %4323 = vmatmul.mubr.msk.bf16.gmra.mrb[48].mxu0 %vm493_vm3, %v1549_v55  ;;  %v1517_v21 = vmul.f32 %v4843_v14, %v5677_v56 }
 0x52c   :  { %v4845_v28 = vpop.eup %4844  ;;  %4854 = vrcp.f32 %v1403_v40 }
 0x52d   :  { %v1406_v5 = vpop.xlane.xlu0 %1405  ;;  %v1550_v13 = vpack.c.bf16 %v1517_v21, %v1516_v60  ;;  %v1518_v22 = vmul.f32 %v4845_v28, %v5682_v62 }
 0x52e   :  { %v4847_v46 = vpop.eup %4846  ;;  %4856 = vrcp.f32 %v1406_v5 }
 0x52f   :  { %v1409_v45 = vpop.xlane.xlu1 %1408  ;;  %4326 = vmatprep.mubr.msk.bf16.mxu0 %vm493_vm3, %v1550_v13  ;;  %v1519_v10 = vmul.f32 %v4847_v46, %v5687_v61 }
 0x530   :  { %v4849_v26 = vpop.eup %4848  ;;  %4858 = vrcp.f32 %v1409_v45 }
 0x531   :  { %v1412_v47 = vpop.xlane.xlu0 %1411  ;;  %v1551_v29 = vpack.c.bf16 %v1519_v10, %v1518_v22  ;;  %v1520_v16 = vmul.f32 %v4849_v26, %v5692_v0 }
 0x532   :  { %v4851_v48 = vpop.eup %4850  ;;  %4860 = vrcp.f32 %v1412_v47 }
 0x533   :  { %v1415_v56 = vpop.xlane.xlu1 %1414  ;;  %4327 = vmatmul.mubr.msk.bf16.gmra.mrb[52].mxu0 %vm493_vm3, %v1551_v29  ;;  %v1521_v54 = vmul.f32 %v4851_v48, %v5697_v12 }
 0x534   :  { %v4853_v42 = vpop.eup %4852  ;;  %4862 = vrcp.f32 %v1415_v56 }
 0x535   :  { %v1418_v37 = vpop.xlane.xlu0 %1417  ;;  %v1552_v50 = vpack.c.bf16 %v1521_v54, %v1520_v16  ;;  %v1522_v30 = vmul.f32 %v4853_v42, %v5702_v20 }
 0x536   :  { %v4855_v62 = vpop.eup %4854  ;;  %4864 = vrcp.f32 %v1418_v37 }
 0x537   :  { %v1421_v61 = vpop.xlane.xlu1 %1420  ;;  %4330 = vmatprep.mubr.msk.bf16.mxu0 %vm493_vm3, %v1552_v50  ;;  %v1523_v31 = vmul.f32 %v4855_v62, %v5707_v18 }
 0x538   :  { %v4857_v4 = vpop.eup %4856  ;;  %4866 = vrcp.f32 %v1421_v61 }
 0x539   :  { %v1424_v9 = vpop.xlane.xlu0 %1423  ;;  %v1553_v52 = vpack.c.bf16 %v1523_v31, %v1522_v30  ;;  %v1524_v11 = vmul.f32 %v4857_v4, %v5712_v23 }
 0x53a   :  { %v4859_v0 = vpop.eup %4858  ;;  %4868 = vrcp.f32 %v1424_v9 }
 0x53b   :  { %v1427_v12 = vpop.xlane.xlu1 %1426  ;;  %4331 = vmatmul.mubr.msk.bf16.gmra.mrb[56].mxu0 %vm493_vm3, %v1553_v52  ;;  %v1525_v27 = vmul.f32 %v4859_v0, %v5717_v34 }
 0x53c   :  { %v4861_v53 = vpop.eup %4860  ;;  %4870 = vrcp.f32 %v1427_v12 }
 0x53d   :  { %v1430_v7 = vpop.xlane.xlu0 %1429  ;;  %v1554_v57 = vpack.c.bf16 %v1525_v27, %v1524_v11  ;;  %v1526_v59 = vmul.f32 %v4861_v53, %v5722_v44 }
 0x53e   :  { %v4863_v20 = vpop.eup %4862  ;;  %4872 = vrcp.f32 %v1430_v7 }
 0x53f   :  { %v1433_v18 = vpop.xlane.xlu1 %1432  ;;  %4334 = vmatprep.mubr.msk.bf16.mxu0 %vm493_vm3, %v1554_v57  ;;  %v1527_v55 = vmul.f32 %v4863_v20, %v5727_v43 }
 0x540   :  { %v4865_v14 = vpop.eup %4864  ;;  %4874 = vrcp.f32 %v1433_v18 }
 0x541   :  { %v1436_v40 = vpop.xlane.xlu0 %1435  ;;  %v1555_v60 = vpack.c.bf16 %v1527_v55, %v1526_v59  ;;  %v1528_v21 = vmul.f32 %v4865_v14, %v5732_v49 }
 0x542   :  { %v4867_v23 = vpop.eup %4866  ;;  %4876 = vrcp.f32 %v1436_v40 }
 0x543   :  { %v1439_v34 = vpop.xlane.xlu1 %1438  ;;  %4335 = vmatmul.mubr.msk.bf16.gmra.mrb[60].mxu0 %vm493_vm3, %v1555_v60  ;;  %v1529_v28 = vmul.f32 %v4867_v23, %v5737_v58 }
 0x544   :  { %v4869_v5 = vpop.eup %4868  ;;  %4878 = vrcp.f32 %v1439_v34 }
 0x545   :  { %v1442_v13 = vpop.xlane.xlu0 %1441  ;;  %v1556_v46 = vpack.c.bf16 %v1529_v28, %v1528_v21  ;;  %v1530_v45 = vmul.f32 %v4869_v5, %v5742_v3 }
 0x546   :  { %v4871_v44 = vpop.eup %4870  ;;  %4880 = vrcp.f32 %v1442_v13 }
 0x547   :  { %v1445_v43 = vpop.xlane.xlu1 %1444  ;;  %4338 = vmatprep.mubr.msk.bf16.mxu0 %vm493_vm3, %v1556_v46  ;;  %v1531_v22 = vmul.f32 %v4871_v44, %v5747_v2 }
 0x548   :  { %v4873_v10 = vpop.eup %4872  ;;  %4882 = vrcp.f32 %v1445_v43 }
 0x549   :  { %v1448_v26 = vpop.xlane.xlu0 %1447  ;;  %v1557_v47 = vpack.c.bf16 %v1531_v22, %v1530_v45  ;;  %v1532_v29 = vmul.f32 %v4873_v10, %v5752_v6 }
 0x54a   :  { %v4875_v49 = vpop.eup %4874  ;;  %4884 = vrcp.f32 %v1448_v26 }
 0x54b   :  { %v1451_v58 = vpop.xlane.xlu1 %1450  ;;  %4339 = vmatmul.mubr.msk.bf16.gmra.mrb[64].mxu0 %vm493_vm3, %v1557_v47  ;;  %v1533_v48 = vmul.f32 %v4875_v49, %v5757_v24 }
 0x54c   :  { %v4877_v56 = vpop.eup %4876  ;;  %4886 = vrcp.f32 %v1451_v58 }
 0x54d   :  { %v1454_v16 = vpop.xlane.xlu0 %1453  ;;  %v1558_v54 = vpack.c.bf16 %v1533_v48, %v1532_v29  ;;  %v1534_v42 = vmul.f32 %v4877_v56, %v5762_v33 }
 0x54e   :  { %v4879_v3 = vpop.eup %4878  ;;  %4888 = vrcp.f32 %v1454_v16 }
 0x54f   :  { %v1457_v2 = vpop.xlane.xlu1 %1456  ;;  %4342 = vmatprep.mubr.msk.bf16.mxu0 %vm493_vm3, %v1558_v54  ;;  %v1535_v37 = vmul.f32 %v4879_v3, %v5767_v32  ;;  %v4960_v54 = vld [vmem:[%s6596_s12 + $0x40] sm:$0xff]  }
 0x550   :  { %v4881_v50 = vpop.eup %4880  ;;  %4890 = vrcp.f32 %v1457_v2  ;;  %v4961_v2 = vld [vmem:[%s6596_s12] sm:$0xff]  }
 0x551   :  { %v1460_v62 = vpop.xlane.xlu0 %1459  ;;  %v1559_v61 = vpack.c.bf16 %v1535_v37, %v1534_v42  ;;  %v1536_v30 = vmul.f32 %v4881_v50, %v5772_v39  ;;  %v4962_v37 = vld [vmem:[%s6596_s12 + $0x48] sm:$0xff]  }
 0x552   :  { %v4883_v6 = vpop.eup %4882  ;;  %4892 = vrcp.f32 %v1460_v62 }
 0x553   :  { %v1463_v24 = vpop.xlane.xlu1 %1462  ;;  %4343 = vmatmul.mubr.msk.bf16.gmra.mrb[68].mxu0 %vm493_vm3, %v1559_v61  ;;  %v1537_v31 = vmul.f32 %v4883_v6, %v5777_v17 }
 0x554   :  { %v4885_v4 = vpop.eup %4884  ;;  %4894 = vrcp.f32 %v1463_v24  ;;  %v4963_v24 = vld [vmem:[%s6596_s12 + $0x8] sm:$0xff]  }
 0x555   :  { %v1560_v9 = vpack.c.bf16 %v1537_v31, %v1536_v30  ;;  %v1538_v33 = vmul.f32 %v4885_v4, %v5781_v25 }
 0x556   :  { %v4887_v52 = vpop.eup %4886 }
 0x557   :  { %4346 = vmatprep.mubr.msk.bf16.mxu0 %vm493_vm3, %v1560_v9  ;;  %v1539_v32 = vmul.f32 %v4887_v52, %v5785_v51  ;;  %v4648_v51 = vld [vmem:[%s6598_s0 + $0x4] ss:$12 sps:$4 sm:$0x1f]  }
 0x558   :  { %v4889_v0 = vpop.eup %4888  ;;  %1911 = vmatprep.mubr.bf16.mxu1 %v4648_v51  ;;  %v4964_v52 = vld [vmem:[%s6596_s12 + $0x50] sm:$0xff]   ;;  %v4968_v51 = vld [vmem:[%s6596_s12 + $0x60] sm:$0xff]  }
 0x559   :  { %v1561_v12 = vpack.c.bf16 %v1539_v32, %v1538_v33  ;;  %v1540_v27 = vmul.f32 %v4889_v0, %v5789_v1  ;;  %v4965_v32 = vld [vmem:[%s6596_s12 + $0x10] sm:$0xff]  }
 0x55a   :  { %v4891_v11 = vpop.eup %4890 }
 0x55b   :  { %4347 = vmatmul.mubr.msk.bf16.gmra.mrb[72].mxu0 %vm493_vm3, %v1561_v12  ;;  %v1541_v39 = vmul.f32 %v4891_v11, %v5793_v41  ;;  %v4966_v12 = vld [vmem:[%s6596_s12 + $0x58] sm:$0xff]  }
 0x55c   :  { %v4893_v17 = vpop.eup %4892 }
 0x55d   :  { %v1562_v53 = vpack.c.bf16 %v1541_v39, %v1540_v27  ;;  %v1542_v57 = vmul.f32 %v4893_v17, %v5797_v63 }
 0x55e   :  { %v4895_v7 = vpop.eup %4894 }
 0x55f   :  { %4350 = vmatprep.mubr.msk.bf16.mxu0 %vm493_vm3, %v1562_v53  ;;  %v1543_v25 = vmul.f32 %v4895_v7, %v5801_v8  ;;  %v4967_v53 = vld [vmem:[%s6596_s12 + $0x18] sm:$0xff]  }
 0x561   :  { %v1563_v20 = vpack.c.bf16 %v1543_v25, %v1542_v57 }
 0x563   :  { %4351 = vmatmul.mubr.msk.bf16.gmra.mrb[76].mxu0 %vm493_vm3, %v1563_v20 }
 0x564   :  { %4402 = vmatprep.mubr.msk.bf16.mxu0 %vm4984_vm2, %v4983_v19 }
 0x5ee   :  { %v4316_v1 = vpop.f32.mrb[40].mxu0 }
 0x5ef   :  { %v1661_v41 = vpop.f32.mrb[41].mxu0 }
 0x5f0   :  { %v4317_v18 = vpop.f32.mrb[42].mxu0 }
 0x5f1   :  { %v1821_v59 = vpack.c.bf16 %v4317_v18, %v4316_v1  ;;  %v1664_v55 = vpop.f32.mrb[43].mxu0 }
 0x5f2   :  { %v1820_v14 = vpack.c.bf16 %v1664_v55, %v1661_v41  ;;  %v4969_v41 = vld [vmem:[%s6596_s12 + $0x20] sm:$0xff]  }
 0x5f3   :  { %v1841_v30 = vmul.bf16 %v4963_v24, %v1821_v59  ;;  %v4970_v59 = vld [vmem:[%s6596_s12 + $0x68] sm:$0xff]  }
 0x5f4   :  { %v1840_v42 = vmul.bf16 %v4961_v2, %v1820_v14 }
 0x5f6   :  { %v4320_v63 = vpop.f32.mrb[44].mxu0 }
 0x5f7   :  { %v1677_v40 = vpop.f32.mrb[45].mxu0 }
 0x5f8   :  { %v4321_v8 = vpop.f32.mrb[46].mxu0 }
 0x5f9   :  { %v1823_v60 = vpack.c.bf16 %v4321_v8, %v4320_v63  ;;  %v1680_v23 = vpop.f32.mrb[47].mxu0  ;;  %v4971_v8 = vld [vmem:[%s6596_s12 + $0x28] sm:$0xff]  }
 0x5fa   :  { %v1822_v34 = vpack.c.bf16 %v1680_v23, %v1677_v40 }
 0x5fb   :  { %v1843_v7 = vmul.bf16 %v4967_v53, %v1823_v60  ;;  %v4658_v53 = vld [vmem:[%s6600_s15] sm:$0xff]  }
 0x5fc   :  { %v1842_v0 = vmul.bf16 %v4965_v32, %v1822_v34  ;;  %v4653_v32 = vld [vmem:[%s6599_s5 + $0x18] sm:$0xff]   ;;  %4387 = vmatpush3.bf16.msra.mxu0 %v4658_v53 }
 0x5fd   :  { %4388 = vmatprep.subr.bf16.mxu0 %v4983_v19 }
 0x5fe   :  { %v5870_v21 = vpop.f32.mrb[48].mxu0 }
 0x5ff   :  { %v1693_v28 = vpop.f32.mrb[49].mxu0 }
 0x600   :  { %v5872_v5 = vpop.f32.mrb[50].mxu0 }
 0x601   :  { %v1825_v13 = vpack.c.bf16 %v5872_v5, %v5870_v21  ;;  %v1696_v46 = vpop.f32.mrb[51].mxu0  ;;  %v4974_v21 = vld [vmem:[%s6596_s12 + $0x78] sm:$0xff]  }
 0x602   :  { %v1824_v44 = vpack.c.bf16 %v1696_v46, %v1693_v28  ;;  %v4972_v46 = vld [vmem:[%s6596_s12 + $0x70] sm:$0xff]  }
 0x603   :  { %v1845_v60 = vmul.bf16 %v4971_v8, %v1825_v13 }
 0x604   :  { %v1844_v18 = vmul.bf16 %v4969_v41, %v1824_v44 }
 0x606   :  { %v5876_v43 = vpop.f32.mrb[52].mxu0 }
 0x607   :  { %v5878_v45 = vpop.f32.mrb[53].mxu0 }
 0x608   :  { %v5880_v22 = vpop.f32.mrb[54].mxu0 }
 0x609   :  { %v1827_v10 = vpack.c.bf16 %v5880_v22, %v5876_v43  ;;  %v5884_v26 = vpop.f32.mrb[55].mxu0  ;;  %v4977_v22 = vld [vmem:[%s6596_s12 + $0x88] sm:$0xff]  }
 0x60a   :  { %v1826_v47 = vpack.c.bf16 %v5884_v26, %v5878_v45 }
 0x60e   :  { %v4332_v49 = vpop.f32.mrb[56].mxu0 }
 0x60f   :  { %v1725_v58 = vpop.f32.mrb[57].mxu0 }
 0x610   :  { %v4333_v29 = vpop.f32.mrb[58].mxu0 }
 0x611   :  { %v1829_v48 = vpack.c.bf16 %v4333_v29, %v4332_v49  ;;  %v1728_v56 = vpop.f32.mrb[59].mxu0  ;;  %v4973_v49 = vld [vmem:[%s6596_s12 + $0x30] sm:$0xff]  }
 0x612   :  { %v1828_v16 = vpack.c.bf16 %v1728_v56, %v1725_v58  ;;  %v1846_v58 = vmul.bf16 %v4973_v49, %v1826_v47  ;;  %v4975_v56 = vld [vmem:[%s6596_s12 + $0x38] sm:$0xff]   ;;  %v4668_v49 = vld [vmem:[%s6601_s8 + $0x4] ss:$8 sps:$4 sm:$0xff]  }
 0x613   :  { %v1849_v50 = vmul.bf16 %v4962_v37, %v1829_v48  ;;  %v1847_v45 = vmul.bf16 %v4975_v56, %v1827_v10 }
 0x614   :  { %v1848_v3 = vmul.bf16 %v4960_v54, %v1828_v16  ;;  %v4646_v54 = vld [vmem:[%s6598_s0] ss:$12 sps:$4 sm:$0x1f]  }
 0x616   :  { %v4336_v62 = vpop.f32.mrb[60].mxu0  ;;  %4096 = vmatprep.subr.bf16.mxu1 %v1848_v3  ;;  %v4976_v3 = vld [vmem:[%s6596_s12 + $0x80] sm:$0xff]  }
 0x617   :  { %v1741_v61 = vpop.f32.mrb[61].mxu0  ;;  %4097 = vmatpush3.bf16.msra.mxu1 %v1840_v42 }
 0x618   :  { %v4337_v6 = vpop.f32.mrb[62].mxu0  ;;  %4098 = vmatprep.subr.bf16.mxu1 %v1849_v50 }
 0x619   :  { %v1831_v31 = vpack.c.bf16 %v4337_v6, %v4336_v62  ;;  %v1744_v4 = vpop.f32.mrb[63].mxu0  ;;  %v4978_v6 = vld [vmem:[%s6596_s12 + $0x90] sm:$0xff]  }
 0x61a   :  { %v1830_v9 = vpack.c.bf16 %v1744_v4, %v1741_v61  ;;  %v4649_v4 = vld [vmem:[%s6598_s0 + $0x8] ss:$12 sps:$4 sm:$0x1f]   ;;  %s4985_s0 = smov 32  }
 0x61b   :  { %4099 = vmatpush3.bf16.msra.mxu1 %v1841_v30  ;;  %v1851_v11 = vmul.bf16 %v4966_v12, %v1831_v31  ;;  %v4979_v30 = vld [vmem:[%s6596_s12 + $0x98] sm:$0xff]   ;;  %v4655_v12 = vld [vmem:[%s6599_s5 + $0x28] sm:$0xff]  }
 0x61c   :  { %v1850_v33 = vmul.bf16 %v4964_v52, %v1830_v9  ;;  %v4650_v9 = vld [vmem:[%s6599_s5] sm:$0xff]   ;;  %v4651_v52 = vld [vmem:[%s6599_s5 + $0x8] sm:$0xff]  }
 0x61e   :  { %v4340_v27 = vpop.f32.mrb[64].mxu0  ;;  %4100 = vmatprep.subr.bf16.mxu1 %v1850_v33  ;;  %v4652_v33 = vld [vmem:[%s6599_s5 + $0x10] sm:$0xff]  }
 0x61f   :  { %v1757_v39 = vpop.f32.mrb[65].mxu0  ;;  %4101 = vmatpush3.bf16.msra.mxu1 %v1842_v0  ;;  %v4654_v0 = vld [vmem:[%s6599_s5 + $0x20] sm:$0xff]  }
 0x620   :  { %v4341_v17 = vpop.f32.mrb[66].mxu0  ;;  %4102 = vmatprep.subr.bf16.mxu1 %v1851_v11  ;;  %v4656_v11 = vld [vmem:[%s6599_s5 + $0x30] sm:$0xff]  }
 0x621   :  { %v1833_v57 = vpack.c.bf16 %v4341_v17, %v4340_v27  ;;  %v1760_v25 = vpop.f32.mrb[67].mxu0  ;;  %v4657_v27 = vld [vmem:[%s6599_s5 + $0x38] sm:$0xff]   ;;  %v6015_v17 = vld [vmem:[%s6592_s14] sm:$0xff] }
 0x622   :  { %v1832_v20 = vpack.c.bf16 %v1760_v25, %v1757_v39  ;;  %v6008_v39 = vld [vmem:[%s6592_s14 + $0x8] sm:$0x3]  ;;  %2076 = vrot.lane.b32.xlu0 %v6015_v17, %s4985_s0  ;;  %v4661_v25 = vld [vmem:[%s6600_s15 + $0x18] sm:$0xff]  }
 0x623   :  { %4103 = vmatpush3.bf16.msra.mxu1 %v1843_v7  ;;  %v1853_v55 = vmul.bf16 %v4970_v59, %v1833_v57  ;;  %2078 = vrot.lane.b32.xlu1 %v6008_v39, %s4985_s0  ;;  %v4659_v7 = vld [vmem:[%s6600_s15 + $0x8] sm:$0xff]   ;;  %v4660_v57 = vld [vmem:[%s6600_s15 + $0x10] sm:$0xff]  }
 0x624   :  { %v1852_v1 = vmul.bf16 %v4968_v51, %v1832_v20  ;;  %4389 = vmatpush3.bf16.msra.mxu0 %v4659_v7  ;;  %v4662_v20 = vld [vmem:[%s6600_s15 + $0x20] sm:$0xff]   ;;  %v4663_v51 = vld [vmem:[%s6600_s15 + $0x28] sm:$0xff]  }
 0x625   :  { %4390 = vmatprep.subr.bf16.mxu0 %v4983_v19 }
 0x626   :  { %v4344_v14 = vpop.f32.mrb[68].mxu0  ;;  %4104 = vmatprep.subr.bf16.mxu1 %v1852_v1  ;;  %2088 = vrot.lane.b32.xlu0 %v6015_v17, %s4987_s30 }
 0x627   :  { %v1773_v63 = vpop.f32.mrb[69].mxu0  ;;  %4105 = vmatpush3.bf16.msra.mxu1 %v1844_v18  ;;  %2082 = vrot.lane.b32.xlu1 %v6015_v17, %s4986_s13 }
 0x628   :  { %v4345_v40 = vpop.f32.mrb[70].mxu0  ;;  %4106 = vmatprep.subr.bf16.mxu1 %v1853_v55  ;;  %4391 = vmatpush3.bf16.msra.mxu0 %v4660_v57 }
 0x629   :  { %v1835_v23 = vpack.c.bf16 %v4345_v40, %v4344_v14  ;;  %v1776_v34 = vpop.f32.mrb[71].mxu0  ;;  %4392 = vmatprep.subr.bf16.mxu0 %v4983_v19 }
 0x62a   :  { %v1834_v28 = vpack.c.bf16 %v1776_v34, %v1773_v63 }
 0x62b   :  { %4107 = vmatpush3.bf16.msra.mxu1 %v1845_v60  ;;  %v1855_v5 = vmul.bf16 %v4974_v21, %v1835_v23  ;;  %2084 = vrot.lane.b32.xlu1 %v6008_v39, %s4986_s13 }
 0x62c   :  { %v1854_v44 = vmul.bf16 %v4972_v46, %v1834_v28  ;;  %4393 = vmatpush3.bf16.msra.mxu0 %v4661_v25  ;;  %v4664_v46 = vld [vmem:[%s6600_s15 + $0x30] sm:$0xff]  }
 0x62d   :  { %4394 = vmatprep.subr.bf16.mxu0 %v4983_v19 }
 0x62e   :  { %v4348_v13 = vpop.f32.mrb[72].mxu0  ;;  %4108 = vmatprep.subr.bf16.mxu1 %v1854_v44  ;;  %v4665_v44 = vld [vmem:[%s6600_s15 + $0x38] sm:$0xff]   ;;  %s6602_s15 = sld [smem:[#allocation12_spill]] }
 0x62f   :  { %v1789_v29 = vpop.f32.mrb[73].mxu0  ;;  %4109 = vmatpush3.bf16.msra.mxu1 %v1846_v58  ;;  %2090 = vrot.lane.b32.xlu1 %v6008_v39, %s4987_s30 }
 0x630   :  { %v4349_v48 = vpop.f32.mrb[74].mxu0  ;;  %4110 = vmatprep.subr.bf16.mxu1 %v1855_v5  ;;  %4395 = vmatpush3.bf16.msra.mxu0 %v4662_v20 }
 0x631   :  { %v1837_v26 = vpack.c.bf16 %v4349_v48, %v4348_v13  ;;  %v1792_v47 = vpop.f32.mrb[75].mxu0  ;;  %4396 = vmatprep.subr.bf16.mxu0 %v4983_v19 }
 0x632   :  { %v1836_v16 = vpack.c.bf16 %v1792_v47, %v1789_v29 }
 0x633   :  { %4111 = vmatpush3.bf16.msra.mxu1 %v1847_v45  ;;  %v1857_v10 = vmul.bf16 %v4977_v22, %v1837_v26 }
 0x634   :  { %v1856_v2 = vmul.bf16 %v4976_v3, %v1836_v16  ;;  %4354 = vmatprep.subr.bf16.mxu1 %v4983_v19  ;;  %4397 = vmatpush3.bf16.msra.mxu0 %v4663_v51  ;;  %v3917_v56 = vld [vmem:[%s6602_s15] ss:$0 sm:$0xff]  ;;  %s6603_s15 = sld [smem:[#allocation13_spill]] }
 0x635   :  { %4398 = vmatprep.subr.bf16.mxu0 %v4983_v19 }
 0x636   :  { %v4352_v42 = vpop.f32.mrb[76].mxu0  ;;  %1912 = vmatmul.mubr.bf16.vlgmr.msra.gmra.mrb[48].mxu1 %v4646_v54 }
 0x637   :  { %v1805_v37 = vpop.f32.mrb[77].mxu0  ;;  %4355 = vmatpush3.bf16.msra.mxu1 %v1856_v2  ;;  %4362 = vmatprep.mubr.msk.bf16.mxu1 %vm4984_vm2, %v4983_v19 }
 0x638   :  { %v4353_v43 = vpop.f32.mrb[78].mxu0  ;;  %4356 = vmatprep.subr.bf16.mxu1 %v4983_v19  ;;  %4399 = vmatpush3.bf16.msra.mxu0 %v4664_v46 }
 0x639   :  { %v1839_v50 = vpack.c.bf16 %v4353_v43, %v4352_v42  ;;  %v1808_v62 = vpop.f32.mrb[79].mxu0  ;;  %4400 = vmatprep.subr.bf16.mxu0 %v4983_v19 }
 0x63a   :  { %v1838_v61 = vpack.c.bf16 %v1808_v62, %v1805_v37 }
 0x63b   :  { %4357 = vmatpush3.bf16.msra.mxu1 %v1857_v10  ;;  %v1859_v31 = vmul.bf16 %v4979_v30, %v1839_v50 }
 0x63c   :  { %v1858_v24 = vmul.bf16 %v4978_v6, %v1838_v61  ;;  %4358 = vmatprep.subr.bf16.mxu1 %v4983_v19  ;;  %4401 = vmatpush3.bf16.msra.mxu0 %v4665_v44  ;;  %v4666_v61 = vld [vmem:[%s6601_s8] ss:$8 sps:$4 sm:$0xff]  }
 0x63d   :  { %2376 = vmatprep.subr.bf16.mxu0 %v4668_v49 }
 0x63f   :  { %4359 = vmatpush3.bf16.msra.mxu1 %v1858_v24 }
 0x640   :  { %4360 = vmatprep.subr.bf16.mxu1 %v4983_v19 }
 0x643   :  { %4361 = vmatpush3.bf16.msra.mxu1 %v1859_v31  ;;  %v4671_v31 = vld [vmem:[%s6601_s8 + $0x14] ss:$8 sps:$4 sm:$0xff]  }
 0x644   :  { %4366 = vmatprep.subr.bf16.mxu1 %v4983_v19 }
 0x646   :  { %4363 = vmatmul.mubr.msk.bf16.vlgmr.msra.gmra.mrb[52].mxu1 %vm1875_vm5, %v4649_v4 }
 0x647   :  { %4367 = vmatpush3.bf16.msra.mxu1 %v4650_v9  ;;  %4382 = vmatprep.mubr.msk.bf16.mxu1 %vm4984_vm2, %v4983_v19  ;;  %v4669_v9 = vld [vmem:[%s6601_s8 + $0x10] ss:$8 sps:$4 sm:$0xff]  }
 0x648   :  { %4368 = vmatprep.subr.bf16.mxu1 %v4983_v19 }
 0x64b   :  { %4369 = vmatpush3.bf16.msra.mxu1 %v4651_v52  ;;  %v4674_v52 = vld [vmem:[%s6601_s8 + $0x24] ss:$8 sps:$4 sm:$0xff]  }
 0x64c   :  { %4370 = vmatprep.subr.bf16.mxu1 %v4983_v19 }
 0x64f   :  { %4371 = vmatpush3.bf16.msra.mxu1 %v4652_v33  ;;  %v4672_v33 = vld [vmem:[%s6601_s8 + $0x20] ss:$8 sps:$4 sm:$0xff]  }
 0x650   :  { %4372 = vmatprep.subr.bf16.mxu1 %v4983_v19 }
 0x653   :  { %4373 = vmatpush3.bf16.msra.mxu1 %v4653_v32  ;;  %v4677_v32 = vld [vmem:[%s6601_s8 + $0x34] ss:$8 sps:$4 sm:$0xff]  }
 0x654   :  { %4374 = vmatprep.subr.bf16.mxu1 %v4983_v19 }
 0x657   :  { %4375 = vmatpush3.bf16.msra.mxu1 %v4654_v0  ;;  %v4680_v0 = vld [vmem:[%s6601_s8 + $0x44] ss:$8 sps:$4 sm:$0xff]  }
 0x658   :  { %4376 = vmatprep.subr.bf16.mxu1 %v4983_v19 }
 0x65b   :  { %4377 = vmatpush3.bf16.msra.mxu1 %v4655_v12  ;;  %v4678_v12 = vld [vmem:[%s6601_s8 + $0x40] ss:$8 sps:$4 sm:$0xff]  }
 0x65c   :  { %4378 = vmatprep.subr.bf16.mxu1 %v4983_v19 }
 0x65f   :  { %4379 = vmatpush3.bf16.msra.mxu1 %v4656_v11  ;;  %v4681_v11 = vld [vmem:[%s6601_s8 + $0x50] ss:$8 sps:$4 sm:$0xff]  }
 0x660   :  { %4380 = vmatprep.subr.bf16.mxu1 %v4983_v19 }
 0x663   :  { %4381 = vmatpush3.bf16.msra.mxu1 %v4657_v27  ;;  %v4683_v27 = vld [vmem:[%s6601_s8 + $0x54] ss:$8 sps:$4 sm:$0xff]  }
 0x664   :  { %4406 = vmatprep.subr.bf16.mxu1 %v4983_v19 }
 0x694   :  { %v2077_v5 = vpop.permute.xlu0 %2076 }
 0x695   :  { %v2079_v58 = vpop.permute.xlu1 %2078  ;;  %v2094_v29 = vsel %vm92_vm0, %v6015_v17, %v2077_v5 }
 0x696   :  { %v2095_v48 = vsel %vm92_vm0, %v6008_v39, %v2079_v58 }
 0x698   :  { %v2089_v26 = vpop.permute.xlu0 %2088 }
 0x699   :  { %v2083_v21 = vpop.permute.xlu1 %2082 }
 0x69a   :  { %v2096_v45 = vsel %vm1875_vm5, %v2094_v29, %v2083_v21 }
 0x69b   :  { %v2099_v42 = vsel %vm2098_vm6, %v2096_v45, %v2089_v26 }
 0x69d   :  { %v2085_v13 = vpop.permute.xlu1 %2084 }
 0x69e   :  { %v2097_v16 = vsel %vm1875_vm5, %v2095_v48, %v2085_v13 }
 0x6a1   :  { %v2091_v2 = vpop.permute.xlu1 %2090 }
 0x6a2   :  { %v2100_v50 = vsel %vm2098_vm6, %v2097_v16, %v2091_v2  ;;  %v4695_v16 = vld [vmem:[%s6603_s15 + $0x10] sm:$0xff]   ;;  %v4698_v2 = vld [vmem:[%s6603_s15 + $0x60] sm:$0xff]  }
 0x709   :  { %v4112_v1 = vpop.f32.mrb[48].mxu1 }
 0x70a   :  { %v4113_v41 = vpop.f32.mrb[49].mxu1 }
 0x70b   :  { %v4114_v18 = vadd.f32 %v4113_v41, %v4112_v1  ;;  %v4115_v59 = vpop.f32.mrb[50].mxu1  ;;  %v4692_v1 = vld [vmem:[%s6603_s15 + $0x48] sm:$0xff]  }
 0x70c   :  { %v4116_v55 = vpop.f32.mrb[51].mxu1  ;;  %v4693_v41 = vld [vmem:[%s6603_s15 + $0x8] sm:$0xff]  }
 0x70d   :  { %v4117_v14 = vadd.f32 %v4116_v55, %v4115_v59 }
 0x719   :  { %v1954_v63 = vpop.f32.mrb[52].mxu1 }
 0x71a   :  { %v1955_v40 = vadd.f32 %v4114_v18, %v1954_v63  ;;  %v4364_v8 = vpop.f32.mrb[53].mxu1 }
 0x71b   :  { %v1957_v60 = vpop.f32.mrb[54].mxu1 }
 0x71c   :  { %v1958_v23 = vadd.f32 %v4117_v14, %v1957_v60  ;;  %v4365_v34 = vpop.f32.mrb[55].mxu1 }
 0x71e   :  { %v1977_v28 = vpack.c.bf16 %v1958_v23, %v1955_v40 }
 0x720   :  { %4383 = vmatmul.mubr.bf16.vlgmr.msra.gmra.mrb[56].mxu1 %v1977_v28 }
 0x721   :  { %4407 = vmatpush3.bf16.msra.mxu1 %v4658_v53  ;;  %4422 = vmatprep.mubr.msk.bf16.mxu1 %vm4984_vm2, %v4983_v19  ;;  %v4686_v53 = vld [vmem:[%s6601_s8 + $0x64] ss:$8 sps:$4 sm:$0xff]  }
 0x722   :  { %4408 = vmatprep.subr.bf16.mxu1 %v4983_v19 }
 0x725   :  { %4409 = vmatpush3.bf16.msra.mxu1 %v4659_v7  ;;  %v4684_v7 = vld [vmem:[%s6601_s8 + $0x60] ss:$8 sps:$4 sm:$0xff]  }
 0x726   :  { %4410 = vmatprep.subr.bf16.mxu1 %v4983_v19 }
 0x729   :  { %4411 = vmatpush3.bf16.msra.mxu1 %v4660_v57  ;;  %v4689_v57 = vld [vmem:[%s6601_s8 + $0x74] ss:$8 sps:$4 sm:$0xff]  }
 0x72a   :  { %4412 = vmatprep.subr.bf16.mxu1 %v4983_v19 }
 0x72d   :  { %4413 = vmatpush3.bf16.msra.mxu1 %v4661_v25  ;;  %v4687_v25 = vld [vmem:[%s6601_s8 + $0x70] ss:$8 sps:$4 sm:$0xff]  }
 0x72e   :  { %4414 = vmatprep.subr.bf16.mxu1 %v4983_v19 }
 0x731   :  { %4415 = vmatpush3.bf16.msra.mxu1 %v4662_v20  ;;  %v4690_v20 = vld [vmem:[%s6603_s15 + $0x40] sm:$0xff]  }
 0x732   :  { %4416 = vmatprep.subr.bf16.mxu1 %v4983_v19 }
 0x735   :  { %4417 = vmatpush3.bf16.msra.mxu1 %v4663_v51  ;;  %v4691_v51 = vld [vmem:[%s6603_s15] sm:$0xff]  }
 0x736   :  { %4418 = vmatprep.subr.bf16.mxu1 %v4983_v19 }
 0x739   :  { %4419 = vmatpush3.bf16.msra.mxu1 %v4664_v46 }
 0x73a   :  { %4420 = vmatprep.subr.bf16.mxu1 %v4983_v19 }
 0x73d   :  { %4421 = vmatpush3.bf16.msra.mxu1 %v4665_v44 }
 0x73e   :  { %4150 = vmatprep.subr.bf16.mxu1 %v4690_v20 }
 0x7f3   :  { %v2067_v47 = vpop.f32.mrb[56].mxu1 }
 0x7f4   :  { %v2068_v54 = vadd.f32 %v3917_v56, %v2067_v47  ;;  %v4384_v3 = vpop.f32.mrb[57].mxu1  ;;  %v4694_v47 = vld [vmem:[%s6603_s15 + $0x50] sm:$0xff]  }
 0x7f5   :  { %v2070_v37 = vpop.f32.mrb[58].mxu1  ;;  %v4697_v3 = vld [vmem:[%s6603_s15 + $0x18] sm:$0xff]  }
 0x7f6   :  { %v6079_v43 = vadd.f32 %v2099_v42, %v2068_v54  ;;  %v2071_v22 = vadd.f32 %v3917_v56, %v2070_v37  ;;  %v4385_v10 = vpop.f32.mrb[59].mxu1  ;;  %v4696_v54 = vld [vmem:[%s6603_s15 + $0x58] sm:$0xff]   ;;  %v4699_v42 = vld [vmem:[%s6603_s15 + $0x20] sm:$0xff]   ;;  %v4700_v37 = vld [vmem:[%s6603_s15 + $0x68] sm:$0xff]  }
 0x7f7   :  { %v4702_v10 = vld [vmem:[%s6603_s15 + $0x70] sm:$0xff]  }
 0x7f8   :  { %v6081_v62 = vadd.f32 %v2100_v50, %v2071_v22  ;;  %v2104_v24 = vmul.f32 %v6079_v43, %v6079_v43  ;;  %v4701_v22 = vld [vmem:[%s6603_s15 + $0x28] sm:$0xff]   ;;  %v4703_v50 = vld [vmem:[%s6603_s15 + $0x30] sm:$0xff]  }
 0x7fa   :  { %v2103_v6 = vpack.c.bf16 %v6081_v62, %v6079_v43  ;;  %v2105_v30 = vmul.f32 %v6081_v62, %v6081_v62 }
 0x7fc   :  { %4403 = vmatmul.mubr.bf16.vlgmr.msra.gmra.mrb[80].mxu0 %v2103_v6  ;;  %v2106_v4 = vpack.c.bf16 %v2105_v30, %v2104_v24  ;;  %v4705_v6 = vld [vmem:[%s6603_s15 + $0x38] sm:$0xff]   ;;  %v2284_v24 = vld [vmem:[%s6604_s29] sm:$0x3] }
 0x7fd   :  { %2377 = vmatpush1.bf16.msra.mxu0 %v4666_v61  ;;  %2408 = vmatprep.mubr.bf16.mxu0 %v4982_v15  ;;  %v4675_v15 = vld [vmem:[%s6601_s8 + $0x30] ss:$8 sps:$4 sm:$0xff]   ;;  %v2289_v30 = vrot.slane %v2284_v24, %v134_v36 }
 0x7fe   :  { %4423 = vmatmul.mubr.bf16.vlgmr.msra.gmra.mrb[60].mxu1 %v2106_v4  ;;  %2378 = vmatprep.subr.bf16.mxu0 %v4671_v31  ;;  %v4704_v61 = vld [vmem:[%s6603_s15 + $0x78] sm:$0xff]   ;;  %v2293_v31 = vrot.slane %v2284_v24, %v138_v38 }
 0x7ff   :  { %4151 = vmatpush3.bf16.msra.mxu1 %v4691_v51 }
 0x800   :  { %4152 = vmatprep.subr.bf16.mxu1 %v4692_v1 }
 0x801   :  { %2379 = vmatpush1.bf16.msra.mxu0 %v4669_v9 }
 0x802   :  { %2380 = vmatprep.subr.bf16.mxu0 %v4674_v52 }
 0x803   :  { %4153 = vmatpush3.bf16.msra.mxu1 %v4693_v41 }
 0x804   :  { %4154 = vmatprep.subr.bf16.mxu1 %v4694_v47 }
 0x805   :  { %2381 = vmatpush1.bf16.msra.mxu0 %v4672_v33 }
 0x806   :  { %2382 = vmatprep.subr.bf16.mxu0 %v4677_v32 }
 0x807   :  { %4155 = vmatpush3.bf16.msra.mxu1 %v4695_v16  ;;  %v4707_v16 = vld [vmem:[%s6553_s10 + $0x18] sm:$0x1f]  }
 0x808   :  { %4156 = vmatprep.subr.bf16.mxu1 %v4696_v54 }
 0x809   :  { %2383 = vmatpush1.bf16.msra.mxu0 %v4675_v15 }
 0x80a   :  { %2384 = vmatprep.subr.bf16.mxu0 %v4680_v0 }
 0x80b   :  { %4157 = vmatpush3.bf16.msra.mxu1 %v4697_v3 }
 0x80c   :  { %4158 = vmatprep.subr.bf16.mxu1 %v4698_v2  ;;  %v4709_v2 = vld [vmem:[%s6553_s10 + $0x10] sm:$0x1f]  }
 0x80d   :  { %2385 = vmatpush1.bf16.msra.mxu0 %v4678_v12 }
 0x80e   :  { %2386 = vmatprep.subr.bf16.mxu0 %v4683_v27 }
 0x80f   :  { %4159 = vmatpush3.bf16.msra.mxu1 %v4699_v42 }
 0x810   :  { %4160 = vmatprep.subr.bf16.mxu1 %v4700_v37 }
 0x811   :  { %2387 = vmatpush1.bf16.msra.mxu0 %v4681_v11 }
 0x812   :  { %2388 = vmatprep.subr.bf16.mxu0 %v4686_v53 }
 0x813   :  { %4161 = vmatpush3.bf16.msra.mxu1 %v4701_v22  ;;  %v4710_v22 = vld [vmem:[%s6553_s10 + $0x20] sm:$0x1f]  }
 0x814   :  { %4162 = vmatprep.subr.bf16.mxu1 %v4702_v10  ;;  %v2852_v10 = vld [vmem:[%s6555_s11] sm:$0xff] }
 0x815   :  { %2389 = vmatpush1.bf16.msra.mxu0 %v4684_v7 }
 0x816   :  { %2390 = vmatprep.subr.bf16.mxu0 %v4689_v57 }
 0x817   :  { %4163 = vmatpush3.bf16.msra.mxu1 %v4703_v50 }
 0x818   :  { %4164 = vmatprep.subr.bf16.mxu1 %v4704_v61  ;;  %v2853_v61 = vld [vmem:[%s6555_s11 + $0x8] sm:$0x3] }
 0x819   :  { %2391 = vmatpush1.bf16.msra.mxu0 %v4687_v25 }
 0x81a   :  { %4426 = vmatprep.subr.bf16.mxu0 %v4983_v19 }
 0x81b   :  { %4165 = vmatpush3.bf16.msra.mxu1 %v4705_v6 }
 0x81c   :  { %4456 = vmatprep.subr.bf16.mxu1 %v4983_v19 }
 0x8cf   :  { %v2205_v18 = vpop.f32.mrb[80].mxu0 }
 0x8d0   :  { %v2253_v59 = vmul.f32 %v2205_v18, %v2205_v18  ;;  %v4404_v55 = vpop.f32.mrb[81].mxu0  ;;  %v2259_v5 = vsub.f32 %v6079_v43, %v2205_v18 }
 0x8d1   :  { %v2208_v14 = vpop.f32.mrb[82].mxu0  ;;  %v2246_v63 = vpop.f32.mrb[60].mxu1 }
 0x8d2   :  { %v2254_v40 = vmul.f32 %v2208_v14, %v2208_v14  ;;  %v2255_v8 = vsub.f32 %v2246_v63, %v2253_v59  ;;  %v4405_v60 = vpop.f32.mrb[83].mxu0  ;;  %v4424_v23 = vpop.f32.mrb[61].mxu1  ;;  %v2260_v29 = vsub.f32 %v6081_v62, %v2208_v14 }
 0x8d3   :  { %v2249_v34 = vpop.f32.mrb[62].mxu1 }
 0x8d4   :  { %v2257_v28 = vmax.f32 %v2255_v8, 0.0  ;;  %v2256_v46 = vsub.f32 %v2249_v34, %v2254_v40  ;;  %v4425_v44 = vpop.f32.mrb[63].mxu1 }
 0x8d6   :  { %v2261_v49 = vadd.f32 1e-05, %v2257_v28  ;;  %v2258_v58 = vmax.f32 %v2256_v46, 0.0 }
 0x8d8   :  { %4896 = vrsqrt.f32 %v2261_v49  ;;  %v2262_v21 = vadd.f32 1e-05, %v2258_v58 }
 0x8da   :  { %4898 = vrsqrt.f32 %v2262_v21 }
 0x8e2   :  { %v4897_v13 = vpop.eup %4896 }
 0x8e3   :  { %v2265_v48 = vmul.f32 %v4897_v13, %v2259_v5  ;;  %v3966_v5 = vld [vmem:[%s6554_s9] ss:$0 sm:$0xff] }
 0x8e4   :  { %v4899_v56 = vpop.eup %4898 }
 0x8e5   :  { %v2266_v45 = vmul.f32 %v4899_v56, %v2260_v29 }
 0x8e7   :  { %v2283_v26 = vpack.c.bf16 %v2266_v45, %v2265_v48 }
 0x8e9   :  { %2409 = vmatmul.mubr.bf16.vlgmr.msra.gmra.mrb[84].mxu0 %v2283_v26 }
 0x8ea   :  { %4428 = vmatprep.mubr.msk.bf16.mxu0 %vm4984_vm2, %v4983_v19 }
 0x9bc   :  { %v2410_v4 = vpop.f32.mrb[84].mxu0 }
 0x9bd   :  { %v2411_v9 = vadd.f32 %v2410_v4, %v2289_v30  ;;  %v2412_v52 = vpop.f32.mrb[85].mxu0 }
 0x9be   :  { %v2413_v33 = vadd.f32 %v2412_v52, %v2293_v31  ;;  %v2414_v32 = vpop.f32.mrb[86].mxu0 }
 0x9bf   :  { %v2423_v15 = vmul.f32 0.70710677, %v2411_v9  ;;  %v2415_v0 = vadd.f32 %v2414_v32, %v2289_v30  ;;  %v2416_v12 = vpop.f32.mrb[87].mxu0  ;;  %v2419_v51 = vmul.f32 0.5, %v2411_v9 }
 0x9c0   :  { %v2424_v11 = vmul.f32 0.70710677, %v2413_v33  ;;  %v2417_v27 = vadd.f32 %v2416_v12, %v2293_v31  ;;  %v2420_v18 = vmul.f32 0.5, %v2413_v33 }
 0x9c1   :  { %4900 = verf.f32 %v2423_v15  ;;  %v2425_v53 = vmul.f32 0.70710677, %v2415_v0  ;;  %v2421_v1 = vmul.f32 0.5, %v2415_v0 }
 0x9c2   :  { %4902 = verf.f32 %v2424_v11  ;;  %v2426_v7 = vmul.f32 0.70710677, %v2417_v27  ;;  %v2422_v59 = vmul.f32 0.5, %v2417_v27 }
 0x9c3   :  { %4904 = verf.f32 %v2425_v53 }
 0x9c4   :  { %4906 = verf.f32 %v2426_v7 }
 0x9cb   :  { %v4901_v36 = vpop.eup %4900 }
 0x9cc   :  { %v4903_v57 = vpop.eup %4902  ;;  %v2431_v35 = vadd.f32 1.0, %v4901_v36 }
 0x9cd   :  { %v4905_v38 = vpop.eup %4904  ;;  %v2432_v25 = vadd.f32 1.0, %v4903_v57  ;;  %v4711_v57 = vld [vmem:[%s6556_s16] sm:$0xff]  }
 0x9ce   :  { %v4907_v20 = vpop.eup %4906  ;;  %v2433_v41 = vadd.f32 1.0, %v4905_v38  ;;  %v2435_v14 = vmul.f32 %v2431_v35, %v2419_v51  ;;  %v4712_v35 = vld [vmem:[%s6556_s16 + $0x8] sm:$0xff]  }
 0x9cf   :  { %v2434_v55 = vadd.f32 1.0, %v4907_v20  ;;  %v2436_v40 = vmul.f32 %v2432_v25, %v2420_v18 }
 0x9d0   :  { %v2437_v63 = vmul.f32 %v2433_v41, %v2421_v1 }
 0x9d1   :  { %v2438_v8 = vmul.f32 %v2434_v55, %v2422_v59 }
 0x9d2   :  { %v2471_v60 = vpack.c.bf16 %v2437_v63, %v2435_v14 }
 0x9d3   :  { %v2472_v23 = vpack.c.bf16 %v2438_v8, %v2436_v40  ;;  %v3985_v40 = vld [vmem:[%s6558_s17] ss:$0 sm:$0xff] }
 0x9d5   :  { %2601 = vmatprep.mubr.bf16.mxu1 %v2472_v23 }
 0x9d6   :  { %2602 = vmatmul.mubr.bf16.vlgmr.msra.gmra.mrb[64].mxu1 %v2471_v60 }
 0x9d7   :  { %4460 = vmatprep.mubr.msk.bf16.mxu1 %vm4984_vm2, %v4983_v19  ;;  %4457 = vmatpush3.bf16.msra.mxu1 %v4711_v57 }
 0x9d8   :  { %4458 = vmatprep.subr.bf16.mxu1 %v4983_v19 }
 0x9db   :  { %4459 = vmatpush3.bf16.msra.mxu1 %v4712_v35 }
 0x9dc   :  { %4464 = vmatprep.subr.bf16.mxu1 %v4983_v19 }
 0xaa9   :  { %v4166_v34 = vpop.f32.mrb[64].mxu1 }
 0xaaa   :  { %v4167_v28 = vpop.f32.mrb[65].mxu1 }
 0xaab   :  { %v4168_v46 = vadd.f32 %v4167_v28, %v4166_v34  ;;  %v4169_v44 = vpop.f32.mrb[66].mxu1 }
 0xaac   :  { %v4170_v49 = vpop.f32.mrb[67].mxu1 }
 0xaad   :  { %v2610_v58 = vadd.f32 %v4168_v46, %v6079_v43  ;;  %v4171_v21 = vadd.f32 %v4170_v49, %v4169_v44  ;;  %v4706_v43 = vld [vmem:[%s6553_s10 + $0x8] sm:$0x1f]  }
 0xaaf   :  { %v2611_v13 = vadd.f32 %v4171_v21, %v6081_v62  ;;  %v2619_v29 = vadd.f32 %v3966_v5, %v2610_v58  ;;  %v2621_v62 = vpack.c.bf16 %v6008_v39, %v6015_v17  ;;  %v4708_v39 = vld [vmem:[%s6553_s10] sm:$0x1f]   ;;  %v4714_v21 = vld [vmem:[%s6557_s24 + $0x8] sm:$0xff]  }
 0xab0   :  { %v4713_v58 = vld [vmem:[%s6557_s24] sm:$0xff]  }
 0xab1   :  { %v2620_v48 = vadd.f32 %v3966_v5, %v2611_v13  ;;  %v2753_v54 = vsel %vm554_vm4, %v2621_v62, 0  ;;  %v4715_v5 = vld [vmem:[%s6557_s24 + $0x10] sm:$0xff]   ;;  %v4716_v13 = vld [vmem:[%s6557_s24 + $0x18] sm:$0xff]   ;;  %v6322_v62 = vld [vmem:[%s6559_s25] sm:$0xff]  }
 0xab3   :  { %v2622_v56 = vpack.c.bf16 %v2620_v48, %v2619_v29  ;;  %v4717_v29 = vld [vmem:[%s6557_s24 + $0x20] sm:$0xff]  }
 0xab5   :  { %2801 = vrot.lane.b32.xlu1 %v2622_v56, %s4987_s30  ;;  %2692 = vrot.lane.b32.xlu0 %v2622_v56, %s4986_s13  ;;  %v2637_v45 = vsel %vm554_vm4, %v2622_v56, 0 }
 0xab6   :  { %4427 = vmatpush3.bf16.msra.mxu0 %v2637_v45 }
 0xab7   :  { %4432 = vmatprep.subr.bf16.mxu0 %v4983_v19 }
 0xab9   :  { %2859 = vrot.lane.b32.xlu0 %v2622_v56, %s4985_s0  ;;  %4429 = vmatmul.mubr.msk.bf16.vlgmr.msra.gmra.mrb[88].mxu0 %vm493_vm3, %v4706_v43 }
 0xaba   :  { %4434 = vmatprep.mubr.msk.bf16.mxu0 %vm4984_vm2, %v4983_v19 }
 0xb27   :  { %v2693_v26 = vpop.permute.xlu0 %2692  ;;  %v2802_v17 = vpop.permute.xlu1 %2801 }
 0xb28   :  { %v2698_v47 = vsel %vm554_vm4, %v2693_v26, 0  ;;  %v2807_v3 = vsel %vm554_vm4, %v2802_v17, 0 }
 0xb29   :  { %4433 = vmatpush3.bf16.msra.mxu0 %v2698_v47 }
 0xb2a   :  { %4438 = vmatprep.subr.bf16.mxu0 %v4983_v19 }
 0xb2b   :  { %v2860_v42 = vpop.permute.xlu0 %2859 }
 0xb2c   :  { %4435 = vmatmul.mubr.msk.bf16.vlgmr.msra.gmra.mrb[88].mxu0 %vm493_vm3, %v4707_v16  ;;  %v2865_v37 = vsel %vm554_vm4, %v2860_v42, 0 }
 0xb2d   :  { %4439 = vmatpush3.bf16.msra.mxu0 %v2753_v54  ;;  %4440 = vmatprep.mubr.msk.bf16.mxu0 %vm4984_vm2, %v4983_v19 }
 0xb2e   :  { %4444 = vmatprep.subr.bf16.mxu0 %v4983_v19 }
 0xb38   :  { %4441 = vmatmul.mubr.msk.bf16.vlgmr.msra.gmra.mrb[88].mxu0 %vm493_vm3, %v4708_v39 }
 0xb39   :  { %4445 = vmatpush3.bf16.msra.mxu0 %v2807_v3  ;;  %4446 = vmatprep.mubr.msk.bf16.mxu0 %vm4984_vm2, %v4983_v19  ;;  %v6331_v3 = vld [vmem:[%s6559_s25 + $0x8] sm:$0xff]  }
 0xb3a   :  { %4450 = vmatprep.subr.bf16.mxu0 %v4983_v19 }
 0xb44   :  { %4447 = vmatmul.mubr.msk.bf16.vlgmr.msra.gmra.mrb[88].mxu0 %vm493_vm3, %v4709_v2 }
 0xb45   :  { %4451 = vmatpush3.bf16.msra.mxu0 %v2865_v37  ;;  %4452 = vmatprep.mubr.msk.bf16.mxu0 %vm4984_vm2, %v4983_v19 }
 0xb46   :  { %4486 = vmatprep.subr.bf16.mxu0 %v4983_v19 }
 0xb50   :  { %4453 = vmatmul.mubr.msk.bf16.vlgmr.msra.gmra.mrb[88].mxu0 %vm493_vm3, %v4710_v22 }
 0xb51   :  { %4488 = vmatprep.mubr.msk.bf16.mxu0 %vm4984_vm2, %v4983_v19 }
 0xc23   :  { %v2901_v50 = vpop.f32.mrb[88].mxu0 }
 0xc24   :  { %v6254_v6 = vadd.f32 %v2901_v50, %v2852_v10  ;;  %v4454_v24 = vpop.f32.mrb[89].mxu0 }
 0xc25   :  { %v2904_v30 = vpop.f32.mrb[90].mxu0 }
 0xc26   :  { %v6256_v31 = vadd.f32 %v2904_v30, %v2853_v61  ;;  %v4455_v4 = vpop.f32.mrb[91].mxu0  ;;  %v2910_v9 = vsel %vm92_vm0, %v6254_v6, 0.0  ;;  %v6340_v61 = vld [vmem:[%s6559_s25 + $0x10] sm:$0xff]  }
 0xc27   :  { %2911 = vadd.xlane.f32.xlu1 %v2910_v9 }
 0xc28   :  { %v2913_v52 = vsel %vm96_vm1, %v6256_v31, 0.0 }
 0xc29   :  { %2914 = vadd.xlane.f32.xlu0 %v2913_v52 }
 0xcb4   :  { %v2912_v33 = vpop.xlane.xlu1 %2911 }
 0xcb5   :  { %v2916_v32 = vmul.f32 0.03125, %v2912_v33 }
 0xcb6   :  { %v2915_v15 = vpop.xlane.xlu0 %2914 }
 0xcb7   :  { %v2918_v0 = vsub.f32 %v6254_v6, %v2916_v32  ;;  %v2917_v12 = vmul.f32 0.03125, %v2915_v15  ;;  %v6349_v32 = vld [vmem:[%s6559_s25 + $0x18] sm:$0xff]  }
 0xcb9   :  { %v2919_v11 = vsub.f32 %v6256_v31, %v2917_v12  ;;  %v2920_v27 = vmul.f32 %v2918_v0, %v2918_v0 }
 0xcbb   :  { %v2922_v53 = vsel %vm92_vm0, %v2920_v27, 0.0  ;;  %v2921_v7 = vmul.f32 %v2919_v11, %v2919_v11 }
 0xcbc   :  { %2923 = vadd.xlane.f32.xlu0 %v2922_v53 }
 0xcbd   :  { %v2925_v36 = vsel %vm96_vm1, %v2921_v7, 0.0  ;;  %v6358_v7 = vld [vmem:[%s6559_s25 + $0x20] sm:$0xff]  }
 0xcc0   :  { %2926 = vadd.xlane.f32.xlu0 %v2925_v36 }
 0xd49   :  { %v2924_v38 = vpop.xlane.xlu0 %2923 }
 0xd4a   :  { %v2928_v25 = vmul.f32 0.03125, %v2924_v38 }
 0xd4c   :  { %v2930_v20 = vadd.f32 1e-05, %v2928_v25  ;;  %v3024_v25 = vld [vmem:[%s6560_s26] sm:$0xff] }
 0xd4d   :  { %v2927_v51 = vpop.xlane.xlu0 %2926 }
 0xd4e   :  { %v2929_v1 = vmul.f32 0.03125, %v2927_v51  ;;  %4908 = vrsqrt.f32 %v2930_v20  ;;  %v3025_v51 = vld [vmem:[%s6560_s26 + $0x8] sm:$0xff] }
 0xd50   :  { %v2931_v41 = vadd.f32 1e-05, %v2929_v1 }
 0xd52   :  { %4910 = vrsqrt.f32 %v2931_v41 }
 0xd58   :  { %v4909_v18 = vpop.eup %4908 }
 0xd59   :  { %v2934_v55 = vmul.f32 %v4909_v18, %v2918_v0 }
 0xd5c   :  { %v4911_v59 = vpop.eup %4910 }
 0xd5d   :  { %v2935_v14 = vmul.f32 %v4911_v59, %v2919_v11 }
 0xd5f   :  { %v2940_v63 = vpack.c.bf16 %v2935_v14, %v2934_v55 }
 0xd61   :  { %4461 = vmatmul.mubr.msk.bf16.vlgmr.msra.gmra.mrb[68].mxu1 %vm92_vm0, %v2940_v63  ;;  %v3026_v63 = vld [vmem:[%s6560_s26 + $0x10] sm:$0xff] }
 0xd62   :  { %4466 = vmatprep.mubr.msk.bf16.mxu1 %vm4984_vm2, %v4983_v19 }
 0xe34   :  { %v2997_v8 = vpop.f32.mrb[68].mxu1 }
 0xe35   :  { %v4462_v60 = vpop.f32.mrb[69].mxu1  ;;  %v2998_v34 = vadd.f32 %v3985_v40, %v2997_v8 }
 0xe36   :  { %v3000_v23 = vpop.f32.mrb[70].mxu1  ;;  %v3027_v60 = vld [vmem:[%s6560_s26 + $0x18] sm:$0xff] }
 0xe37   :  { %v3001_v28 = vadd.f32 %v3985_v40, %v3000_v23  ;;  %v4463_v46 = vpop.f32.mrb[71].mxu1 }
 0xe39   :  { %v6280_v44 = vpack.c.bf16 %v3001_v28, %v2998_v34 }
 0xe3b   :  { %3194 = vrot.lane.b32.xlu1 %v6280_v44, %s4987_s30  ;;  %v3078_v49 = vsel %vm554_vm4, %v6280_v44, 0 }
 0xe3c   :  { %4465 = vmatpush3.bf16.msra.mxu1 %v3078_v49 }
 0xe3d   :  { %4508 = vmatprep.subr.bf16.mxu1 %v4983_v19 }
 0xe3f   :  { %4467 = vmatmul.mubr.msk.bf16.vlgmr.msra.gmra.mrb[72].mxu1 %vm493_vm3, %v4713_v58 }
 0xe40   :  { %4470 = vmatprep.mubr.msk.bf16.mxu1 %vm4984_vm2, %v4983_v19 }
 0xe47   :  { %4471 = vmatmul.mubr.msk.bf16.gmra.mrb[76].mxu1 %vm493_vm3, %v4714_v21  ;;  %v3028_v21 = vld [vmem:[%s6560_s26 + $0x20] sm:$0xff] }
 0xe48   :  { %4474 = vmatprep.mubr.msk.bf16.mxu1 %vm4984_vm2, %v4983_v19 }
 0xe4f   :  { %4475 = vmatmul.mubr.msk.bf16.gmra.mrb[80].mxu1 %vm493_vm3, %v4715_v5 }
 0xe50   :  { %4478 = vmatprep.mubr.msk.bf16.mxu1 %vm4984_vm2, %v4983_v19 }
 0xe57   :  { %4479 = vmatmul.mubr.msk.bf16.gmra.mrb[84].mxu1 %vm493_vm3, %v4716_v13 }
 0xe58   :  { %4482 = vmatprep.mubr.msk.bf16.mxu1 %vm4984_vm2, %v4983_v19 }
 0xe5f   :  { %4483 = vmatmul.mubr.msk.bf16.gmra.mrb[88].mxu1 %vm493_vm3, %v4717_v29  ;;  %v3029_v29 = vld [vmem:[%s6560_s26 + $0x28] sm:$0xff] }
 0xe60   :  { %4510 = vmatprep.mubr.msk.bf16.mxu1 %vm4984_vm2, %v4983_v19 }
 0xead   :  { %v3195_v48 = vpop.permute.xlu1 %3194 }
 0xeae   :  { %v3212_v56 = vsel %vm92_vm0, %v3195_v48, 0 }
 0xeaf   :  { %4487 = vmatpush3.bf16.xpose.msra.mxu0 %v3212_v56 }
 0xeb0   :  { %4530 = vmatprep.subr.bf16.mxu0 %v4983_v19 }
 0xf12   :  { %v3114_v45 = vpop.f32.mrb[72].mxu1 }
 0xf13   :  { %v4468_v43 = vpop.f32.mrb[73].mxu1 }
 0xf14   :  { %v3117_v26 = vpop.f32.mrb[74].mxu1 }
 0xf15   :  { %v3153_v47 = vpack.c.bf16 %v3117_v26, %v3114_v45  ;;  %v4469_v16 = vpop.f32.mrb[75].mxu1 }
 0xf17   :  { %v3188_v54 = vmul.bf16 %v6322_v62, %v3153_v47 }
 0xf19   :  { %4489 = vmatmul.mubr.msk.bf16.vlgmr.msra.gmra.mrb[92].mxu0 %vm92_vm0, %v3188_v54  ;;  %v3030_v54 = vld [vmem:[%s6560_s26 + $0x30] sm:$0xff] }
 0xf1a   :  { %v3122_v39 = vpop.f32.mrb[76].mxu1  ;;  %4492 = vmatprep.mubr.msk.bf16.mxu0 %vm4984_vm2, %v4983_v19 }
 0xf1b   :  { %v4472_v17 = vpop.f32.mrb[77].mxu1 }
 0xf1c   :  { %v3125_v2 = vpop.f32.mrb[78].mxu1  ;;  %v3031_v17 = vld [vmem:[%s6560_s26 + $0x38] sm:$0xff] }
 0xf1d   :  { %v3154_v42 = vpack.c.bf16 %v3125_v2, %v3122_v39  ;;  %v4473_v37 = vpop.f32.mrb[79].mxu1 }
 0xf1f   :  { %v3189_v22 = vmul.bf16 %v6331_v3, %v3154_v42 }
 0xf21   :  { %4493 = vmatmul.mubr.msk.bf16.gmra.mrb[96].mxu0 %vm92_vm0, %v3189_v22 }
 0xf22   :  { %v3130_v10 = vpop.f32.mrb[80].mxu1  ;;  %4496 = vmatprep.mubr.msk.bf16.mxu0 %vm4984_vm2, %v4983_v19 }
 0xf23   :  { %v4476_v50 = vpop.f32.mrb[81].mxu1 }
 0xf24   :  { %v3133_v24 = vpop.f32.mrb[82].mxu1 }
 0xf25   :  { %v3155_v30 = vpack.c.bf16 %v3133_v24, %v3130_v10  ;;  %v4477_v4 = vpop.f32.mrb[83].mxu1  ;;  %v3032_v24 = vld [vmem:[%s6560_s26 + $0x40] sm:$0xff] }
 0xf27   :  { %v3190_v9 = vmul.bf16 %v6340_v61, %v3155_v30 }
 0xf29   :  { %4497 = vmatmul.mubr.msk.bf16.gmra.mrb[100].mxu0 %vm92_vm0, %v3190_v9  ;;  %v3033_v9 = vld [vmem:[%s6560_s26 + $0x48] sm:$0xff] }
 0xf2a   :  { %v3138_v52 = vpop.f32.mrb[84].mxu1  ;;  %4500 = vmatprep.mubr.msk.bf16.mxu0 %vm4984_vm2, %v4983_v19 }
 0xf2b   :  { %v4480_v33 = vpop.f32.mrb[85].mxu1 }
 0xf2c   :  { %v3141_v15 = vpop.f32.mrb[86].mxu1 }
 0xf2d   :  { %v3156_v0 = vpack.c.bf16 %v3141_v15, %v3138_v52  ;;  %v4481_v12 = vpop.f32.mrb[87].mxu1 }
 0xf2f   :  { %v3191_v11 = vmul.bf16 %v6349_v32, %v3156_v0 }
 0xf31   :  { %4501 = vmatmul.mubr.msk.bf16.gmra.mrb[104].mxu0 %vm92_vm0, %v3191_v11 }
 0xf32   :  { %v3146_v27 = vpop.f32.mrb[88].mxu1  ;;  %4504 = vmatprep.mubr.msk.bf16.mxu0 %vm4984_vm2, %v4983_v19 }
 0xf33   :  { %v4484_v53 = vpop.f32.mrb[89].mxu1 }
 0xf34   :  { %v3149_v36 = vpop.f32.mrb[90].mxu1 }
 0xf35   :  { %v3157_v57 = vpack.c.bf16 %v3149_v36, %v3146_v27  ;;  %v4485_v35 = vpop.f32.mrb[91].mxu1 }
 0xf37   :  { %v3192_v38 = vmul.bf16 %v6358_v7, %v3157_v57 }
 0xf39   :  { %4505 = vmatmul.mubr.msk.bf16.gmra.mrb[108].mxu0 %vm92_vm0, %v3192_v38 }
 0xf3a   :  { %4540 = vmatprep.mubr.msk.bf16.mxu0 %vm4984_vm2, %v4983_v19 }
 0xfec   :  { %v3248_v20 = vpop.f32.mrb[92].mxu0 }
 0xfed   :  { %v3249_v1 = vadd.f32 %v3248_v20, %v3024_v25  ;;  %v4490_v41 = vpop.f32.mrb[93].mxu0 }
 0xfee   :  { %v3251_v18 = vpop.f32.mrb[94].mxu0 }
 0xfef   :  { %v3287_v59 = vsel %vm493_vm3, %v3249_v1, -inf  ;;  %v3252_v55 = vadd.f32 %v3251_v18, %v3025_v51  ;;  %v4491_v14 = vpop.f32.mrb[95].mxu0 }
 0xff0   :  { %3288 = vmax.xlane.f32.xlu0 %v3287_v59 }
 0xff1   :  { %v3290_v40 = vsel %vm493_vm3, %v3252_v55, -inf }
 0xff4   :  { %3291 = vmax.xlane.f32.xlu0 %v3290_v40  ;;  %v3256_v8 = vpop.f32.mrb[96].mxu0 }
 0xff5   :  { %v3257_v23 = vadd.f32 %v3256_v8, %v3026_v63  ;;  %v4494_v34 = vpop.f32.mrb[97].mxu0 }
 0xff6   :  { %v3259_v28 = vpop.f32.mrb[98].mxu0 }
 0xff7   :  { %v3293_v46 = vsel %vm493_vm3, %v3257_v23, -inf  ;;  %v3260_v49 = vadd.f32 %v3259_v28, %v3027_v60  ;;  %v4495_v58 = vpop.f32.mrb[99].mxu0 }
 0xff8   :  { %3294 = vmax.xlane.f32.xlu0 %v3293_v46 }
 0xff9   :  { %v3296_v5 = vsel %vm493_vm3, %v3260_v49, -inf }
 0xffc   :  { %3297 = vmax.xlane.f32.xlu0 %v3296_v5  ;;  %v3264_v13 = vpop.f32.mrb[100].mxu0 }
 0xffd   :  { %v3265_v48 = vadd.f32 %v3264_v13, %v3028_v21  ;;  %v4498_v56 = vpop.f32.mrb[101].mxu0 }
 0xffe   :  { %v3267_v45 = vpop.f32.mrb[102].mxu0 }
 0xfff   :  { %v3268_v43 = vadd.f32 %v3267_v45, %v3029_v29  ;;  %v3299_v26 = vsel %vm493_vm3, %v3265_v48, -inf  ;;  %v4499_v47 = vpop.f32.mrb[103].mxu0 }
0x1000   :  { %3300 = vmax.xlane.f32.xlu1 %v3299_v26 }
0x1001   :  { %v3302_v16 = vsel %vm493_vm3, %v3268_v43, -inf }
0x1002   :  { %3303 = vmax.xlane.f32.xlu0 %v3302_v16 }
0x1004   :  { %v3272_v39 = vpop.f32.mrb[104].mxu0 }
0x1005   :  { %v3273_v2 = vadd.f32 %v3272_v39, %v3030_v54  ;;  %v4502_v42 = vpop.f32.mrb[105].mxu0 }
0x1006   :  { %v3275_v37 = vpop.f32.mrb[106].mxu0 }
0x1007   :  { %v3305_v22 = vsel %vm493_vm3, %v3273_v2, -inf  ;;  %v3276_v10 = vadd.f32 %v3275_v37, %v3031_v17  ;;  %v4503_v50 = vpop.f32.mrb[107].mxu0 }
0x1008   :  { %3306 = vmax.xlane.f32.xlu0 %v3305_v22 }
0x1009   :  { %v3308_v30 = vsel %vm493_vm3, %v3276_v10, -inf }
0x100c   :  { %3309 = vmax.xlane.f32.xlu0 %v3308_v30  ;;  %v3280_v4 = vpop.f32.mrb[108].mxu0 }
0x100d   :  { %v3281_v52 = vadd.f32 %v3280_v4, %v3032_v24  ;;  %v4506_v33 = vpop.f32.mrb[109].mxu0 }
0x100e   :  { %v3283_v15 = vpop.f32.mrb[110].mxu0 }
0x100f   :  { %v3311_v0 = vsel %vm493_vm3, %v3281_v52, -inf  ;;  %v3284_v12 = vadd.f32 %v3283_v15, %v3033_v9  ;;  %v4507_v11 = vpop.f32.mrb[111].mxu0 }
0x1010   :  { %3312 = vmax.xlane.f32.xlu0 %v3311_v0 }
0x1011   :  { %v3314_v27 = vsel %vm493_vm3, %v3284_v12, -inf }
0x1014   :  { %3315 = vmax.xlane.f32.xlu0 %v3314_v27 }
0x107d   :  { %v3289_v53 = vpop.xlane.xlu0 %3288 }
0x107e   :  { %v3317_v36 = vsub.f32 %v3249_v1, %v3289_v53 }
0x1080   :  { %v3327_v57 = vmul.f32 1.442695, %v3317_v36 }
0x1081   :  { %v3292_v35 = vpop.xlane.xlu0 %3291 }
0x1082   :  { %4912 = vpow2.f32 %v3327_v57  ;;  %v3318_v38 = vsub.f32 %v3252_v55, %v3292_v35 }
0x1084   :  { %v3329_v25 = vmul.f32 1.442695, %v3318_v38 }
0x1085   :  { %v3295_v20 = vpop.xlane.xlu0 %3294 }
0x1086   :  { %4914 = vpow2.f32 %v3329_v25  ;;  %v3319_v51 = vsub.f32 %v3257_v23, %v3295_v20 }
0x1088   :  { %v3331_v41 = vmul.f32 1.442695, %v3319_v51 }
0x1089   :  { %v3298_v18 = vpop.xlane.xlu0 %3297 }
0x108a   :  { %4916 = vpow2.f32 %v3331_v41  ;;  %v3320_v59 = vsub.f32 %v3260_v49, %v3298_v18 }
0x108c   :  { %v6404_v14 = vpop.eup %4912  ;;  %v3333_v63 = vmul.f32 1.442695, %v3320_v59 }
0x108d   :  { %v3301_v40 = vpop.xlane.xlu1 %3300  ;;  %v3347_v8 = vsel %vm493_vm3, %v6404_v14, 0.0 }
0x108e   :  { %4918 = vpow2.f32 %v3333_v63  ;;  %v3321_v1 = vsub.f32 %v3265_v48, %v3301_v40  ;;  %3348 = vadd.xlane.f32.xlu0 %v3347_v8 }
0x108f   :  { %v3304_v60 = vpop.xlane.xlu0 %3303 }
0x1090   :  { %v4915_v55 = vpop.eup %4914  ;;  %v3335_v34 = vmul.f32 1.442695, %v3321_v1  ;;  %v3322_v28 = vsub.f32 %v3268_v43, %v3304_v60 }
0x1091   :  { %v3350_v23 = vsel %vm493_vm3, %v4915_v55, 0.0 }
0x1092   :  { %4920 = vpow2.f32 %v3335_v34  ;;  %v3337_v46 = vmul.f32 1.442695, %v3322_v28  ;;  %3351 = vadd.xlane.f32.xlu0 %v3350_v23 }
0x1094   :  { %v6409_v49 = vpop.eup %4916  ;;  %4922 = vpow2.f32 %v3337_v46 }
0x1095   :  { %v3307_v58 = vpop.xlane.xlu0 %3306  ;;  %v3353_v21 = vsel %vm493_vm3, %v6409_v49, 0.0 }
0x1096   :  { %v3323_v5 = vsub.f32 %v3273_v2, %v3307_v58  ;;  %3354 = vadd.xlane.f32.xlu0 %v3353_v21 }
0x1098   :  { %v6413_v13 = vpop.eup %4918  ;;  %v3339_v29 = vmul.f32 1.442695, %v3323_v5 }
0x1099   :  { %v3310_v48 = vpop.xlane.xlu0 %3309  ;;  %v3356_v56 = vsel %vm493_vm3, %v6413_v13, 0.0 }
0x109a   :  { %4924 = vpow2.f32 %v3339_v29  ;;  %v3324_v45 = vsub.f32 %v3276_v10, %v3310_v48  ;;  %3357 = vadd.xlane.f32.xlu0 %v3356_v56 }
0x109c   :  { %v6417_v43 = vpop.eup %4920  ;;  %v3341_v26 = vmul.f32 1.442695, %v3324_v45 }
0x109d   :  { %v3313_v47 = vpop.xlane.xlu0 %3312  ;;  %v3359_v16 = vsel %vm493_vm3, %v6417_v43, 0.0 }
0x109e   :  { %v6421_v54 = vpop.eup %4922  ;;  %4926 = vpow2.f32 %v3341_v26  ;;  %v3325_v39 = vsub.f32 %v3281_v52, %v3313_v47  ;;  %3360 = vadd.xlane.f32.xlu1 %v3359_v16 }
0x109f   :  { %v3362_v17 = vsel %vm493_vm3, %v6421_v54, 0.0 }
0x10a0   :  { %v3343_v2 = vmul.f32 1.442695, %v3325_v39  ;;  %3363 = vadd.xlane.f32.xlu0 %v3362_v17 }
0x10a1   :  { %v3316_v42 = vpop.xlane.xlu0 %3315 }
0x10a2   :  { %4928 = vpow2.f32 %v3343_v2  ;;  %v3326_v37 = vsub.f32 %v3284_v12, %v3316_v42 }
0x10a4   :  { %v6425_v22 = vpop.eup %4924  ;;  %v3345_v10 = vmul.f32 1.442695, %v3326_v37 }
0x10a5   :  { %v3365_v50 = vsel %vm493_vm3, %v6425_v22, 0.0 }
0x10a6   :  { %4930 = vpow2.f32 %v3345_v10  ;;  %3366 = vadd.xlane.f32.xlu1 %v3365_v50 }
0x10a8   :  { %v4927_v24 = vpop.eup %4926 }
0x10a9   :  { %v3368_v30 = vsel %vm493_vm3, %v4927_v24, 0.0 }
0x10aa   :  { %3369 = vadd.xlane.f32.xlu0 %v3368_v30 }
0x10ac   :  { %v4929_v4 = vpop.eup %4928 }
0x10ad   :  { %v3371_v9 = vsel %vm493_vm3, %v4929_v4, 0.0 }
0x10ae   :  { %3372 = vadd.xlane.f32.xlu0 %v3371_v9 }
0x10b0   :  { %v4931_v52 = vpop.eup %4930 }
0x10b1   :  { %v3374_v33 = vsel %vm493_vm3, %v4931_v52, 0.0 }
0x10b2   :  { %3375 = vadd.xlane.f32.xlu0 %v3374_v33 }
0x10b7   :  { %3402 = vrot.lane.b32.xlu1 %v6280_v44, %s4986_s13 }
0x111b   :  { %v3349_v15 = vpop.xlane.xlu0 %3348 }
0x111f   :  { %v3352_v0 = vpop.xlane.xlu0 %3351 }
0x1120   :  { %4932 = vrcp.f32 %v3352_v0 }
0x1121   :  { %4934 = vrcp.f32 %v3349_v15 }
0x1123   :  { %v3355_v12 = vpop.xlane.xlu0 %3354 }
0x1127   :  { %v3358_v11 = vpop.xlane.xlu0 %3357 }
0x1128   :  { %4936 = vrcp.f32 %v3358_v11 }
0x1129   :  { %4938 = vrcp.f32 %v3355_v12 }
0x112a   :  { %v4933_v53 = vpop.eup %4932 }
0x112b   :  { %v3361_v27 = vpop.xlane.xlu1 %3360  ;;  %v4935_v57 = vpop.eup %4934  ;;  %v3388_v35 = vmul.f32 %v4933_v53, %v4915_v55 }
0x112c   :  { %v3387_v20 = vmul.f32 %v4935_v57, %v6404_v14 }
0x112d   :  { %v3364_v38 = vpop.xlane.xlu0 %3363 }
0x112e   :  { %4940 = vrcp.f32 %v3364_v38  ;;  %v3397_v44 = vpack.c.bf16 %v3388_v35, %v3387_v20  ;;  %v4723_v35 = vld [vmem:[%s6561_s27] sm:$0x1f]  }
0x112f   :  { %4942 = vrcp.f32 %v3361_v27 }
0x1132   :  { %v4937_v18 = vpop.eup %4936 }
0x1133   :  { %v3367_v36 = vpop.xlane.xlu1 %3366  ;;  %v4939_v59 = vpop.eup %4938  ;;  %v3390_v63 = vmul.f32 %v4937_v18, %v6413_v13  ;;  %v4019_v18 = vld [vmem:[%s6563_s19] ss:$0 sm:$0xff] }
0x1134   :  { %v3389_v14 = vmul.f32 %v4939_v59, %v6409_v49 }
0x1136   :  { %v3398_v8 = vpack.c.bf16 %v3390_v63, %v3389_v14 }
0x1137   :  { %v3403_v25 = vpop.permute.xlu1 %3402  ;;  %v3370_v41 = vpop.xlane.xlu0 %3369 }
0x1138   :  { %v3420_v51 = vsel %vm554_vm4, %v3403_v25, 0  ;;  %4944 = vrcp.f32 %v3370_v41  ;;  %v4941_v1 = vpop.eup %4940 }
0x1139   :  { %4509 = vmatpush3.bf16.msra.mxu1 %v3420_v51  ;;  %4946 = vrcp.f32 %v3367_v36  ;;  %v4943_v60 = vpop.eup %4942  ;;  %v3392_v34 = vmul.f32 %v4941_v1, %v6421_v54 }
0x113a   :  { %4552 = vmatprep.subr.bf16.mxu1 %v4983_v19  ;;  %v3391_v28 = vmul.f32 %v4943_v60, %v6417_v43 }
0x113b   :  { %v3373_v40 = vpop.xlane.xlu0 %3372 }
0x113c   :  { %4511 = vmatmul.mubr.msk.bf16.vlgmr.msra.gmra.mrb[92].mxu1 %vm493_vm3, %v3397_v44  ;;  %v3399_v23 = vpack.c.bf16 %v3392_v34, %v3391_v28 }
0x113d   :  { %4514 = vmatprep.mubr.msk.bf16.mxu1 %vm4984_vm2, %v4983_v19 }
0x113f   :  { %v3376_v55 = vpop.xlane.xlu0 %3375 }
0x1140   :  { %4948 = vrcp.f32 %v3376_v55 }
0x1141   :  { %4950 = vrcp.f32 %v3373_v40 }
0x1142   :  { %v4945_v46 = vpop.eup %4944 }
0x1143   :  { %v4947_v49 = vpop.eup %4946  ;;  %v3394_v58 = vmul.f32 %v4945_v46, %v4927_v24 }
0x1144   :  { %4515 = vmatmul.mubr.msk.bf16.gmra.mrb[96].mxu1 %vm493_vm3, %v3398_v8  ;;  %v3393_v21 = vmul.f32 %v4947_v49, %v6425_v22 }
0x1145   :  { %4518 = vmatprep.mubr.msk.bf16.mxu1 %vm4984_vm2, %v4983_v19 }
0x1146   :  { %v3400_v5 = vpack.c.bf16 %v3394_v58, %v3393_v21 }
0x114a   :  { %v4949_v13 = vpop.eup %4948 }
0x114b   :  { %v4951_v29 = vpop.eup %4950  ;;  %v3396_v48 = vmul.f32 %v4949_v13, %v4931_v52 }
0x114c   :  { %4519 = vmatmul.mubr.msk.bf16.gmra.mrb[100].mxu1 %vm493_vm3, %v3399_v23  ;;  %v3395_v56 = vmul.f32 %v4951_v29, %v4929_v4  ;;  %v4726_v29 = vld [vmem:[%s6564_s20] sm:$0xff]  }
0x114d   :  { %4522 = vmatprep.mubr.msk.bf16.mxu1 %vm4984_vm2, %v4983_v19  ;;  %4553 = vmatpush3.bf16.msra.mxu1 %v4726_v29 }
0x114e   :  { %v3401_v45 = vpack.c.bf16 %v3396_v48, %v3395_v56  ;;  %4554 = vmatprep.subr.bf16.mxu1 %v4983_v19  ;;  %v4727_v48 = vld [vmem:[%s6564_s20 + $0x8] sm:$0xff]  }
0x1151   :  { %4555 = vmatpush3.bf16.msra.mxu1 %v4727_v48 }
0x1154   :  { %4523 = vmatmul.mubr.msk.bf16.gmra.mrb[104].mxu1 %vm493_vm3, %v3400_v5 }
0x1155   :  { %4526 = vmatprep.mubr.msk.bf16.mxu1 %vm4984_vm2, %v4983_v19 }
0x115c   :  { %4527 = vmatmul.mubr.msk.bf16.gmra.mrb[108].mxu1 %vm493_vm3, %v3401_v45 }
0x115d   :  { %4556 = vmatprep.mubr.msk.bf16.mxu1 %vm4984_vm2, %v4983_v19 }
0x120f   :  { %v3456_v43 = vpop.f32.mrb[92].mxu1 }
0x1210   :  { %v4512_v26 = vpop.f32.mrb[93].mxu1 }
0x1211   :  { %v3459_v47 = vpop.f32.mrb[94].mxu1 }
0x1212   :  { %v3495_v16 = vpack.c.bf16 %v3459_v47, %v3456_v43  ;;  %v4513_v54 = vpop.f32.mrb[95].mxu1 }
0x1214   :  { %v3500_v39 = vmul.bf16 %v6322_v62, %v3495_v16 }
0x1216   :  { %4531 = vmatpush3.bf16.msra.mxu0 %v3500_v39 }
0x1217   :  { %v3464_v17 = vpop.f32.mrb[96].mxu1  ;;  %4532 = vmatprep.subr.bf16.mxu0 %v4983_v19 }
0x1218   :  { %v4516_v2 = vpop.f32.mrb[97].mxu1 }
0x1219   :  { %v3467_v42 = vpop.f32.mrb[98].mxu1 }
0x121a   :  { %v3496_v37 = vpack.c.bf16 %v3467_v42, %v3464_v17  ;;  %v4517_v22 = vpop.f32.mrb[99].mxu1 }
0x121b   :  { %v4729_v22 = vld [vmem:[%s6565_s22 + $0x8] sm:$0xff]  }
0x121c   :  { %v3501_v10 = vmul.bf16 %v6331_v3, %v3496_v37  ;;  %v4728_v37 = vld [vmem:[%s6565_s22] sm:$0xff]  }
0x121e   :  { %4533 = vmatpush3.bf16.msra.mxu0 %v3501_v10  ;;  %v4730_v10 = vld [vmem:[%s6565_s22 + $0x10] sm:$0xff]  }
0x121f   :  { %v3472_v50 = vpop.f32.mrb[100].mxu1  ;;  %4534 = vmatprep.subr.bf16.mxu0 %v4983_v19 }
0x1220   :  { %v4520_v24 = vpop.f32.mrb[101].mxu1 }
0x1221   :  { %v3475_v30 = vpop.f32.mrb[102].mxu1  ;;  %v4020_v24 = vld [vmem:[%s6566_s21] ss:$0 sm:$0xff] }
0x1222   :  { %v3497_v4 = vpack.c.bf16 %v3475_v30, %v3472_v50  ;;  %v4521_v9 = vpop.f32.mrb[103].mxu1  ;;  %v4731_v50 = vld [vmem:[%s6565_s22 + $0x18] sm:$0xff]  }
0x1224   :  { %v3502_v62 = vmul.bf16 %v6340_v61, %v3497_v4 }
0x1226   :  { %4535 = vmatpush3.bf16.msra.mxu0 %v3502_v62 }
0x1227   :  { %v3480_v52 = vpop.f32.mrb[104].mxu1  ;;  %4536 = vmatprep.subr.bf16.mxu0 %v4983_v19 }
0x1228   :  { %v4524_v33 = vpop.f32.mrb[105].mxu1 }
0x1229   :  { %v3483_v15 = vpop.f32.mrb[106].mxu1 }
0x122a   :  { %v3498_v0 = vpack.c.bf16 %v3483_v15, %v3480_v52  ;;  %v4525_v12 = vpop.f32.mrb[107].mxu1 }
0x122c   :  { %v3503_v3 = vmul.bf16 %v6349_v32, %v3498_v0  ;;  %v4724_v32 = vld [vmem:[%s6562_s18] sm:$0xff]  }
0x122e   :  { %4537 = vmatpush3.bf16.msra.mxu0 %v3503_v3 }
0x122f   :  { %v3488_v11 = vpop.f32.mrb[108].mxu1  ;;  %4538 = vmatprep.subr.bf16.mxu0 %v4983_v19 }
0x1230   :  { %v4528_v27 = vpop.f32.mrb[109].mxu1 }
0x1231   :  { %v3491_v53 = vpop.f32.mrb[110].mxu1 }
0x1232   :  { %v3499_v36 = vpack.c.bf16 %v3491_v53, %v3488_v11  ;;  %v4529_v57 = vpop.f32.mrb[111].mxu1 }
0x1234   :  { %v3504_v61 = vmul.bf16 %v6358_v7, %v3499_v36  ;;  %v4725_v7 = vld [vmem:[%s6562_s18 + $0x8] sm:$0xff]  }
0x1236   :  { %4539 = vmatpush3.bf16.msra.mxu0 %v3504_v61 }
0x1237   :  { %4544 = vmatprep.subr.bf16.mxu0 %v4983_v19 }
0x1239   :  { %4541 = vmatmul.mubr.msk.bf16.vlgmr.msra.gmra.mrb[112].mxu0 %vm3510_vm7, %v4723_v35 }
0x123a   :  { %4545 = vmatpush3.bf16.msra.mxu0 %v4724_v32  ;;  %4548 = vmatprep.mubr.msk.bf16.mxu0 %vm4984_vm2, %v4983_v19  ;;  %v4029_v32 = vld [vmem:[%s6567_s23] ss:$0 sm:$0xff] }
0x123b   :  { %4546 = vmatprep.subr.bf16.mxu0 %v4983_v19 }
0x123e   :  { %4547 = vmatpush3.bf16.msra.mxu0 %v4725_v7 }
0x123f   :  { %4560 = vmatprep.subr.bf16.mxu0 %v4983_v19 }
0x130c   :  { %v3548_v38 = vpop.f32.mrb[112].mxu0 }
0x130d   :  { %v4542_v25 = vpop.f32.mrb[113].mxu0 }
0x130e   :  { %v3551_v20 = vpop.f32.mrb[114].mxu0 }
0x130f   :  { %v3559_v51 = vpack.c.bf16 %v3551_v20, %v3548_v38  ;;  %v4543_v44 = vpop.f32.mrb[115].mxu0 }
0x1311   :  { %4549 = vmatmul.mubr.msk.bf16.vlgmr.msra.gmra.mrb[116].mxu0 %vm92_vm0, %v3559_v51 }
0x1312   :  { %4568 = vmatprep.mubr.msk.bf16.mxu0 %vm4984_vm2, %v4983_v19  ;;  %4561 = vmatpush3.bf16.msra.mxu0 %v4728_v37 }
0x1313   :  { %4562 = vmatprep.subr.bf16.mxu0 %v4983_v19 }
0x1316   :  { %4563 = vmatpush3.bf16.msra.mxu0 %v4729_v22 }
0x1317   :  { %4564 = vmatprep.subr.bf16.mxu0 %v4983_v19 }
0x131a   :  { %4565 = vmatpush3.bf16.msra.mxu0 %v4730_v10 }
0x131b   :  { %4566 = vmatprep.subr.bf16.mxu0 %v4983_v19 }
0x131e   :  { %4567 = vmatpush3.bf16.msra.mxu0 %v4731_v50 }
0x13e4   :  { %v3609_v41 = vpop.f32.mrb[116].mxu0 }
0x13e5   :  { %v3616_v59 = vadd.f32 %v3609_v41, %v6254_v6  ;;  %v4550_v63 = vpop.f32.mrb[117].mxu0 }
0x13e6   :  { %v3612_v40 = vpop.f32.mrb[118].mxu0 }
0x13e7   :  { %v6487_v14 = vadd.f32 %v4019_v18, %v3616_v59  ;;  %v3617_v8 = vadd.f32 %v3612_v40, %v6256_v31  ;;  %v4551_v1 = vpop.f32.mrb[119].mxu0 }
0x13e9   :  { %v6490_v60 = vadd.f32 %v4019_v18, %v3617_v8  ;;  %v3627_v55 = vsel %vm92_vm0, %v6487_v14, 0.0 }
0x13ea   :  { %3628 = vadd.xlane.f32.xlu0 %v3627_v55 }
0x13eb   :  { %v3630_v34 = vsel %vm96_vm1, %v6490_v60, 0.0 }
0x13ee   :  { %3631 = vadd.xlane.f32.xlu0 %v3630_v34 }
0x1477   :  { %v3629_v28 = vpop.xlane.xlu0 %3628 }
0x1478   :  { %v3633_v23 = vmul.f32 0.03125, %v3629_v28 }
0x147a   :  { %v3635_v6 = vsub.f32 %v6487_v14, %v3633_v23 }
0x147b   :  { %v3632_v46 = vpop.xlane.xlu0 %3631 }
0x147c   :  { %v3634_v49 = vmul.f32 0.03125, %v3632_v46  ;;  %v3637_v58 = vmul.f32 %v3635_v6, %v3635_v6 }
0x147e   :  { %v3636_v31 = vsub.f32 %v6490_v60, %v3634_v49  ;;  %v3639_v21 = vsel %vm92_vm0, %v3637_v58, 0.0 }
0x147f   :  { %3640 = vadd.xlane.f32.xlu1 %v3639_v21 }
0x1480   :  { %v3638_v5 = vmul.f32 %v3636_v31, %v3636_v31 }
0x1482   :  { %v3642_v13 = vsel %vm96_vm1, %v3638_v5, 0.0 }
0x1483   :  { %3643 = vadd.xlane.f32.xlu0 %v3642_v13 }
0x150c   :  { %v3641_v56 = vpop.xlane.xlu1 %3640 }
0x150d   :  { %v3645_v45 = vmul.f32 0.03125, %v3641_v56 }
0x150f   :  { %v3647_v43 = vadd.f32 1e-05, %v3645_v45 }
0x1510   :  { %v3644_v26 = vpop.xlane.xlu0 %3643 }
0x1511   :  { %v3646_v47 = vmul.f32 0.03125, %v3644_v26  ;;  %4952 = vrsqrt.f32 %v3647_v43 }
0x1513   :  { %v3648_v16 = vadd.f32 1e-05, %v3646_v47 }
0x1515   :  { %4954 = vrsqrt.f32 %v3648_v16 }
0x151b   :  { %v4953_v54 = vpop.eup %4952 }
0x151c   :  { %v3651_v17 = vmul.f32 %v4953_v54, %v3635_v6 }
0x151f   :  { %v4955_v39 = vpop.eup %4954 }
0x1520   :  { %v3652_v2 = vmul.f32 %v4955_v39, %v3636_v31 }
0x1522   :  { %v3657_v42 = vpack.c.bf16 %v3652_v2, %v3651_v17 }
0x1524   :  { %4557 = vmatmul.mubr.msk.bf16.vlgmr.msra.gmra.mrb[112].mxu1 %vm92_vm0, %v3657_v42 }
0x15f7   :  { %v3714_v30 = vpop.f32.mrb[112].mxu1 }
0x15f8   :  { %v3715_v4 = vadd.f32 %v4020_v24, %v3714_v30  ;;  %v4558_v9 = vpop.f32.mrb[113].mxu1 }
0x15f9   :  { %v3717_v62 = vpop.f32.mrb[114].mxu1 }
0x15fa   :  { %v3723_v52 = vmul.f32 0.70710677, %v3715_v4  ;;  %v3718_v33 = vadd.f32 %v4020_v24, %v3717_v62  ;;  %v4559_v15 = vpop.f32.mrb[115].mxu1  ;;  %v3721_v11 = vmul.f32 0.5, %v3715_v4 }
0x15fc   :  { %4956 = verf.f32 %v3723_v52  ;;  %v3724_v0 = vmul.f32 0.70710677, %v3718_v33  ;;  %v3722_v27 = vmul.f32 0.5, %v3718_v33 }
0x15fe   :  { %4958 = verf.f32 %v3724_v0 }
0x1606   :  { %v4957_v19 = vpop.eup %4956 }
0x1607   :  { %v3727_v12 = vadd.f32 1.0, %v4957_v19 }
0x1608   :  { %v4959_v3 = vpop.eup %4958 }
0x1609   :  { %v3728_v53 = vadd.f32 1.0, %v4959_v3  ;;  %v3729_v36 = vmul.f32 %v3727_v12, %v3721_v11 }
0x160b   :  { %v3730_v57 = vmul.f32 %v3728_v53, %v3722_v27 }
0x160d   :  { %v3739_v61 = vpack.c.bf16 %v3730_v57, %v3729_v36 }
0x160f   :  { %4569 = vmatmul.mubr.msk.bf16.vlgmr.msra.gmra.mrb[120].mxu0 %vm1875_vm5, %v3739_v61 }
0x16e2   :  { %v3801_v35 = vpop.f32.mrb[120].mxu0 }
0x16e3   :  { %v3808_v7 = vadd.f32 %v3801_v35, %v6487_v14  ;;  %v4570_v38 = vpop.f32.mrb[121].mxu0 }
0x16e4   :  { %v3804_v25 = vpop.f32.mrb[122].mxu0 }
0x16e5   :  { %v3817_v20 = vadd.f32 %v4029_v32, %v3808_v7  ;;  %v3809_v51 = vadd.f32 %v3804_v25, %v6490_v60  ;;  %v4571_v44 = vpop.f32.mrb[123].mxu0 }
0x16e7   :  { %3819 = vst.msk [vmem:[%s6568_s28] sm:$0xff] %vm92_vm0, %v3817_v20  ;;  %v3818_v41 = vadd.f32 %v4029_v32, %v3809_v51 }
0x16e9   :  { %3820 = vst.msk [vmem:[%s6568_s28 + $0x8] sm:$0x3] %vm96_vm1, %v3818_v41 }

</bundles_post_ra>
